<compile_context>
chip_gen: v7x
topology: tpu7x:2x2x1
jax: 0.10.0
libtpu: 0.0.40
codegen_flags: <defaults>
</compile_context>

<pallas_src>
import math

import jax
import jax.numpy as jnp
from jax.experimental import pallas as pl
from jax.experimental.pallas import tpu as pltpu


# ----------------------------- model dimensions -----------------------------
B = 4            # batch
T_ENC = 8        # encoder sequence_len
F_ENC = 6        # encoder input_feature_len
H = 32           # hidden_size (encoder GRU == decoder GRUCell hidden)
F_YT = 3         # y_t feature dim
F_Y = 5          # y / p feature dim
F_DEC = F_YT + F_Y          # decoder input_feature_len
OUT_SIZE = 16    # output_size
BINS = 8         # bins_len
T_OUT = 6        # output_sequence_len
TEMPHR_UNITS = (64, 96)     # decoder_temphr_n_layers = 2  (trial-suggested 50..250)
CLASS_UNITS = (64, 96)      # decoder_class_n_layers  = 2


# --------------------------- in-kernel GRU helper ----------------------------
def _gru_hidden_step(gi, h, wh, bh):
    """One GRU/GRUCell update given the (pre-computed) input projection gi.

    gi: (N, 3H) = x @ Wi + bi   (gate order r, z, n — PyTorch convention)
    h:  (N, H)  previous hidden
    wh: (H, 3H), bh: (1, 3H)
    """
    gh = jnp.dot(h, wh, preferred_element_type=jnp.float32) + bh
    r = jax.nn.sigmoid(gi[:, :H] + gh[:, :H])
    z = jax.nn.sigmoid(gi[:, H:2 * H] + gh[:, H:2 * H])
    n = jnp.tanh(gi[:, 2 * H:] + r * gh[:, 2 * H:])
    return (1.0 - z) * n + z * h


# ------------------------------- fused kernel --------------------------------
def fused_kernel(x2d_ref, dec2d_ref,
                 wi0_ref, wh0_ref, bi0_ref, bh0_ref,
                 wi1_ref, wh1_ref, bi1_ref, bh1_ref,
                 dwi_ref, dwh_ref, dbi_ref, dbh_ref,
                 hw1_ref, hb1_ref, hw2_ref, hb2_ref, hw3_ref, hb3_ref,
                 out_ref,
                 h_all_ref):
    f32 = jnp.float32

    # ---- hoisted input projections: one matmul for the whole sequence each ----
    # x2d:  (T_ENC*B, F_ENC) time-major;   dec2d: (T_OUT*B, F_DEC) time-major.
    gi0_all = jnp.dot(x2d_ref[...], wi0_ref[...],
                      preferred_element_type=f32) + bi0_ref[...]        # (T_ENC*B, 3H)
    gid_all = jnp.dot(dec2d_ref[...], dwi_ref[...],
                      preferred_element_type=f32) + dbi_ref[...]        # (T_OUT*B, 3H)

    wh0 = wh0_ref[...]; bh0 = bh0_ref[...]
    wi1 = wi1_ref[...]; bi1 = bi1_ref[...]
    wh1 = wh1_ref[...]; bh1 = bh1_ref[...]
    dwh = dwh_ref[...]; dbh = dbh_ref[...]

    # ---- encoder: 2-layer GRU, fully unrolled (static trip count) ----
    h0 = jnp.zeros((B, H), f32)
    h1 = jnp.zeros((B, H), f32)
    for t in range(T_ENC):
        gi0 = gi0_all[t * B:(t + 1) * B, :]                             # (B, 3H)
        h0 = _gru_hidden_step(gi0, h0, wh0, bh0)
        gi1 = jnp.dot(h0, wi1, preferred_element_type=f32) + bi1        # layer-1 input proj
        h1 = _gru_hidden_step(gi1, h1, wh1, bh1)

    # ---- decoder GRUCell, fully unrolled; stash hidden states for batched heads ----
    h = h1                                                              # encoder final hidden
    for i in range(T_OUT):
        gid = gid_all[i * B:(i + 1) * B, :]                             # (B, 3H)
        h = _gru_hidden_step(gid, h, dwh, dbh)
        # TODO(synk): decoder dropout(hidden) is identity in eval mode.
        h_all_ref[pl.ds(i * B, B), :] = h                               # time-major rows

    # ---- time-batched, two-head-fused MLP (3 matmuls total) ----
    hall = h_all_ref[...]                                               # (T_OUT*B, H)
    a = jnp.maximum(jnp.dot(hall, hw1_ref[...],
                            preferred_element_type=f32) + hb1_ref[...], 0.0)   # (.,128)
    a = jnp.maximum(jnp.dot(a, hw2_ref[...],
                            preferred_element_type=f32) + hb2_ref[...], 0.0)   # (.,192)
    # columns 0..7 = temphr head, 8..15 = class head  (== torch.cat order)
    out_ref[...] = jnp.dot(a, hw3_ref[...],
                           preferred_element_type=f32) + hb3_ref[...]          # (.,16)


def run_fused(x2d, dec2d, p):
    """x2d: (T_ENC*B, F_ENC), dec2d: (T_OUT*B, F_DEC) -> (T_OUT*B, OUT_SIZE)."""
    ins = [x2d, dec2d,
           p["enc_wi0"], p["enc_wh0"], p["enc_bi0"], p["enc_bh0"],
           p["enc_wi1"], p["enc_wh1"], p["enc_bi1"], p["enc_bh1"],
           p["dec_wi"], p["dec_wh"], p["dec_bi"], p["dec_bh"],
           p["h_w1"], p["h_b1"], p["h_w2"], p["h_b2"], p["h_w3"], p["h_b3"]]
    return pl.pallas_call(
        fused_kernel,
        out_shape=jax.ShapeDtypeStruct((T_OUT * B, OUT_SIZE), jnp.float32),
        grid_spec=pltpu.PrefetchScalarGridSpec(
            num_scalar_prefetch=0,
            grid=(1,),
            in_specs=[pl.BlockSpec(a.shape, lambda i: (0, 0)) for a in ins],
            out_specs=pl.BlockSpec((T_OUT * B, OUT_SIZE), lambda i: (0, 0)),
            scratch_shapes=[pltpu.VMEM((T_OUT * B, H), jnp.float32)]),
        compiler_params=pltpu.CompilerParams(
            dimension_semantics=("arbitrary",)),
    )(*ins)


# ------------------------------ full forward ---------------------------------
@jax.jit
def encoder_decoder_forward(params, x_f, x, y_t, y, p):
    """Mirrors EncoderDecoderWrapper.forward (x, unused, is accepted for parity)."""
    del x
    # Tiny data-movement glue; XLA fuses each chain into one small kernel.
    # encoder input, time-major flattened: rows ordered t*B + b
    x2d = jnp.transpose(x_f, (1, 0, 2)).reshape(T_ENC * B, F_ENC)

    # decoder-input sequence exactly as the PyTorch loop builds it:
    #   step 0: cat(y_t[:,0,:], y[:,0,:]); step i>=1: cat(y_t[:,i-1,:], p[:,i-1,:])
    first = jnp.concatenate([y_t[:, 0, :], y[:, 0, :]], axis=1)                 # (B, F_DEC)
    rest = jnp.concatenate([y_t[:, :T_OUT - 1, :], p[:, :T_OUT - 1, :]], axis=2)
    dec_b = jnp.concatenate([first[:, None, :], rest], axis=1)                  # (B, T_OUT, F_DEC)
    dec2d = jnp.transpose(dec_b, (1, 0, 2)).reshape(T_OUT * B, F_DEC)           # time-major

    out_flat = run_fused(x2d, dec2d, params)                                    # (T_OUT*B, OUT)
    return jnp.transpose(out_flat.reshape(T_OUT, B, OUT_SIZE), (1, 0, 2))       # (B, T_OUT, OUT)


# ------------------------- deterministic parameter init ----------------------
def _block_diag(a, b):
    m, n = a.shape
    q, r = b.shape
    top = jnp.concatenate([a, jnp.zeros((m, r), a.dtype)], axis=1)
    bot = jnp.concatenate([jnp.zeros((q, n), b.dtype), b], axis=1)
    return jnp.concatenate([top, bot], axis=0)


def init_params(key):
    keys = iter(jax.random.split(key, 64))

    def u(shape, scale):
        return jax.random.uniform(next(keys), shape, jnp.float32, -scale, scale)

    kH = 1.0 / math.sqrt(H)
    p = {}
    # encoder GRU layer 0 / 1 (weights pre-transposed to (in, 3H); gate order r,z,n)
    p["enc_wi0"] = u((F_ENC, 3 * H), kH); p["enc_wh0"] = u((H, 3 * H), kH)
    p["enc_bi0"] = u((1, 3 * H), kH);     p["enc_bh0"] = u((1, 3 * H), kH)
    p["enc_wi1"] = u((H, 3 * H), kH);     p["enc_wh1"] = u((H, 3 * H), kH)
    p["enc_bi1"] = u((1, 3 * H), kH);     p["enc_bh1"] = u((1, 3 * H), kH)
    # decoder GRUCell
    p["dec_wi"] = u((F_DEC, 3 * H), kH);  p["dec_wh"] = u((H, 3 * H), kH)
    p["dec_bi"] = u((1, 3 * H), kH);      p["dec_bh"] = u((1, 3 * H), kH)
    # temphr head: H -> 64 -> 96 -> OUT_SIZE - BINS
    dims_t = (H,) + TEMPHR_UNITS + (OUT_SIZE - BINS,)
    for i in range(3):
        fin, fout = dims_t[i], dims_t[i + 1]
        s = 1.0 / math.sqrt(fin)
        p[f"t_w{i+1}"] = u((fin, fout), s)
        p[f"t_b{i+1}"] = u((1, fout), s)
    # class head: H -> 64 -> 96 -> BINS
    dims_c = (H,) + CLASS_UNITS + (BINS,)
    for i in range(3):
        fin, fout = dims_c[i], dims_c[i + 1]
        s = 1.0 / math.sqrt(fin)
        p[f"c_w{i+1}"] = u((fin, fout), s)
        p[f"c_b{i+1}"] = u((1, fout), s)

    # fused (temphr | class) head weights used by the Pallas kernel:
    #   layer1 concatenated along features, layers 2/3 block-diagonal -> the final
    #   matmul directly emits [temphr_out | class_out] (lane-dense intermediates).
    p["h_w1"] = jnp.concatenate([p["t_w1"], p["c_w1"]], axis=1)     # (H, 128)
    p["h_b1"] = jnp.concatenate([p["t_b1"], p["c_b1"]], axis=1)     # (1, 128)
    p["h_w2"] = _block_diag(p["t_w2"], p["c_w2"])                   # (128, 192)
    p["h_b2"] = jnp.concatenate([p["t_b2"], p["c_b2"]], axis=1)     # (1, 192)
    p["h_w3"] = _block_diag(p["t_w3"], p["c_w3"])                   # (192, 16)
    p["h_b3"] = jnp.concatenate([p["t_b3"], p["c_b3"]], axis=1)     # (1, 16)
    return p


# ----------------------------- pure-JAX reference -----------------------------
def reference_forward(p, x_f, y_t, y, pr):
    hp = jax.lax.Precision.HIGHEST

    def mm(a, b):
        return jnp.dot(a, b, precision=hp)

    def gru_step(xx, hh, wi, wh, bi, bh):
        gi = mm(xx, wi) + bi
        gh = mm(hh, wh) + bh
        r = jax.nn.sigmoid(gi[:, :H] + gh[:, :H])
        z = jax.nn.sigmoid(gi[:, H:2 * H] + gh[:, H:2 * H])
        n = jnp.tanh(gi[:, 2 * H:] + r * gh[:, 2 * H:])
        return (1.0 - z) * n + z * hh

    h0 = jnp.zeros((B, H), jnp.float32)
    h1 = jnp.zeros((B, H), jnp.float32)
    for t in range(T_ENC):
        h0 = gru_step(x_f[:, t, :], h0, p["enc_wi0"], p["enc_wh0"], p["enc_bi0"], p["enc_bh0"])
        h1 = gru_step(h0, h1, p["enc_wi1"], p["enc_wh1"], p["enc_bi1"], p["enc_bh1"])

    dec_h = h1
    dec_in = jnp.concatenate([y_t[:, 0, :], y[:, 0, :]], axis=1)
    outs = []
    for i in range(T_OUT):
        dec_h = gru_step(dec_in, dec_h, p["dec_wi"], p["dec_wh"], p["dec_bi"], p["dec_bh"])
        a = jax.nn.relu(mm(dec_h, p["t_w1"]) + p["t_b1"])
        a = jax.nn.relu(mm(a, p["t_w2"]) + p["t_b2"])
        th = mm(a, p["t_w3"]) + p["t_b3"]
        c = jax.nn.relu(mm(dec_h, p["c_w1"]) + p["c_b1"])
        c = jax.nn.relu(mm(c, p["c_w2"]) + p["c_b2"])
        cl = mm(c, p["c_w3"]) + p["c_b3"]
        outs.append(jnp.concatenate([th, cl], axis=-1))
        if i < T_OUT - 1:
            dec_in = jnp.concatenate([y_t[:, i, :], pr[:, i, :]], axis=1)
    return jnp.stack(outs, axis=1)


# ------------------------------------ main ------------------------------------
if __name__ == "__main__":
    root = jax.random.PRNGKey(0)
    k_par, k_xf, k_x, k_yt, k_y, k_p = jax.random.split(root, 6)

    params = init_params(k_par)

    x_f = jax.random.normal(k_xf, (B, T_ENC, F_ENC), jnp.float32)
    x = jax.random.normal(k_x, (B, T_ENC, F_ENC), jnp.float32)   # unused (parity arg)
    y_t = jax.random.normal(k_yt, (B, T_OUT + 1, F_YT), jnp.float32)
    y = jax.random.normal(k_y, (B, T_OUT + 1, F_Y), jnp.float32)
    p_in = jax.random.normal(k_p, (B, T_OUT + 1, F_Y), jnp.float32)

    out = encoder_decoder_forward(params, x_f, x, y_t, y, p_in)
    out = jax.block_until_ready(out)
    assert out.shape == (B, T_OUT, OUT_SIZE), out.shape

    ref = reference_forward(params, x_f, y_t, y, p_in)
    # Tolerance covers possible MXU f32 pass-count differences between the XLA
    # reference and the Mosaic kernel; with both at full f32 the error is ~1e-6.
    assert jnp.allclose(out, ref, rtol=1e-2, atol=1e-2), float(jnp.max(jnp.abs(out - ref)))

    print("KERNEL_OK")
</pallas_src>

<mosaic_0001>
module attributes {stable_mosaic.version = 11 : i64} {
  func.func @fused_kernel(%arg0: i32, %arg1: memref<32x6xf32, #tpu.memory_space<vmem>>, %arg2: memref<24x8xf32, #tpu.memory_space<vmem>>, %arg3: memref<6x96xf32, #tpu.memory_space<vmem>>, %arg4: memref<32x96xf32, #tpu.memory_space<vmem>>, %arg5: memref<1x96xf32, #tpu.memory_space<vmem>>, %arg6: memref<1x96xf32, #tpu.memory_space<vmem>>, %arg7: memref<32x96xf32, #tpu.memory_space<vmem>>, %arg8: memref<32x96xf32, #tpu.memory_space<vmem>>, %arg9: memref<1x96xf32, #tpu.memory_space<vmem>>, %arg10: memref<1x96xf32, #tpu.memory_space<vmem>>, %arg11: memref<8x96xf32, #tpu.memory_space<vmem>>, %arg12: memref<32x96xf32, #tpu.memory_space<vmem>>, %arg13: memref<1x96xf32, #tpu.memory_space<vmem>>, %arg14: memref<1x96xf32, #tpu.memory_space<vmem>>, %arg15: memref<32x128xf32, #tpu.memory_space<vmem>>, %arg16: memref<1x128xf32, #tpu.memory_space<vmem>>, %arg17: memref<128x192xf32, #tpu.memory_space<vmem>>, %arg18: memref<1x192xf32, #tpu.memory_space<vmem>>, %arg19: memref<192x16xf32, #tpu.memory_space<vmem>>, %arg20: memref<1x16xf32, #tpu.memory_space<vmem>>, %arg21: memref<24x16xf32, #tpu.memory_space<vmem>>, %arg22: memref<24x32xf32, #tpu.memory_space<vmem>>) attributes {dimension_semantics = [#tpu.dimension_semantics<arbitrary>], iteration_bounds = array<i64: 1>, scalar_prefetch = 0 : i64, scratch_operands = 1 : i64, tpu.core_type = #tpu.core_type<tc>, window_params = [{pipeline_mode = #tpu.pipeline_mode<synchronous>, transform_indices = @transform_0, window_bounds = array<i64: 32, 6>}, {pipeline_mode = #tpu.pipeline_mode<synchronous>, transform_indices = @transform_1, window_bounds = array<i64: 24, 8>}, {pipeline_mode = #tpu.pipeline_mode<synchronous>, transform_indices = @transform_2, window_bounds = array<i64: 6, 96>}, {pipeline_mode = #tpu.pipeline_mode<synchronous>, transform_indices = @transform_3, window_bounds = array<i64: 32, 96>}, {pipeline_mode = #tpu.pipeline_mode<synchronous>, transform_indices = @transform_4, window_bounds = array<i64: 1, 96>}, {pipeline_mode = #tpu.pipeline_mode<synchronous>, transform_indices = @transform_5, window_bounds = array<i64: 1, 96>}, {pipeline_mode = #tpu.pipeline_mode<synchronous>, transform_indices = @transform_6, window_bounds = array<i64: 32, 96>}, {pipeline_mode = #tpu.pipeline_mode<synchronous>, transform_indices = @transform_7, window_bounds = array<i64: 32, 96>}, {pipeline_mode = #tpu.pipeline_mode<synchronous>, transform_indices = @transform_8, window_bounds = array<i64: 1, 96>}, {pipeline_mode = #tpu.pipeline_mode<synchronous>, transform_indices = @transform_9, window_bounds = array<i64: 1, 96>}, {pipeline_mode = #tpu.pipeline_mode<synchronous>, transform_indices = @transform_10, window_bounds = array<i64: 8, 96>}, {pipeline_mode = #tpu.pipeline_mode<synchronous>, transform_indices = @transform_11, window_bounds = array<i64: 32, 96>}, {pipeline_mode = #tpu.pipeline_mode<synchronous>, transform_indices = @transform_12, window_bounds = array<i64: 1, 96>}, {pipeline_mode = #tpu.pipeline_mode<synchronous>, transform_indices = @transform_13, window_bounds = array<i64: 1, 96>}, {pipeline_mode = #tpu.pipeline_mode<synchronous>, transform_indices = @transform_14, window_bounds = array<i64: 32, 128>}, {pipeline_mode = #tpu.pipeline_mode<synchronous>, transform_indices = @transform_15, window_bounds = array<i64: 1, 128>}, {pipeline_mode = #tpu.pipeline_mode<synchronous>, transform_indices = @transform_16, window_bounds = array<i64: 128, 192>}, {pipeline_mode = #tpu.pipeline_mode<synchronous>, transform_indices = @transform_17, window_bounds = array<i64: 1, 192>}, {pipeline_mode = #tpu.pipeline_mode<synchronous>, transform_indices = @transform_18, window_bounds = array<i64: 192, 16>}, {pipeline_mode = #tpu.pipeline_mode<synchronous>, transform_indices = @transform_19, window_bounds = array<i64: 1, 16>}, {pipeline_mode = #tpu.pipeline_mode<synchronous>, transform_indices = @transform_20, window_bounds = array<i64: 24, 16>}]} {
    %c0 = arith.constant 0 : index
    %c0_0 = arith.constant 0 : index
    %0 = vector.load %arg1[%c0, %c0_0] : memref<32x6xf32, #tpu.memory_space<vmem>>, vector<32x6xf32>
    %c0_1 = arith.constant 0 : index
    %c0_2 = arith.constant 0 : index
    %1 = vector.load %arg3[%c0_1, %c0_2] : memref<6x96xf32, #tpu.memory_space<vmem>>, vector<6x96xf32>
    %cst = arith.constant dense<0.000000e+00> : vector<32x96xf32>
    %2 = tpu.matmul %0, %1, %cst {dimension_numbers = #tpu.dot_dimension_numbers<[1], [0], [0], [1], [0, 0, 1, 1], [], []>} : vector<32x6xf32>, vector<6x96xf32>, vector<32x96xf32> -> vector<32x96xf32>
    %c0_3 = arith.constant 0 : index
    %c0_4 = arith.constant 0 : index
    %3 = vector.load %arg5[%c0_3, %c0_4] : memref<1x96xf32, #tpu.memory_space<vmem>>, vector<1x96xf32>
    %4 = vector.broadcast %3 : vector<1x96xf32> to vector<32x96xf32>
    %5 = arith.addf %2, %4 : vector<32x96xf32>
    %c0_5 = arith.constant 0 : index
    %c0_6 = arith.constant 0 : index
    %6 = vector.load %arg2[%c0_5, %c0_6] : memref<24x8xf32, #tpu.memory_space<vmem>>, vector<24x8xf32>
    %c0_7 = arith.constant 0 : index
    %c0_8 = arith.constant 0 : index
    %7 = vector.load %arg11[%c0_7, %c0_8] : memref<8x96xf32, #tpu.memory_space<vmem>>, vector<8x96xf32>
    %cst_9 = arith.constant dense<0.000000e+00> : vector<24x96xf32>
    %8 = tpu.matmul %6, %7, %cst_9 {dimension_numbers = #tpu.dot_dimension_numbers<[1], [0], [0], [1], [0, 0, 1, 1], [], []>} : vector<24x8xf32>, vector<8x96xf32>, vector<24x96xf32> -> vector<24x96xf32>
    %c0_10 = arith.constant 0 : index
    %c0_11 = arith.constant 0 : index
    %9 = vector.load %arg13[%c0_10, %c0_11] : memref<1x96xf32, #tpu.memory_space<vmem>>, vector<1x96xf32>
    %10 = vector.broadcast %9 : vector<1x96xf32> to vector<24x96xf32>
    %11 = arith.addf %8, %10 : vector<24x96xf32>
    %c0_12 = arith.constant 0 : index
    %c0_13 = arith.constant 0 : index
    %12 = vector.load %arg4[%c0_12, %c0_13] : memref<32x96xf32, #tpu.memory_space<vmem>>, vector<32x96xf32>
    %c0_14 = arith.constant 0 : index
    %c0_15 = arith.constant 0 : index
    %13 = vector.load %arg6[%c0_14, %c0_15] : memref<1x96xf32, #tpu.memory_space<vmem>>, vector<1x96xf32>
    %c0_16 = arith.constant 0 : index
    %c0_17 = arith.constant 0 : index
    %14 = vector.load %arg7[%c0_16, %c0_17] : memref<32x96xf32, #tpu.memory_space<vmem>>, vector<32x96xf32>
    %c0_18 = arith.constant 0 : index
    %c0_19 = arith.constant 0 : index
    %15 = vector.load %arg9[%c0_18, %c0_19] : memref<1x96xf32, #tpu.memory_space<vmem>>, vector<1x96xf32>
    %c0_20 = arith.constant 0 : index
    %c0_21 = arith.constant 0 : index
    %16 = vector.load %arg8[%c0_20, %c0_21] : memref<32x96xf32, #tpu.memory_space<vmem>>, vector<32x96xf32>
    %c0_22 = arith.constant 0 : index
    %c0_23 = arith.constant 0 : index
    %17 = vector.load %arg10[%c0_22, %c0_23] : memref<1x96xf32, #tpu.memory_space<vmem>>, vector<1x96xf32>
    %c0_24 = arith.constant 0 : index
    %c0_25 = arith.constant 0 : index
    %18 = vector.load %arg12[%c0_24, %c0_25] : memref<32x96xf32, #tpu.memory_space<vmem>>, vector<32x96xf32>
    %c0_26 = arith.constant 0 : index
    %c0_27 = arith.constant 0 : index
    %19 = vector.load %arg14[%c0_26, %c0_27] : memref<1x96xf32, #tpu.memory_space<vmem>>, vector<1x96xf32>
    %cst_28 = arith.constant 0.000000e+00 : f32
    %20 = vector.broadcast %cst_28 : f32 to vector<4x32xf32>
    %cst_29 = arith.constant 0.000000e+00 : f32
    %21 = vector.broadcast %cst_29 : f32 to vector<4x32xf32>
    %22 = vector.extract_strided_slice %5 {offsets = [0, 0], sizes = [4, 96], strides = [1, 1]} : vector<32x96xf32> to vector<4x96xf32>
    %cst_30 = arith.constant dense<0.000000e+00> : vector<4x96xf32>
    %23 = tpu.matmul %20, %12, %cst_30 {dimension_numbers = #tpu.dot_dimension_numbers<[1], [0], [0], [1], [0, 0, 1, 1], [], []>} : vector<4x32xf32>, vector<32x96xf32>, vector<4x96xf32> -> vector<4x96xf32>
    %24 = vector.broadcast %13 : vector<1x96xf32> to vector<4x96xf32>
    %25 = arith.addf %23, %24 : vector<4x96xf32>
    %26 = vector.extract_strided_slice %22 {offsets = [0, 0], sizes = [4, 32], strides = [1, 1]} : vector<4x96xf32> to vector<4x32xf32>
    %27 = vector.extract_strided_slice %25 {offsets = [0, 0], sizes = [4, 32], strides = [1, 1]} : vector<4x96xf32> to vector<4x32xf32>
    %28 = arith.addf %26, %27 : vector<4x32xf32>
    %29 = arith.negf %28 : vector<4x32xf32>
    %30 = math.exp %29 : vector<4x32xf32>
    %cst_31 = arith.constant 1.000000e+00 : f32
    %31 = vector.broadcast %cst_31 : f32 to vector<4x32xf32>
    %32 = arith.addf %31, %30 : vector<4x32xf32>
    %33 = arith.divf %31, %32 : vector<4x32xf32>
    %34 = vector.extract_strided_slice %22 {offsets = [0, 32], sizes = [4, 32], strides = [1, 1]} : vector<4x96xf32> to vector<4x32xf32>
    %35 = vector.extract_strided_slice %25 {offsets = [0, 32], sizes = [4, 32], strides = [1, 1]} : vector<4x96xf32> to vector<4x32xf32>
    %36 = arith.addf %34, %35 : vector<4x32xf32>
    %37 = arith.negf %36 : vector<4x32xf32>
    %38 = math.exp %37 : vector<4x32xf32>
    %cst_32 = arith.constant 1.000000e+00 : f32
    %39 = vector.broadcast %cst_32 : f32 to vector<4x32xf32>
    %40 = arith.addf %39, %38 : vector<4x32xf32>
    %41 = arith.divf %39, %40 : vector<4x32xf32>
    %42 = vector.extract_strided_slice %22 {offsets = [0, 64], sizes = [4, 32], strides = [1, 1]} : vector<4x96xf32> to vector<4x32xf32>
    %43 = vector.extract_strided_slice %25 {offsets = [0, 64], sizes = [4, 32], strides = [1, 1]} : vector<4x96xf32> to vector<4x32xf32>
    %44 = arith.mulf %33, %43 : vector<4x32xf32>
    %45 = arith.addf %42, %44 : vector<4x32xf32>
    %46 = math.tanh %45 : vector<4x32xf32>
    %cst_33 = arith.constant 1.000000e+00 : f32
    %47 = vector.broadcast %cst_33 : f32 to vector<4x32xf32>
    %48 = arith.subf %47, %41 : vector<4x32xf32>
    %49 = arith.mulf %48, %46 : vector<4x32xf32>
    %50 = arith.mulf %41, %20 : vector<4x32xf32>
    %51 = arith.addf %49, %50 : vector<4x32xf32>
    %cst_34 = arith.constant dense<0.000000e+00> : vector<4x96xf32>
    %52 = tpu.matmul %51, %14, %cst_34 {dimension_numbers = #tpu.dot_dimension_numbers<[1], [0], [0], [1], [0, 0, 1, 1], [], []>} : vector<4x32xf32>, vector<32x96xf32>, vector<4x96xf32> -> vector<4x96xf32>
    %53 = vector.broadcast %15 : vector<1x96xf32> to vector<4x96xf32>
    %54 = arith.addf %52, %53 : vector<4x96xf32>
    %cst_35 = arith.constant dense<0.000000e+00> : vector<4x96xf32>
    %55 = tpu.matmul %21, %16, %cst_35 {dimension_numbers = #tpu.dot_dimension_numbers<[1], [0], [0], [1], [0, 0, 1, 1], [], []>} : vector<4x32xf32>, vector<32x96xf32>, vector<4x96xf32> -> vector<4x96xf32>
    %56 = vector.broadcast %17 : vector<1x96xf32> to vector<4x96xf32>
    %57 = arith.addf %55, %56 : vector<4x96xf32>
    %58 = vector.extract_strided_slice %54 {offsets = [0, 0], sizes = [4, 32], strides = [1, 1]} : vector<4x96xf32> to vector<4x32xf32>
    %59 = vector.extract_strided_slice %57 {offsets = [0, 0], sizes = [4, 32], strides = [1, 1]} : vector<4x96xf32> to vector<4x32xf32>
    %60 = arith.addf %58, %59 : vector<4x32xf32>
    %61 = arith.negf %60 : vector<4x32xf32>
    %62 = math.exp %61 : vector<4x32xf32>
    %cst_36 = arith.constant 1.000000e+00 : f32
    %63 = vector.broadcast %cst_36 : f32 to vector<4x32xf32>
    %64 = arith.addf %63, %62 : vector<4x32xf32>
    %65 = arith.divf %63, %64 : vector<4x32xf32>
    %66 = vector.extract_strided_slice %54 {offsets = [0, 32], sizes = [4, 32], strides = [1, 1]} : vector<4x96xf32> to vector<4x32xf32>
    %67 = vector.extract_strided_slice %57 {offsets = [0, 32], sizes = [4, 32], strides = [1, 1]} : vector<4x96xf32> to vector<4x32xf32>
    %68 = arith.addf %66, %67 : vector<4x32xf32>
    %69 = arith.negf %68 : vector<4x32xf32>
    %70 = math.exp %69 : vector<4x32xf32>
    %cst_37 = arith.constant 1.000000e+00 : f32
    %71 = vector.broadcast %cst_37 : f32 to vector<4x32xf32>
    %72 = arith.addf %71, %70 : vector<4x32xf32>
    %73 = arith.divf %71, %72 : vector<4x32xf32>
    %74 = vector.extract_strided_slice %54 {offsets = [0, 64], sizes = [4, 32], strides = [1, 1]} : vector<4x96xf32> to vector<4x32xf32>
    %75 = vector.extract_strided_slice %57 {offsets = [0, 64], sizes = [4, 32], strides = [1, 1]} : vector<4x96xf32> to vector<4x32xf32>
    %76 = arith.mulf %65, %75 : vector<4x32xf32>
    %77 = arith.addf %74, %76 : vector<4x32xf32>
    %78 = math.tanh %77 : vector<4x32xf32>
    %cst_38 = arith.constant 1.000000e+00 : f32
    %79 = vector.broadcast %cst_38 : f32 to vector<4x32xf32>
    %80 = arith.subf %79, %73 : vector<4x32xf32>
    %81 = arith.mulf %80, %78 : vector<4x32xf32>
    %82 = arith.mulf %73, %21 : vector<4x32xf32>
    %83 = arith.addf %81, %82 : vector<4x32xf32>
    %84 = vector.extract_strided_slice %5 {offsets = [4, 0], sizes = [4, 96], strides = [1, 1]} : vector<32x96xf32> to vector<4x96xf32>
    %cst_39 = arith.constant dense<0.000000e+00> : vector<4x96xf32>
    %85 = tpu.matmul %51, %12, %cst_39 {dimension_numbers = #tpu.dot_dimension_numbers<[1], [0], [0], [1], [0, 0, 1, 1], [], []>} : vector<4x32xf32>, vector<32x96xf32>, vector<4x96xf32> -> vector<4x96xf32>
    %86 = vector.broadcast %13 : vector<1x96xf32> to vector<4x96xf32>
    %87 = arith.addf %85, %86 : vector<4x96xf32>
    %88 = vector.extract_strided_slice %84 {offsets = [0, 0], sizes = [4, 32], strides = [1, 1]} : vector<4x96xf32> to vector<4x32xf32>
    %89 = vector.extract_strided_slice %87 {offsets = [0, 0], sizes = [4, 32], strides = [1, 1]} : vector<4x96xf32> to vector<4x32xf32>
    %90 = arith.addf %88, %89 : vector<4x32xf32>
    %91 = arith.negf %90 : vector<4x32xf32>
    %92 = math.exp %91 : vector<4x32xf32>
    %cst_40 = arith.constant 1.000000e+00 : f32
    %93 = vector.broadcast %cst_40 : f32 to vector<4x32xf32>
    %94 = arith.addf %93, %92 : vector<4x32xf32>
    %95 = arith.divf %93, %94 : vector<4x32xf32>
    %96 = vector.extract_strided_slice %84 {offsets = [0, 32], sizes = [4, 32], strides = [1, 1]} : vector<4x96xf32> to vector<4x32xf32>
    %97 = vector.extract_strided_slice %87 {offsets = [0, 32], sizes = [4, 32], strides = [1, 1]} : vector<4x96xf32> to vector<4x32xf32>
    %98 = arith.addf %96, %97 : vector<4x32xf32>
    %99 = arith.negf %98 : vector<4x32xf32>
    %100 = math.exp %99 : vector<4x32xf32>
    %cst_41 = arith.constant 1.000000e+00 : f32
    %101 = vector.broadcast %cst_41 : f32 to vector<4x32xf32>
    %102 = arith.addf %101, %100 : vector<4x32xf32>
    %103 = arith.divf %101, %102 : vector<4x32xf32>
    %104 = vector.extract_strided_slice %84 {offsets = [0, 64], sizes = [4, 32], strides = [1, 1]} : vector<4x96xf32> to vector<4x32xf32>
    %105 = vector.extract_strided_slice %87 {offsets = [0, 64], sizes = [4, 32], strides = [1, 1]} : vector<4x96xf32> to vector<4x32xf32>
    %106 = arith.mulf %95, %105 : vector<4x32xf32>
    %107 = arith.addf %104, %106 : vector<4x32xf32>
    %108 = math.tanh %107 : vector<4x32xf32>
    %cst_42 = arith.constant 1.000000e+00 : f32
    %109 = vector.broadcast %cst_42 : f32 to vector<4x32xf32>
    %110 = arith.subf %109, %103 : vector<4x32xf32>
    %111 = arith.mulf %110, %108 : vector<4x32xf32>
    %112 = arith.mulf %103, %51 : vector<4x32xf32>
    %113 = arith.addf %111, %112 : vector<4x32xf32>
    %cst_43 = arith.constant dense<0.000000e+00> : vector<4x96xf32>
    %114 = tpu.matmul %113, %14, %cst_43 {dimension_numbers = #tpu.dot_dimension_numbers<[1], [0], [0], [1], [0, 0, 1, 1], [], []>} : vector<4x32xf32>, vector<32x96xf32>, vector<4x96xf32> -> vector<4x96xf32>
    %115 = vector.broadcast %15 : vector<1x96xf32> to vector<4x96xf32>
    %116 = arith.addf %114, %115 : vector<4x96xf32>
    %cst_44 = arith.constant dense<0.000000e+00> : vector<4x96xf32>
    %117 = tpu.matmul %83, %16, %cst_44 {dimension_numbers = #tpu.dot_dimension_numbers<[1], [0], [0], [1], [0, 0, 1, 1], [], []>} : vector<4x32xf32>, vector<32x96xf32>, vector<4x96xf32> -> vector<4x96xf32>
    %118 = vector.broadcast %17 : vector<1x96xf32> to vector<4x96xf32>
    %119 = arith.addf %117, %118 : vector<4x96xf32>
    %120 = vector.extract_strided_slice %116 {offsets = [0, 0], sizes = [4, 32], strides = [1, 1]} : vector<4x96xf32> to vector<4x32xf32>
    %121 = vector.extract_strided_slice %119 {offsets = [0, 0], sizes = [4, 32], strides = [1, 1]} : vector<4x96xf32> to vector<4x32xf32>
    %122 = arith.addf %120, %121 : vector<4x32xf32>
    %123 = arith.negf %122 : vector<4x32xf32>
    %124 = math.exp %123 : vector<4x32xf32>
    %cst_45 = arith.constant 1.000000e+00 : f32
    %125 = vector.broadcast %cst_45 : f32 to vector<4x32xf32>
    %126 = arith.addf %125, %124 : vector<4x32xf32>
    %127 = arith.divf %125, %126 : vector<4x32xf32>
    %128 = vector.extract_strided_slice %116 {offsets = [0, 32], sizes = [4, 32], strides = [1, 1]} : vector<4x96xf32> to vector<4x32xf32>
    %129 = vector.extract_strided_slice %119 {offsets = [0, 32], sizes = [4, 32], strides = [1, 1]} : vector<4x96xf32> to vector<4x32xf32>
    %130 = arith.addf %128, %129 : vector<4x32xf32>
    %131 = arith.negf %130 : vector<4x32xf32>
    %132 = math.exp %131 : vector<4x32xf32>
    %cst_46 = arith.constant 1.000000e+00 : f32
    %133 = vector.broadcast %cst_46 : f32 to vector<4x32xf32>
    %134 = arith.addf %133, %132 : vector<4x32xf32>
    %135 = arith.divf %133, %134 : vector<4x32xf32>
    %136 = vector.extract_strided_slice %116 {offsets = [0, 64], sizes = [4, 32], strides = [1, 1]} : vector<4x96xf32> to vector<4x32xf32>
    %137 = vector.extract_strided_slice %119 {offsets = [0, 64], sizes = [4, 32], strides = [1, 1]} : vector<4x96xf32> to vector<4x32xf32>
    %138 = arith.mulf %127, %137 : vector<4x32xf32>
    %139 = arith.addf %136, %138 : vector<4x32xf32>
    %140 = math.tanh %139 : vector<4x32xf32>
    %cst_47 = arith.constant 1.000000e+00 : f32
    %141 = vector.broadcast %cst_47 : f32 to vector<4x32xf32>
    %142 = arith.subf %141, %135 : vector<4x32xf32>
    %143 = arith.mulf %142, %140 : vector<4x32xf32>
    %144 = arith.mulf %135, %83 : vector<4x32xf32>
    %145 = arith.addf %143, %144 : vector<4x32xf32>
    %146 = vector.extract_strided_slice %5 {offsets = [8, 0], sizes = [4, 96], strides = [1, 1]} : vector<32x96xf32> to vector<4x96xf32>
    %cst_48 = arith.constant dense<0.000000e+00> : vector<4x96xf32>
    %147 = tpu.matmul %113, %12, %cst_48 {dimension_numbers = #tpu.dot_dimension_numbers<[1], [0], [0], [1], [0, 0, 1, 1], [], []>} : vector<4x32xf32>, vector<32x96xf32>, vector<4x96xf32> -> vector<4x96xf32>
    %148 = vector.broadcast %13 : vector<1x96xf32> to vector<4x96xf32>
    %149 = arith.addf %147, %148 : vector<4x96xf32>
    %150 = vector.extract_strided_slice %146 {offsets = [0, 0], sizes = [4, 32], strides = [1, 1]} : vector<4x96xf32> to vector<4x32xf32>
    %151 = vector.extract_strided_slice %149 {offsets = [0, 0], sizes = [4, 32], strides = [1, 1]} : vector<4x96xf32> to vector<4x32xf32>
    %152 = arith.addf %150, %151 : vector<4x32xf32>
    %153 = arith.negf %152 : vector<4x32xf32>
    %154 = math.exp %153 : vector<4x32xf32>
    %cst_49 = arith.constant 1.000000e+00 : f32
    %155 = vector.broadcast %cst_49 : f32 to vector<4x32xf32>
    %156 = arith.addf %155, %154 : vector<4x32xf32>
    %157 = arith.divf %155, %156 : vector<4x32xf32>
    %158 = vector.extract_strided_slice %146 {offsets = [0, 32], sizes = [4, 32], strides = [1, 1]} : vector<4x96xf32> to vector<4x32xf32>
    %159 = vector.extract_strided_slice %149 {offsets = [0, 32], sizes = [4, 32], strides = [1, 1]} : vector<4x96xf32> to vector<4x32xf32>
    %160 = arith.addf %158, %159 : vector<4x32xf32>
    %161 = arith.negf %160 : vector<4x32xf32>
    %162 = math.exp %161 : vector<4x32xf32>
    %cst_50 = arith.constant 1.000000e+00 : f32
    %163 = vector.broadcast %cst_50 : f32 to vector<4x32xf32>
    %164 = arith.addf %163, %162 : vector<4x32xf32>
    %165 = arith.divf %163, %164 : vector<4x32xf32>
    %166 = vector.extract_strided_slice %146 {offsets = [0, 64], sizes = [4, 32], strides = [1, 1]} : vector<4x96xf32> to vector<4x32xf32>
    %167 = vector.extract_strided_slice %149 {offsets = [0, 64], sizes = [4, 32], strides = [1, 1]} : vector<4x96xf32> to vector<4x32xf32>
    %168 = arith.mulf %157, %167 : vector<4x32xf32>
    %169 = arith.addf %166, %168 : vector<4x32xf32>
    %170 = math.tanh %169 : vector<4x32xf32>
    %cst_51 = arith.constant 1.000000e+00 : f32
    %171 = vector.broadcast %cst_51 : f32 to vector<4x32xf32>
    %172 = arith.subf %171, %165 : vector<4x32xf32>
    %173 = arith.mulf %172, %170 : vector<4x32xf32>
    %174 = arith.mulf %165, %113 : vector<4x32xf32>
    %175 = arith.addf %173, %174 : vector<4x32xf32>
    %cst_52 = arith.constant dense<0.000000e+00> : vector<4x96xf32>
    %176 = tpu.matmul %175, %14, %cst_52 {dimension_numbers = #tpu.dot_dimension_numbers<[1], [0], [0], [1], [0, 0, 1, 1], [], []>} : vector<4x32xf32>, vector<32x96xf32>, vector<4x96xf32> -> vector<4x96xf32>
    %177 = vector.broadcast %15 : vector<1x96xf32> to vector<4x96xf32>
    %178 = arith.addf %176, %177 : vector<4x96xf32>
    %cst_53 = arith.constant dense<0.000000e+00> : vector<4x96xf32>
    %179 = tpu.matmul %145, %16, %cst_53 {dimension_numbers = #tpu.dot_dimension_numbers<[1], [0], [0], [1], [0, 0, 1, 1], [], []>} : vector<4x32xf32>, vector<32x96xf32>, vector<4x96xf32> -> vector<4x96xf32>
    %180 = vector.broadcast %17 : vector<1x96xf32> to vector<4x96xf32>
    %181 = arith.addf %179, %180 : vector<4x96xf32>
    %182 = vector.extract_strided_slice %178 {offsets = [0, 0], sizes = [4, 32], strides = [1, 1]} : vector<4x96xf32> to vector<4x32xf32>
    %183 = vector.extract_strided_slice %181 {offsets = [0, 0], sizes = [4, 32], strides = [1, 1]} : vector<4x96xf32> to vector<4x32xf32>
    %184 = arith.addf %182, %183 : vector<4x32xf32>
    %185 = arith.negf %184 : vector<4x32xf32>
    %186 = math.exp %185 : vector<4x32xf32>
    %cst_54 = arith.constant 1.000000e+00 : f32
    %187 = vector.broadcast %cst_54 : f32 to vector<4x32xf32>
    %188 = arith.addf %187, %186 : vector<4x32xf32>
    %189 = arith.divf %187, %188 : vector<4x32xf32>
    %190 = vector.extract_strided_slice %178 {offsets = [0, 32], sizes = [4, 32], strides = [1, 1]} : vector<4x96xf32> to vector<4x32xf32>
    %191 = vector.extract_strided_slice %181 {offsets = [0, 32], sizes = [4, 32], strides = [1, 1]} : vector<4x96xf32> to vector<4x32xf32>
    %192 = arith.addf %190, %191 : vector<4x32xf32>
    %193 = arith.negf %192 : vector<4x32xf32>
    %194 = math.exp %193 : vector<4x32xf32>
    %cst_55 = arith.constant 1.000000e+00 : f32
    %195 = vector.broadcast %cst_55 : f32 to vector<4x32xf32>
    %196 = arith.addf %195, %194 : vector<4x32xf32>
    %197 = arith.divf %195, %196 : vector<4x32xf32>
    %198 = vector.extract_strided_slice %178 {offsets = [0, 64], sizes = [4, 32], strides = [1, 1]} : vector<4x96xf32> to vector<4x32xf32>
    %199 = vector.extract_strided_slice %181 {offsets = [0, 64], sizes = [4, 32], strides = [1, 1]} : vector<4x96xf32> to vector<4x32xf32>
    %200 = arith.mulf %189, %199 : vector<4x32xf32>
    %201 = arith.addf %198, %200 : vector<4x32xf32>
    %202 = math.tanh %201 : vector<4x32xf32>
    %cst_56 = arith.constant 1.000000e+00 : f32
    %203 = vector.broadcast %cst_56 : f32 to vector<4x32xf32>
    %204 = arith.subf %203, %197 : vector<4x32xf32>
    %205 = arith.mulf %204, %202 : vector<4x32xf32>
    %206 = arith.mulf %197, %145 : vector<4x32xf32>
    %207 = arith.addf %205, %206 : vector<4x32xf32>
    %208 = vector.extract_strided_slice %5 {offsets = [12, 0], sizes = [4, 96], strides = [1, 1]} : vector<32x96xf32> to vector<4x96xf32>
    %cst_57 = arith.constant dense<0.000000e+00> : vector<4x96xf32>
    %209 = tpu.matmul %175, %12, %cst_57 {dimension_numbers = #tpu.dot_dimension_numbers<[1], [0], [0], [1], [0, 0, 1, 1], [], []>} : vector<4x32xf32>, vector<32x96xf32>, vector<4x96xf32> -> vector<4x96xf32>
    %210 = vector.broadcast %13 : vector<1x96xf32> to vector<4x96xf32>
    %211 = arith.addf %209, %210 : vector<4x96xf32>
    %212 = vector.extract_strided_slice %208 {offsets = [0, 0], sizes = [4, 32], strides = [1, 1]} : vector<4x96xf32> to vector<4x32xf32>
    %213 = vector.extract_strided_slice %211 {offsets = [0, 0], sizes = [4, 32], strides = [1, 1]} : vector<4x96xf32> to vector<4x32xf32>
    %214 = arith.addf %212, %213 : vector<4x32xf32>
    %215 = arith.negf %214 : vector<4x32xf32>
    %216 = math.exp %215 : vector<4x32xf32>
    %cst_58 = arith.constant 1.000000e+00 : f32
    %217 = vector.broadcast %cst_58 : f32 to vector<4x32xf32>
    %218 = arith.addf %217, %216 : vector<4x32xf32>
    %219 = arith.divf %217, %218 : vector<4x32xf32>
    %220 = vector.extract_strided_slice %208 {offsets = [0, 32], sizes = [4, 32], strides = [1, 1]} : vector<4x96xf32> to vector<4x32xf32>
    %221 = vector.extract_strided_slice %211 {offsets = [0, 32], sizes = [4, 32], strides = [1, 1]} : vector<4x96xf32> to vector<4x32xf32>
    %222 = arith.addf %220, %221 : vector<4x32xf32>
    %223 = arith.negf %222 : vector<4x32xf32>
    %224 = math.exp %223 : vector<4x32xf32>
    %cst_59 = arith.constant 1.000000e+00 : f32
    %225 = vector.broadcast %cst_59 : f32 to vector<4x32xf32>
    %226 = arith.addf %225, %224 : vector<4x32xf32>
    %227 = arith.divf %225, %226 : vector<4x32xf32>
    %228 = vector.extract_strided_slice %208 {offsets = [0, 64], sizes = [4, 32], strides = [1, 1]} : vector<4x96xf32> to vector<4x32xf32>
    %229 = vector.extract_strided_slice %211 {offsets = [0, 64], sizes = [4, 32], strides = [1, 1]} : vector<4x96xf32> to vector<4x32xf32>
    %230 = arith.mulf %219, %229 : vector<4x32xf32>
    %231 = arith.addf %228, %230 : vector<4x32xf32>
    %232 = math.tanh %231 : vector<4x32xf32>
    %cst_60 = arith.constant 1.000000e+00 : f32
    %233 = vector.broadcast %cst_60 : f32 to vector<4x32xf32>
    %234 = arith.subf %233, %227 : vector<4x32xf32>
    %235 = arith.mulf %234, %232 : vector<4x32xf32>
    %236 = arith.mulf %227, %175 : vector<4x32xf32>
    %237 = arith.addf %235, %236 : vector<4x32xf32>
    %cst_61 = arith.constant dense<0.000000e+00> : vector<4x96xf32>
    %238 = tpu.matmul %237, %14, %cst_61 {dimension_numbers = #tpu.dot_dimension_numbers<[1], [0], [0], [1], [0, 0, 1, 1], [], []>} : vector<4x32xf32>, vector<32x96xf32>, vector<4x96xf32> -> vector<4x96xf32>
    %239 = vector.broadcast %15 : vector<1x96xf32> to vector<4x96xf32>
    %240 = arith.addf %238, %239 : vector<4x96xf32>
    %cst_62 = arith.constant dense<0.000000e+00> : vector<4x96xf32>
    %241 = tpu.matmul %207, %16, %cst_62 {dimension_numbers = #tpu.dot_dimension_numbers<[1], [0], [0], [1], [0, 0, 1, 1], [], []>} : vector<4x32xf32>, vector<32x96xf32>, vector<4x96xf32> -> vector<4x96xf32>
    %242 = vector.broadcast %17 : vector<1x96xf32> to vector<4x96xf32>
    %243 = arith.addf %241, %242 : vector<4x96xf32>
    %244 = vector.extract_strided_slice %240 {offsets = [0, 0], sizes = [4, 32], strides = [1, 1]} : vector<4x96xf32> to vector<4x32xf32>
    %245 = vector.extract_strided_slice %243 {offsets = [0, 0], sizes = [4, 32], strides = [1, 1]} : vector<4x96xf32> to vector<4x32xf32>
    %246 = arith.addf %244, %245 : vector<4x32xf32>
    %247 = arith.negf %246 : vector<4x32xf32>
    %248 = math.exp %247 : vector<4x32xf32>
    %cst_63 = arith.constant 1.000000e+00 : f32
    %249 = vector.broadcast %cst_63 : f32 to vector<4x32xf32>
    %250 = arith.addf %249, %248 : vector<4x32xf32>
    %251 = arith.divf %249, %250 : vector<4x32xf32>
    %252 = vector.extract_strided_slice %240 {offsets = [0, 32], sizes = [4, 32], strides = [1, 1]} : vector<4x96xf32> to vector<4x32xf32>
    %253 = vector.extract_strided_slice %243 {offsets = [0, 32], sizes = [4, 32], strides = [1, 1]} : vector<4x96xf32> to vector<4x32xf32>
    %254 = arith.addf %252, %253 : vector<4x32xf32>
    %255 = arith.negf %254 : vector<4x32xf32>
    %256 = math.exp %255 : vector<4x32xf32>
    %cst_64 = arith.constant 1.000000e+00 : f32
    %257 = vector.broadcast %cst_64 : f32 to vector<4x32xf32>
    %258 = arith.addf %257, %256 : vector<4x32xf32>
    %259 = arith.divf %257, %258 : vector<4x32xf32>
    %260 = vector.extract_strided_slice %240 {offsets = [0, 64], sizes = [4, 32], strides = [1, 1]} : vector<4x96xf32> to vector<4x32xf32>
    %261 = vector.extract_strided_slice %243 {offsets = [0, 64], sizes = [4, 32], strides = [1, 1]} : vector<4x96xf32> to vector<4x32xf32>
    %262 = arith.mulf %251, %261 : vector<4x32xf32>
    %263 = arith.addf %260, %262 : vector<4x32xf32>
    %264 = math.tanh %263 : vector<4x32xf32>
    %cst_65 = arith.constant 1.000000e+00 : f32
    %265 = vector.broadcast %cst_65 : f32 to vector<4x32xf32>
    %266 = arith.subf %265, %259 : vector<4x32xf32>
    %267 = arith.mulf %266, %264 : vector<4x32xf32>
    %268 = arith.mulf %259, %207 : vector<4x32xf32>
    %269 = arith.addf %267, %268 : vector<4x32xf32>
    %270 = vector.extract_strided_slice %5 {offsets = [16, 0], sizes = [4, 96], strides = [1, 1]} : vector<32x96xf32> to vector<4x96xf32>
    %cst_66 = arith.constant dense<0.000000e+00> : vector<4x96xf32>
    %271 = tpu.matmul %237, %12, %cst_66 {dimension_numbers = #tpu.dot_dimension_numbers<[1], [0], [0], [1], [0, 0, 1, 1], [], []>} : vector<4x32xf32>, vector<32x96xf32>, vector<4x96xf32> -> vector<4x96xf32>
    %272 = vector.broadcast %13 : vector<1x96xf32> to vector<4x96xf32>
    %273 = arith.addf %271, %272 : vector<4x96xf32>
    %274 = vector.extract_strided_slice %270 {offsets = [0, 0], sizes = [4, 32], strides = [1, 1]} : vector<4x96xf32> to vector<4x32xf32>
    %275 = vector.extract_strided_slice %273 {offsets = [0, 0], sizes = [4, 32], strides = [1, 1]} : vector<4x96xf32> to vector<4x32xf32>
    %276 = arith.addf %274, %275 : vector<4x32xf32>
    %277 = arith.negf %276 : vector<4x32xf32>
    %278 = math.exp %277 : vector<4x32xf32>
    %cst_67 = arith.constant 1.000000e+00 : f32
    %279 = vector.broadcast %cst_67 : f32 to vector<4x32xf32>
    %280 = arith.addf %279, %278 : vector<4x32xf32>
    %281 = arith.divf %279, %280 : vector<4x32xf32>
    %282 = vector.extract_strided_slice %270 {offsets = [0, 32], sizes = [4, 32], strides = [1, 1]} : vector<4x96xf32> to vector<4x32xf32>
    %283 = vector.extract_strided_slice %273 {offsets = [0, 32], sizes = [4, 32], strides = [1, 1]} : vector<4x96xf32> to vector<4x32xf32>
    %284 = arith.addf %282, %283 : vector<4x32xf32>
    %285 = arith.negf %284 : vector<4x32xf32>
    %286 = math.exp %285 : vector<4x32xf32>
    %cst_68 = arith.constant 1.000000e+00 : f32
    %287 = vector.broadcast %cst_68 : f32 to vector<4x32xf32>
    %288 = arith.addf %287, %286 : vector<4x32xf32>
    %289 = arith.divf %287, %288 : vector<4x32xf32>
    %290 = vector.extract_strided_slice %270 {offsets = [0, 64], sizes = [4, 32], strides = [1, 1]} : vector<4x96xf32> to vector<4x32xf32>
    %291 = vector.extract_strided_slice %273 {offsets = [0, 64], sizes = [4, 32], strides = [1, 1]} : vector<4x96xf32> to vector<4x32xf32>
    %292 = arith.mulf %281, %291 : vector<4x32xf32>
    %293 = arith.addf %290, %292 : vector<4x32xf32>
    %294 = math.tanh %293 : vector<4x32xf32>
    %cst_69 = arith.constant 1.000000e+00 : f32
    %295 = vector.broadcast %cst_69 : f32 to vector<4x32xf32>
    %296 = arith.subf %295, %289 : vector<4x32xf32>
    %297 = arith.mulf %296, %294 : vector<4x32xf32>
    %298 = arith.mulf %289, %237 : vector<4x32xf32>
    %299 = arith.addf %297, %298 : vector<4x32xf32>
    %cst_70 = arith.constant dense<0.000000e+00> : vector<4x96xf32>
    %300 = tpu.matmul %299, %14, %cst_70 {dimension_numbers = #tpu.dot_dimension_numbers<[1], [0], [0], [1], [0, 0, 1, 1], [], []>} : vector<4x32xf32>, vector<32x96xf32>, vector<4x96xf32> -> vector<4x96xf32>
    %301 = vector.broadcast %15 : vector<1x96xf32> to vector<4x96xf32>
    %302 = arith.addf %300, %301 : vector<4x96xf32>
    %cst_71 = arith.constant dense<0.000000e+00> : vector<4x96xf32>
    %303 = tpu.matmul %269, %16, %cst_71 {dimension_numbers = #tpu.dot_dimension_numbers<[1], [0], [0], [1], [0, 0, 1, 1], [], []>} : vector<4x32xf32>, vector<32x96xf32>, vector<4x96xf32> -> vector<4x96xf32>
    %304 = vector.broadcast %17 : vector<1x96xf32> to vector<4x96xf32>
    %305 = arith.addf %303, %304 : vector<4x96xf32>
    %306 = vector.extract_strided_slice %302 {offsets = [0, 0], sizes = [4, 32], strides = [1, 1]} : vector<4x96xf32> to vector<4x32xf32>
    %307 = vector.extract_strided_slice %305 {offsets = [0, 0], sizes = [4, 32], strides = [1, 1]} : vector<4x96xf32> to vector<4x32xf32>
    %308 = arith.addf %306, %307 : vector<4x32xf32>
    %309 = arith.negf %308 : vector<4x32xf32>
    %310 = math.exp %309 : vector<4x32xf32>
    %cst_72 = arith.constant 1.000000e+00 : f32
    %311 = vector.broadcast %cst_72 : f32 to vector<4x32xf32>
    %312 = arith.addf %311, %310 : vector<4x32xf32>
    %313 = arith.divf %311, %312 : vector<4x32xf32>
    %314 = vector.extract_strided_slice %302 {offsets = [0, 32], sizes = [4, 32], strides = [1, 1]} : vector<4x96xf32> to vector<4x32xf32>
    %315 = vector.extract_strided_slice %305 {offsets = [0, 32], sizes = [4, 32], strides = [1, 1]} : vector<4x96xf32> to vector<4x32xf32>
    %316 = arith.addf %314, %315 : vector<4x32xf32>
    %317 = arith.negf %316 : vector<4x32xf32>
    %318 = math.exp %317 : vector<4x32xf32>
    %cst_73 = arith.constant 1.000000e+00 : f32
    %319 = vector.broadcast %cst_73 : f32 to vector<4x32xf32>
    %320 = arith.addf %319, %318 : vector<4x32xf32>
    %321 = arith.divf %319, %320 : vector<4x32xf32>
    %322 = vector.extract_strided_slice %302 {offsets = [0, 64], sizes = [4, 32], strides = [1, 1]} : vector<4x96xf32> to vector<4x32xf32>
    %323 = vector.extract_strided_slice %305 {offsets = [0, 64], sizes = [4, 32], strides = [1, 1]} : vector<4x96xf32> to vector<4x32xf32>
    %324 = arith.mulf %313, %323 : vector<4x32xf32>
    %325 = arith.addf %322, %324 : vector<4x32xf32>
    %326 = math.tanh %325 : vector<4x32xf32>
    %cst_74 = arith.constant 1.000000e+00 : f32
    %327 = vector.broadcast %cst_74 : f32 to vector<4x32xf32>
    %328 = arith.subf %327, %321 : vector<4x32xf32>
    %329 = arith.mulf %328, %326 : vector<4x32xf32>
    %330 = arith.mulf %321, %269 : vector<4x32xf32>
    %331 = arith.addf %329, %330 : vector<4x32xf32>
    %332 = vector.extract_strided_slice %5 {offsets = [20, 0], sizes = [4, 96], strides = [1, 1]} : vector<32x96xf32> to vector<4x96xf32>
    %cst_75 = arith.constant dense<0.000000e+00> : vector<4x96xf32>
    %333 = tpu.matmul %299, %12, %cst_75 {dimension_numbers = #tpu.dot_dimension_numbers<[1], [0], [0], [1], [0, 0, 1, 1], [], []>} : vector<4x32xf32>, vector<32x96xf32>, vector<4x96xf32> -> vector<4x96xf32>
    %334 = vector.broadcast %13 : vector<1x96xf32> to vector<4x96xf32>
    %335 = arith.addf %333, %334 : vector<4x96xf32>
    %336 = vector.extract_strided_slice %332 {offsets = [0, 0], sizes = [4, 32], strides = [1, 1]} : vector<4x96xf32> to vector<4x32xf32>
    %337 = vector.extract_strided_slice %335 {offsets = [0, 0], sizes = [4, 32], strides = [1, 1]} : vector<4x96xf32> to vector<4x32xf32>
    %338 = arith.addf %336, %337 : vector<4x32xf32>
    %339 = arith.negf %338 : vector<4x32xf32>
    %340 = math.exp %339 : vector<4x32xf32>
    %cst_76 = arith.constant 1.000000e+00 : f32
    %341 = vector.broadcast %cst_76 : f32 to vector<4x32xf32>
    %342 = arith.addf %341, %340 : vector<4x32xf32>
    %343 = arith.divf %341, %342 : vector<4x32xf32>
    %344 = vector.extract_strided_slice %332 {offsets = [0, 32], sizes = [4, 32], strides = [1, 1]} : vector<4x96xf32> to vector<4x32xf32>
    %345 = vector.extract_strided_slice %335 {offsets = [0, 32], sizes = [4, 32], strides = [1, 1]} : vector<4x96xf32> to vector<4x32xf32>
    %346 = arith.addf %344, %345 : vector<4x32xf32>
    %347 = arith.negf %346 : vector<4x32xf32>
    %348 = math.exp %347 : vector<4x32xf32>
    %cst_77 = arith.constant 1.000000e+00 : f32
    %349 = vector.broadcast %cst_77 : f32 to vector<4x32xf32>
    %350 = arith.addf %349, %348 : vector<4x32xf32>
    %351 = arith.divf %349, %350 : vector<4x32xf32>
    %352 = vector.extract_strided_slice %332 {offsets = [0, 64], sizes = [4, 32], strides = [1, 1]} : vector<4x96xf32> to vector<4x32xf32>
    %353 = vector.extract_strided_slice %335 {offsets = [0, 64], sizes = [4, 32], strides = [1, 1]} : vector<4x96xf32> to vector<4x32xf32>
    %354 = arith.mulf %343, %353 : vector<4x32xf32>
    %355 = arith.addf %352, %354 : vector<4x32xf32>
    %356 = math.tanh %355 : vector<4x32xf32>
    %cst_78 = arith.constant 1.000000e+00 : f32
    %357 = vector.broadcast %cst_78 : f32 to vector<4x32xf32>
    %358 = arith.subf %357, %351 : vector<4x32xf32>
    %359 = arith.mulf %358, %356 : vector<4x32xf32>
    %360 = arith.mulf %351, %299 : vector<4x32xf32>
    %361 = arith.addf %359, %360 : vector<4x32xf32>
    %cst_79 = arith.constant dense<0.000000e+00> : vector<4x96xf32>
    %362 = tpu.matmul %361, %14, %cst_79 {dimension_numbers = #tpu.dot_dimension_numbers<[1], [0], [0], [1], [0, 0, 1, 1], [], []>} : vector<4x32xf32>, vector<32x96xf32>, vector<4x96xf32> -> vector<4x96xf32>
    %363 = vector.broadcast %15 : vector<1x96xf32> to vector<4x96xf32>
    %364 = arith.addf %362, %363 : vector<4x96xf32>
    %cst_80 = arith.constant dense<0.000000e+00> : vector<4x96xf32>
    %365 = tpu.matmul %331, %16, %cst_80 {dimension_numbers = #tpu.dot_dimension_numbers<[1], [0], [0], [1], [0, 0, 1, 1], [], []>} : vector<4x32xf32>, vector<32x96xf32>, vector<4x96xf32> -> vector<4x96xf32>
    %366 = vector.broadcast %17 : vector<1x96xf32> to vector<4x96xf32>
    %367 = arith.addf %365, %366 : vector<4x96xf32>
    %368 = vector.extract_strided_slice %364 {offsets = [0, 0], sizes = [4, 32], strides = [1, 1]} : vector<4x96xf32> to vector<4x32xf32>
    %369 = vector.extract_strided_slice %367 {offsets = [0, 0], sizes = [4, 32], strides = [1, 1]} : vector<4x96xf32> to vector<4x32xf32>
    %370 = arith.addf %368, %369 : vector<4x32xf32>
    %371 = arith.negf %370 : vector<4x32xf32>
    %372 = math.exp %371 : vector<4x32xf32>
    %cst_81 = arith.constant 1.000000e+00 : f32
    %373 = vector.broadcast %cst_81 : f32 to vector<4x32xf32>
    %374 = arith.addf %373, %372 : vector<4x32xf32>
    %375 = arith.divf %373, %374 : vector<4x32xf32>
    %376 = vector.extract_strided_slice %364 {offsets = [0, 32], sizes = [4, 32], strides = [1, 1]} : vector<4x96xf32> to vector<4x32xf32>
    %377 = vector.extract_strided_slice %367 {offsets = [0, 32], sizes = [4, 32], strides = [1, 1]} : vector<4x96xf32> to vector<4x32xf32>
    %378 = arith.addf %376, %377 : vector<4x32xf32>
    %379 = arith.negf %378 : vector<4x32xf32>
    %380 = math.exp %379 : vector<4x32xf32>
    %cst_82 = arith.constant 1.000000e+00 : f32
    %381 = vector.broadcast %cst_82 : f32 to vector<4x32xf32>
    %382 = arith.addf %381, %380 : vector<4x32xf32>
    %383 = arith.divf %381, %382 : vector<4x32xf32>
    %384 = vector.extract_strided_slice %364 {offsets = [0, 64], sizes = [4, 32], strides = [1, 1]} : vector<4x96xf32> to vector<4x32xf32>
    %385 = vector.extract_strided_slice %367 {offsets = [0, 64], sizes = [4, 32], strides = [1, 1]} : vector<4x96xf32> to vector<4x32xf32>
    %386 = arith.mulf %375, %385 : vector<4x32xf32>
    %387 = arith.addf %384, %386 : vector<4x32xf32>
    %388 = math.tanh %387 : vector<4x32xf32>
    %cst_83 = arith.constant 1.000000e+00 : f32
    %389 = vector.broadcast %cst_83 : f32 to vector<4x32xf32>
    %390 = arith.subf %389, %383 : vector<4x32xf32>
    %391 = arith.mulf %390, %388 : vector<4x32xf32>
    %392 = arith.mulf %383, %331 : vector<4x32xf32>
    %393 = arith.addf %391, %392 : vector<4x32xf32>
    %394 = vector.extract_strided_slice %5 {offsets = [24, 0], sizes = [4, 96], strides = [1, 1]} : vector<32x96xf32> to vector<4x96xf32>
    %cst_84 = arith.constant dense<0.000000e+00> : vector<4x96xf32>
    %395 = tpu.matmul %361, %12, %cst_84 {dimension_numbers = #tpu.dot_dimension_numbers<[1], [0], [0], [1], [0, 0, 1, 1], [], []>} : vector<4x32xf32>, vector<32x96xf32>, vector<4x96xf32> -> vector<4x96xf32>
    %396 = vector.broadcast %13 : vector<1x96xf32> to vector<4x96xf32>
    %397 = arith.addf %395, %396 : vector<4x96xf32>
    %398 = vector.extract_strided_slice %394 {offsets = [0, 0], sizes = [4, 32], strides = [1, 1]} : vector<4x96xf32> to vector<4x32xf32>
    %399 = vector.extract_strided_slice %397 {offsets = [0, 0], sizes = [4, 32], strides = [1, 1]} : vector<4x96xf32> to vector<4x32xf32>
    %400 = arith.addf %398, %399 : vector<4x32xf32>
    %401 = arith.negf %400 : vector<4x32xf32>
    %402 = math.exp %401 : vector<4x32xf32>
    %cst_85 = arith.constant 1.000000e+00 : f32
    %403 = vector.broadcast %cst_85 : f32 to vector<4x32xf32>
    %404 = arith.addf %403, %402 : vector<4x32xf32>
    %405 = arith.divf %403, %404 : vector<4x32xf32>
    %406 = vector.extract_strided_slice %394 {offsets = [0, 32], sizes = [4, 32], strides = [1, 1]} : vector<4x96xf32> to vector<4x32xf32>
    %407 = vector.extract_strided_slice %397 {offsets = [0, 32], sizes = [4, 32], strides = [1, 1]} : vector<4x96xf32> to vector<4x32xf32>
    %408 = arith.addf %406, %407 : vector<4x32xf32>
    %409 = arith.negf %408 : vector<4x32xf32>
    %410 = math.exp %409 : vector<4x32xf32>
    %cst_86 = arith.constant 1.000000e+00 : f32
    %411 = vector.broadcast %cst_86 : f32 to vector<4x32xf32>
    %412 = arith.addf %411, %410 : vector<4x32xf32>
    %413 = arith.divf %411, %412 : vector<4x32xf32>
    %414 = vector.extract_strided_slice %394 {offsets = [0, 64], sizes = [4, 32], strides = [1, 1]} : vector<4x96xf32> to vector<4x32xf32>
    %415 = vector.extract_strided_slice %397 {offsets = [0, 64], sizes = [4, 32], strides = [1, 1]} : vector<4x96xf32> to vector<4x32xf32>
    %416 = arith.mulf %405, %415 : vector<4x32xf32>
    %417 = arith.addf %414, %416 : vector<4x32xf32>
    %418 = math.tanh %417 : vector<4x32xf32>
    %cst_87 = arith.constant 1.000000e+00 : f32
    %419 = vector.broadcast %cst_87 : f32 to vector<4x32xf32>
    %420 = arith.subf %419, %413 : vector<4x32xf32>
    %421 = arith.mulf %420, %418 : vector<4x32xf32>
    %422 = arith.mulf %413, %361 : vector<4x32xf32>
    %423 = arith.addf %421, %422 : vector<4x32xf32>
    %cst_88 = arith.constant dense<0.000000e+00> : vector<4x96xf32>
    %424 = tpu.matmul %423, %14, %cst_88 {dimension_numbers = #tpu.dot_dimension_numbers<[1], [0], [0], [1], [0, 0, 1, 1], [], []>} : vector<4x32xf32>, vector<32x96xf32>, vector<4x96xf32> -> vector<4x96xf32>
    %425 = vector.broadcast %15 : vector<1x96xf32> to vector<4x96xf32>
    %426 = arith.addf %424, %425 : vector<4x96xf32>
    %cst_89 = arith.constant dense<0.000000e+00> : vector<4x96xf32>
    %427 = tpu.matmul %393, %16, %cst_89 {dimension_numbers = #tpu.dot_dimension_numbers<[1], [0], [0], [1], [0, 0, 1, 1], [], []>} : vector<4x32xf32>, vector<32x96xf32>, vector<4x96xf32> -> vector<4x96xf32>
    %428 = vector.broadcast %17 : vector<1x96xf32> to vector<4x96xf32>
    %429 = arith.addf %427, %428 : vector<4x96xf32>
    %430 = vector.extract_strided_slice %426 {offsets = [0, 0], sizes = [4, 32], strides = [1, 1]} : vector<4x96xf32> to vector<4x32xf32>
    %431 = vector.extract_strided_slice %429 {offsets = [0, 0], sizes = [4, 32], strides = [1, 1]} : vector<4x96xf32> to vector<4x32xf32>
    %432 = arith.addf %430, %431 : vector<4x32xf32>
    %433 = arith.negf %432 : vector<4x32xf32>
    %434 = math.exp %433 : vector<4x32xf32>
    %cst_90 = arith.constant 1.000000e+00 : f32
    %435 = vector.broadcast %cst_90 : f32 to vector<4x32xf32>
    %436 = arith.addf %435, %434 : vector<4x32xf32>
    %437 = arith.divf %435, %436 : vector<4x32xf32>
    %438 = vector.extract_strided_slice %426 {offsets = [0, 32], sizes = [4, 32], strides = [1, 1]} : vector<4x96xf32> to vector<4x32xf32>
    %439 = vector.extract_strided_slice %429 {offsets = [0, 32], sizes = [4, 32], strides = [1, 1]} : vector<4x96xf32> to vector<4x32xf32>
    %440 = arith.addf %438, %439 : vector<4x32xf32>
    %441 = arith.negf %440 : vector<4x32xf32>
    %442 = math.exp %441 : vector<4x32xf32>
    %cst_91 = arith.constant 1.000000e+00 : f32
    %443 = vector.broadcast %cst_91 : f32 to vector<4x32xf32>
    %444 = arith.addf %443, %442 : vector<4x32xf32>
    %445 = arith.divf %443, %444 : vector<4x32xf32>
    %446 = vector.extract_strided_slice %426 {offsets = [0, 64], sizes = [4, 32], strides = [1, 1]} : vector<4x96xf32> to vector<4x32xf32>
    %447 = vector.extract_strided_slice %429 {offsets = [0, 64], sizes = [4, 32], strides = [1, 1]} : vector<4x96xf32> to vector<4x32xf32>
    %448 = arith.mulf %437, %447 : vector<4x32xf32>
    %449 = arith.addf %446, %448 : vector<4x32xf32>
    %450 = math.tanh %449 : vector<4x32xf32>
    %cst_92 = arith.constant 1.000000e+00 : f32
    %451 = vector.broadcast %cst_92 : f32 to vector<4x32xf32>
    %452 = arith.subf %451, %445 : vector<4x32xf32>
    %453 = arith.mulf %452, %450 : vector<4x32xf32>
    %454 = arith.mulf %445, %393 : vector<4x32xf32>
    %455 = arith.addf %453, %454 : vector<4x32xf32>
    %456 = vector.extract_strided_slice %5 {offsets = [28, 0], sizes = [4, 96], strides = [1, 1]} : vector<32x96xf32> to vector<4x96xf32>
    %cst_93 = arith.constant dense<0.000000e+00> : vector<4x96xf32>
    %457 = tpu.matmul %423, %12, %cst_93 {dimension_numbers = #tpu.dot_dimension_numbers<[1], [0], [0], [1], [0, 0, 1, 1], [], []>} : vector<4x32xf32>, vector<32x96xf32>, vector<4x96xf32> -> vector<4x96xf32>
    %458 = vector.broadcast %13 : vector<1x96xf32> to vector<4x96xf32>
    %459 = arith.addf %457, %458 : vector<4x96xf32>
    %460 = vector.extract_strided_slice %456 {offsets = [0, 0], sizes = [4, 32], strides = [1, 1]} : vector<4x96xf32> to vector<4x32xf32>
    %461 = vector.extract_strided_slice %459 {offsets = [0, 0], sizes = [4, 32], strides = [1, 1]} : vector<4x96xf32> to vector<4x32xf32>
    %462 = arith.addf %460, %461 : vector<4x32xf32>
    %463 = arith.negf %462 : vector<4x32xf32>
    %464 = math.exp %463 : vector<4x32xf32>
    %cst_94 = arith.constant 1.000000e+00 : f32
    %465 = vector.broadcast %cst_94 : f32 to vector<4x32xf32>
    %466 = arith.addf %465, %464 : vector<4x32xf32>
    %467 = arith.divf %465, %466 : vector<4x32xf32>
    %468 = vector.extract_strided_slice %456 {offsets = [0, 32], sizes = [4, 32], strides = [1, 1]} : vector<4x96xf32> to vector<4x32xf32>
    %469 = vector.extract_strided_slice %459 {offsets = [0, 32], sizes = [4, 32], strides = [1, 1]} : vector<4x96xf32> to vector<4x32xf32>
    %470 = arith.addf %468, %469 : vector<4x32xf32>
    %471 = arith.negf %470 : vector<4x32xf32>
    %472 = math.exp %471 : vector<4x32xf32>
    %cst_95 = arith.constant 1.000000e+00 : f32
    %473 = vector.broadcast %cst_95 : f32 to vector<4x32xf32>
    %474 = arith.addf %473, %472 : vector<4x32xf32>
    %475 = arith.divf %473, %474 : vector<4x32xf32>
    %476 = vector.extract_strided_slice %456 {offsets = [0, 64], sizes = [4, 32], strides = [1, 1]} : vector<4x96xf32> to vector<4x32xf32>
    %477 = vector.extract_strided_slice %459 {offsets = [0, 64], sizes = [4, 32], strides = [1, 1]} : vector<4x96xf32> to vector<4x32xf32>
    %478 = arith.mulf %467, %477 : vector<4x32xf32>
    %479 = arith.addf %476, %478 : vector<4x32xf32>
    %480 = math.tanh %479 : vector<4x32xf32>
    %cst_96 = arith.constant 1.000000e+00 : f32
    %481 = vector.broadcast %cst_96 : f32 to vector<4x32xf32>
    %482 = arith.subf %481, %475 : vector<4x32xf32>
    %483 = arith.mulf %482, %480 : vector<4x32xf32>
    %484 = arith.mulf %475, %423 : vector<4x32xf32>
    %485 = arith.addf %483, %484 : vector<4x32xf32>
    %cst_97 = arith.constant dense<0.000000e+00> : vector<4x96xf32>
    %486 = tpu.matmul %485, %14, %cst_97 {dimension_numbers = #tpu.dot_dimension_numbers<[1], [0], [0], [1], [0, 0, 1, 1], [], []>} : vector<4x32xf32>, vector<32x96xf32>, vector<4x96xf32> -> vector<4x96xf32>
    %487 = vector.broadcast %15 : vector<1x96xf32> to vector<4x96xf32>
    %488 = arith.addf %486, %487 : vector<4x96xf32>
    %cst_98 = arith.constant dense<0.000000e+00> : vector<4x96xf32>
    %489 = tpu.matmul %455, %16, %cst_98 {dimension_numbers = #tpu.dot_dimension_numbers<[1], [0], [0], [1], [0, 0, 1, 1], [], []>} : vector<4x32xf32>, vector<32x96xf32>, vector<4x96xf32> -> vector<4x96xf32>
    %490 = vector.broadcast %17 : vector<1x96xf32> to vector<4x96xf32>
    %491 = arith.addf %489, %490 : vector<4x96xf32>
    %492 = vector.extract_strided_slice %488 {offsets = [0, 0], sizes = [4, 32], strides = [1, 1]} : vector<4x96xf32> to vector<4x32xf32>
    %493 = vector.extract_strided_slice %491 {offsets = [0, 0], sizes = [4, 32], strides = [1, 1]} : vector<4x96xf32> to vector<4x32xf32>
    %494 = arith.addf %492, %493 : vector<4x32xf32>
    %495 = arith.negf %494 : vector<4x32xf32>
    %496 = math.exp %495 : vector<4x32xf32>
    %cst_99 = arith.constant 1.000000e+00 : f32
    %497 = vector.broadcast %cst_99 : f32 to vector<4x32xf32>
    %498 = arith.addf %497, %496 : vector<4x32xf32>
    %499 = arith.divf %497, %498 : vector<4x32xf32>
    %500 = vector.extract_strided_slice %488 {offsets = [0, 32], sizes = [4, 32], strides = [1, 1]} : vector<4x96xf32> to vector<4x32xf32>
    %501 = vector.extract_strided_slice %491 {offsets = [0, 32], sizes = [4, 32], strides = [1, 1]} : vector<4x96xf32> to vector<4x32xf32>
    %502 = arith.addf %500, %501 : vector<4x32xf32>
    %503 = arith.negf %502 : vector<4x32xf32>
    %504 = math.exp %503 : vector<4x32xf32>
    %cst_100 = arith.constant 1.000000e+00 : f32
    %505 = vector.broadcast %cst_100 : f32 to vector<4x32xf32>
    %506 = arith.addf %505, %504 : vector<4x32xf32>
    %507 = arith.divf %505, %506 : vector<4x32xf32>
    %508 = vector.extract_strided_slice %488 {offsets = [0, 64], sizes = [4, 32], strides = [1, 1]} : vector<4x96xf32> to vector<4x32xf32>
    %509 = vector.extract_strided_slice %491 {offsets = [0, 64], sizes = [4, 32], strides = [1, 1]} : vector<4x96xf32> to vector<4x32xf32>
    %510 = arith.mulf %499, %509 : vector<4x32xf32>
    %511 = arith.addf %508, %510 : vector<4x32xf32>
    %512 = math.tanh %511 : vector<4x32xf32>
    %cst_101 = arith.constant 1.000000e+00 : f32
    %513 = vector.broadcast %cst_101 : f32 to vector<4x32xf32>
    %514 = arith.subf %513, %507 : vector<4x32xf32>
    %515 = arith.mulf %514, %512 : vector<4x32xf32>
    %516 = arith.mulf %507, %455 : vector<4x32xf32>
    %517 = arith.addf %515, %516 : vector<4x32xf32>
    %518 = vector.extract_strided_slice %11 {offsets = [0, 0], sizes = [4, 96], strides = [1, 1]} : vector<24x96xf32> to vector<4x96xf32>
    %cst_102 = arith.constant dense<0.000000e+00> : vector<4x96xf32>
    %519 = tpu.matmul %517, %18, %cst_102 {dimension_numbers = #tpu.dot_dimension_numbers<[1], [0], [0], [1], [0, 0, 1, 1], [], []>} : vector<4x32xf32>, vector<32x96xf32>, vector<4x96xf32> -> vector<4x96xf32>
    %520 = vector.broadcast %19 : vector<1x96xf32> to vector<4x96xf32>
    %521 = arith.addf %519, %520 : vector<4x96xf32>
    %522 = vector.extract_strided_slice %518 {offsets = [0, 0], sizes = [4, 32], strides = [1, 1]} : vector<4x96xf32> to vector<4x32xf32>
    %523 = vector.extract_strided_slice %521 {offsets = [0, 0], sizes = [4, 32], strides = [1, 1]} : vector<4x96xf32> to vector<4x32xf32>
    %524 = arith.addf %522, %523 : vector<4x32xf32>
    %525 = arith.negf %524 : vector<4x32xf32>
    %526 = math.exp %525 : vector<4x32xf32>
    %cst_103 = arith.constant 1.000000e+00 : f32
    %527 = vector.broadcast %cst_103 : f32 to vector<4x32xf32>
    %528 = arith.addf %527, %526 : vector<4x32xf32>
    %529 = arith.divf %527, %528 : vector<4x32xf32>
    %530 = vector.extract_strided_slice %518 {offsets = [0, 32], sizes = [4, 32], strides = [1, 1]} : vector<4x96xf32> to vector<4x32xf32>
    %531 = vector.extract_strided_slice %521 {offsets = [0, 32], sizes = [4, 32], strides = [1, 1]} : vector<4x96xf32> to vector<4x32xf32>
    %532 = arith.addf %530, %531 : vector<4x32xf32>
    %533 = arith.negf %532 : vector<4x32xf32>
    %534 = math.exp %533 : vector<4x32xf32>
    %cst_104 = arith.constant 1.000000e+00 : f32
    %535 = vector.broadcast %cst_104 : f32 to vector<4x32xf32>
    %536 = arith.addf %535, %534 : vector<4x32xf32>
    %537 = arith.divf %535, %536 : vector<4x32xf32>
    %538 = vector.extract_strided_slice %518 {offsets = [0, 64], sizes = [4, 32], strides = [1, 1]} : vector<4x96xf32> to vector<4x32xf32>
    %539 = vector.extract_strided_slice %521 {offsets = [0, 64], sizes = [4, 32], strides = [1, 1]} : vector<4x96xf32> to vector<4x32xf32>
    %540 = arith.mulf %529, %539 : vector<4x32xf32>
    %541 = arith.addf %538, %540 : vector<4x32xf32>
    %542 = math.tanh %541 : vector<4x32xf32>
    %cst_105 = arith.constant 1.000000e+00 : f32
    %543 = vector.broadcast %cst_105 : f32 to vector<4x32xf32>
    %544 = arith.subf %543, %537 : vector<4x32xf32>
    %545 = arith.mulf %544, %542 : vector<4x32xf32>
    %546 = arith.mulf %537, %517 : vector<4x32xf32>
    %547 = arith.addf %545, %546 : vector<4x32xf32>
    %c0_106 = arith.constant 0 : index
    %c0_107 = arith.constant 0 : index
    %548 = vector.load %arg22[%c0_106, %c0_107] : memref<24x32xf32, #tpu.memory_space<vmem>>, vector<4x32xf32>
    tpu.vector_store %arg22[%c0_106, %c0_107], %547 {strides = array<i32>} : memref<24x32xf32, #tpu.memory_space<vmem>>, vector<4x32xf32>,
    %549 = vector.extract_strided_slice %11 {offsets = [4, 0], sizes = [4, 96], strides = [1, 1]} : vector<24x96xf32> to vector<4x96xf32>
    %cst_108 = arith.constant dense<0.000000e+00> : vector<4x96xf32>
    %550 = tpu.matmul %547, %18, %cst_108 {dimension_numbers = #tpu.dot_dimension_numbers<[1], [0], [0], [1], [0, 0, 1, 1], [], []>} : vector<4x32xf32>, vector<32x96xf32>, vector<4x96xf32> -> vector<4x96xf32>
    %551 = vector.broadcast %19 : vector<1x96xf32> to vector<4x96xf32>
    %552 = arith.addf %550, %551 : vector<4x96xf32>
    %553 = vector.extract_strided_slice %549 {offsets = [0, 0], sizes = [4, 32], strides = [1, 1]} : vector<4x96xf32> to vector<4x32xf32>
    %554 = vector.extract_strided_slice %552 {offsets = [0, 0], sizes = [4, 32], strides = [1, 1]} : vector<4x96xf32> to vector<4x32xf32>
    %555 = arith.addf %553, %554 : vector<4x32xf32>
    %556 = arith.negf %555 : vector<4x32xf32>
    %557 = math.exp %556 : vector<4x32xf32>
    %cst_109 = arith.constant 1.000000e+00 : f32
    %558 = vector.broadcast %cst_109 : f32 to vector<4x32xf32>
    %559 = arith.addf %558, %557 : vector<4x32xf32>
    %560 = arith.divf %558, %559 : vector<4x32xf32>
    %561 = vector.extract_strided_slice %549 {offsets = [0, 32], sizes = [4, 32], strides = [1, 1]} : vector<4x96xf32> to vector<4x32xf32>
    %562 = vector.extract_strided_slice %552 {offsets = [0, 32], sizes = [4, 32], strides = [1, 1]} : vector<4x96xf32> to vector<4x32xf32>
    %563 = arith.addf %561, %562 : vector<4x32xf32>
    %564 = arith.negf %563 : vector<4x32xf32>
    %565 = math.exp %564 : vector<4x32xf32>
    %cst_110 = arith.constant 1.000000e+00 : f32
    %566 = vector.broadcast %cst_110 : f32 to vector<4x32xf32>
    %567 = arith.addf %566, %565 : vector<4x32xf32>
    %568 = arith.divf %566, %567 : vector<4x32xf32>
    %569 = vector.extract_strided_slice %549 {offsets = [0, 64], sizes = [4, 32], strides = [1, 1]} : vector<4x96xf32> to vector<4x32xf32>
    %570 = vector.extract_strided_slice %552 {offsets = [0, 64], sizes = [4, 32], strides = [1, 1]} : vector<4x96xf32> to vector<4x32xf32>
    %571 = arith.mulf %560, %570 : vector<4x32xf32>
    %572 = arith.addf %569, %571 : vector<4x32xf32>
    %573 = math.tanh %572 : vector<4x32xf32>
    %cst_111 = arith.constant 1.000000e+00 : f32
    %574 = vector.broadcast %cst_111 : f32 to vector<4x32xf32>
    %575 = arith.subf %574, %568 : vector<4x32xf32>
    %576 = arith.mulf %575, %573 : vector<4x32xf32>
    %577 = arith.mulf %568, %547 : vector<4x32xf32>
    %578 = arith.addf %576, %577 : vector<4x32xf32>
    %c4 = arith.constant 4 : index
    %c0_112 = arith.constant 0 : index
    %579 = vector.load %arg22[%c4, %c0_112] : memref<24x32xf32, #tpu.memory_space<vmem>>, vector<4x32xf32>
    tpu.vector_store %arg22[%c4, %c0_112], %578 {strides = array<i32>} : memref<24x32xf32, #tpu.memory_space<vmem>>, vector<4x32xf32>,
    %580 = vector.extract_strided_slice %11 {offsets = [8, 0], sizes = [4, 96], strides = [1, 1]} : vector<24x96xf32> to vector<4x96xf32>
    %cst_113 = arith.constant dense<0.000000e+00> : vector<4x96xf32>
    %581 = tpu.matmul %578, %18, %cst_113 {dimension_numbers = #tpu.dot_dimension_numbers<[1], [0], [0], [1], [0, 0, 1, 1], [], []>} : vector<4x32xf32>, vector<32x96xf32>, vector<4x96xf32> -> vector<4x96xf32>
    %582 = vector.broadcast %19 : vector<1x96xf32> to vector<4x96xf32>
    %583 = arith.addf %581, %582 : vector<4x96xf32>
    %584 = vector.extract_strided_slice %580 {offsets = [0, 0], sizes = [4, 32], strides = [1, 1]} : vector<4x96xf32> to vector<4x32xf32>
    %585 = vector.extract_strided_slice %583 {offsets = [0, 0], sizes = [4, 32], strides = [1, 1]} : vector<4x96xf32> to vector<4x32xf32>
    %586 = arith.addf %584, %585 : vector<4x32xf32>
    %587 = arith.negf %586 : vector<4x32xf32>
    %588 = math.exp %587 : vector<4x32xf32>
    %cst_114 = arith.constant 1.000000e+00 : f32
    %589 = vector.broadcast %cst_114 : f32 to vector<4x32xf32>
    %590 = arith.addf %589, %588 : vector<4x32xf32>
    %591 = arith.divf %589, %590 : vector<4x32xf32>
    %592 = vector.extract_strided_slice %580 {offsets = [0, 32], sizes = [4, 32], strides = [1, 1]} : vector<4x96xf32> to vector<4x32xf32>
    %593 = vector.extract_strided_slice %583 {offsets = [0, 32], sizes = [4, 32], strides = [1, 1]} : vector<4x96xf32> to vector<4x32xf32>
    %594 = arith.addf %592, %593 : vector<4x32xf32>
    %595 = arith.negf %594 : vector<4x32xf32>
    %596 = math.exp %595 : vector<4x32xf32>
    %cst_115 = arith.constant 1.000000e+00 : f32
    %597 = vector.broadcast %cst_115 : f32 to vector<4x32xf32>
    %598 = arith.addf %597, %596 : vector<4x32xf32>
    %599 = arith.divf %597, %598 : vector<4x32xf32>
    %600 = vector.extract_strided_slice %580 {offsets = [0, 64], sizes = [4, 32], strides = [1, 1]} : vector<4x96xf32> to vector<4x32xf32>
    %601 = vector.extract_strided_slice %583 {offsets = [0, 64], sizes = [4, 32], strides = [1, 1]} : vector<4x96xf32> to vector<4x32xf32>
    %602 = arith.mulf %591, %601 : vector<4x32xf32>
    %603 = arith.addf %600, %602 : vector<4x32xf32>
    %604 = math.tanh %603 : vector<4x32xf32>
    %cst_116 = arith.constant 1.000000e+00 : f32
    %605 = vector.broadcast %cst_116 : f32 to vector<4x32xf32>
    %606 = arith.subf %605, %599 : vector<4x32xf32>
    %607 = arith.mulf %606, %604 : vector<4x32xf32>
    %608 = arith.mulf %599, %578 : vector<4x32xf32>
    %609 = arith.addf %607, %608 : vector<4x32xf32>
    %c8 = arith.constant 8 : index
    %c0_117 = arith.constant 0 : index
    %610 = vector.load %arg22[%c8, %c0_117] : memref<24x32xf32, #tpu.memory_space<vmem>>, vector<4x32xf32>
    tpu.vector_store %arg22[%c8, %c0_117], %609 {strides = array<i32>} : memref<24x32xf32, #tpu.memory_space<vmem>>, vector<4x32xf32>,
    %611 = vector.extract_strided_slice %11 {offsets = [12, 0], sizes = [4, 96], strides = [1, 1]} : vector<24x96xf32> to vector<4x96xf32>
    %cst_118 = arith.constant dense<0.000000e+00> : vector<4x96xf32>
    %612 = tpu.matmul %609, %18, %cst_118 {dimension_numbers = #tpu.dot_dimension_numbers<[1], [0], [0], [1], [0, 0, 1, 1], [], []>} : vector<4x32xf32>, vector<32x96xf32>, vector<4x96xf32> -> vector<4x96xf32>
    %613 = vector.broadcast %19 : vector<1x96xf32> to vector<4x96xf32>
    %614 = arith.addf %612, %613 : vector<4x96xf32>
    %615 = vector.extract_strided_slice %611 {offsets = [0, 0], sizes = [4, 32], strides = [1, 1]} : vector<4x96xf32> to vector<4x32xf32>
    %616 = vector.extract_strided_slice %614 {offsets = [0, 0], sizes = [4, 32], strides = [1, 1]} : vector<4x96xf32> to vector<4x32xf32>
    %617 = arith.addf %615, %616 : vector<4x32xf32>
    %618 = arith.negf %617 : vector<4x32xf32>
    %619 = math.exp %618 : vector<4x32xf32>
    %cst_119 = arith.constant 1.000000e+00 : f32
    %620 = vector.broadcast %cst_119 : f32 to vector<4x32xf32>
    %621 = arith.addf %620, %619 : vector<4x32xf32>
    %622 = arith.divf %620, %621 : vector<4x32xf32>
    %623 = vector.extract_strided_slice %611 {offsets = [0, 32], sizes = [4, 32], strides = [1, 1]} : vector<4x96xf32> to vector<4x32xf32>
    %624 = vector.extract_strided_slice %614 {offsets = [0, 32], sizes = [4, 32], strides = [1, 1]} : vector<4x96xf32> to vector<4x32xf32>
    %625 = arith.addf %623, %624 : vector<4x32xf32>
    %626 = arith.negf %625 : vector<4x32xf32>
    %627 = math.exp %626 : vector<4x32xf32>
    %cst_120 = arith.constant 1.000000e+00 : f32
    %628 = vector.broadcast %cst_120 : f32 to vector<4x32xf32>
    %629 = arith.addf %628, %627 : vector<4x32xf32>
    %630 = arith.divf %628, %629 : vector<4x32xf32>
    %631 = vector.extract_strided_slice %611 {offsets = [0, 64], sizes = [4, 32], strides = [1, 1]} : vector<4x96xf32> to vector<4x32xf32>
    %632 = vector.extract_strided_slice %614 {offsets = [0, 64], sizes = [4, 32], strides = [1, 1]} : vector<4x96xf32> to vector<4x32xf32>
    %633 = arith.mulf %622, %632 : vector<4x32xf32>
    %634 = arith.addf %631, %633 : vector<4x32xf32>
    %635 = math.tanh %634 : vector<4x32xf32>
    %cst_121 = arith.constant 1.000000e+00 : f32
    %636 = vector.broadcast %cst_121 : f32 to vector<4x32xf32>
    %637 = arith.subf %636, %630 : vector<4x32xf32>
    %638 = arith.mulf %637, %635 : vector<4x32xf32>
    %639 = arith.mulf %630, %609 : vector<4x32xf32>
    %640 = arith.addf %638, %639 : vector<4x32xf32>
    %c12 = arith.constant 12 : index
    %c0_122 = arith.constant 0 : index
    %641 = vector.load %arg22[%c12, %c0_122] : memref<24x32xf32, #tpu.memory_space<vmem>>, vector<4x32xf32>
    tpu.vector_store %arg22[%c12, %c0_122], %640 {strides = array<i32>} : memref<24x32xf32, #tpu.memory_space<vmem>>, vector<4x32xf32>,
    %642 = vector.extract_strided_slice %11 {offsets = [16, 0], sizes = [4, 96], strides = [1, 1]} : vector<24x96xf32> to vector<4x96xf32>
    %cst_123 = arith.constant dense<0.000000e+00> : vector<4x96xf32>
    %643 = tpu.matmul %640, %18, %cst_123 {dimension_numbers = #tpu.dot_dimension_numbers<[1], [0], [0], [1], [0, 0, 1, 1], [], []>} : vector<4x32xf32>, vector<32x96xf32>, vector<4x96xf32> -> vector<4x96xf32>
    %644 = vector.broadcast %19 : vector<1x96xf32> to vector<4x96xf32>
    %645 = arith.addf %643, %644 : vector<4x96xf32>
    %646 = vector.extract_strided_slice %642 {offsets = [0, 0], sizes = [4, 32], strides = [1, 1]} : vector<4x96xf32> to vector<4x32xf32>
    %647 = vector.extract_strided_slice %645 {offsets = [0, 0], sizes = [4, 32], strides = [1, 1]} : vector<4x96xf32> to vector<4x32xf32>
    %648 = arith.addf %646, %647 : vector<4x32xf32>
    %649 = arith.negf %648 : vector<4x32xf32>
    %650 = math.exp %649 : vector<4x32xf32>
    %cst_124 = arith.constant 1.000000e+00 : f32
    %651 = vector.broadcast %cst_124 : f32 to vector<4x32xf32>
    %652 = arith.addf %651, %650 : vector<4x32xf32>
    %653 = arith.divf %651, %652 : vector<4x32xf32>
    %654 = vector.extract_strided_slice %642 {offsets = [0, 32], sizes = [4, 32], strides = [1, 1]} : vector<4x96xf32> to vector<4x32xf32>
    %655 = vector.extract_strided_slice %645 {offsets = [0, 32], sizes = [4, 32], strides = [1, 1]} : vector<4x96xf32> to vector<4x32xf32>
    %656 = arith.addf %654, %655 : vector<4x32xf32>
    %657 = arith.negf %656 : vector<4x32xf32>
    %658 = math.exp %657 : vector<4x32xf32>
    %cst_125 = arith.constant 1.000000e+00 : f32
    %659 = vector.broadcast %cst_125 : f32 to vector<4x32xf32>
    %660 = arith.addf %659, %658 : vector<4x32xf32>
    %661 = arith.divf %659, %660 : vector<4x32xf32>
    %662 = vector.extract_strided_slice %642 {offsets = [0, 64], sizes = [4, 32], strides = [1, 1]} : vector<4x96xf32> to vector<4x32xf32>
    %663 = vector.extract_strided_slice %645 {offsets = [0, 64], sizes = [4, 32], strides = [1, 1]} : vector<4x96xf32> to vector<4x32xf32>
    %664 = arith.mulf %653, %663 : vector<4x32xf32>
    %665 = arith.addf %662, %664 : vector<4x32xf32>
    %666 = math.tanh %665 : vector<4x32xf32>
    %cst_126 = arith.constant 1.000000e+00 : f32
    %667 = vector.broadcast %cst_126 : f32 to vector<4x32xf32>
    %668 = arith.subf %667, %661 : vector<4x32xf32>
    %669 = arith.mulf %668, %666 : vector<4x32xf32>
    %670 = arith.mulf %661, %640 : vector<4x32xf32>
    %671 = arith.addf %669, %670 : vector<4x32xf32>
    %c16 = arith.constant 16 : index
    %c0_127 = arith.constant 0 : index
    %672 = vector.load %arg22[%c16, %c0_127] : memref<24x32xf32, #tpu.memory_space<vmem>>, vector<4x32xf32>
    tpu.vector_store %arg22[%c16, %c0_127], %671 {strides = array<i32>} : memref<24x32xf32, #tpu.memory_space<vmem>>, vector<4x32xf32>,
    %673 = vector.extract_strided_slice %11 {offsets = [20, 0], sizes = [4, 96], strides = [1, 1]} : vector<24x96xf32> to vector<4x96xf32>
    %cst_128 = arith.constant dense<0.000000e+00> : vector<4x96xf32>
    %674 = tpu.matmul %671, %18, %cst_128 {dimension_numbers = #tpu.dot_dimension_numbers<[1], [0], [0], [1], [0, 0, 1, 1], [], []>} : vector<4x32xf32>, vector<32x96xf32>, vector<4x96xf32> -> vector<4x96xf32>
    %675 = vector.broadcast %19 : vector<1x96xf32> to vector<4x96xf32>
    %676 = arith.addf %674, %675 : vector<4x96xf32>
    %677 = vector.extract_strided_slice %673 {offsets = [0, 0], sizes = [4, 32], strides = [1, 1]} : vector<4x96xf32> to vector<4x32xf32>
    %678 = vector.extract_strided_slice %676 {offsets = [0, 0], sizes = [4, 32], strides = [1, 1]} : vector<4x96xf32> to vector<4x32xf32>
    %679 = arith.addf %677, %678 : vector<4x32xf32>
    %680 = arith.negf %679 : vector<4x32xf32>
    %681 = math.exp %680 : vector<4x32xf32>
    %cst_129 = arith.constant 1.000000e+00 : f32
    %682 = vector.broadcast %cst_129 : f32 to vector<4x32xf32>
    %683 = arith.addf %682, %681 : vector<4x32xf32>
    %684 = arith.divf %682, %683 : vector<4x32xf32>
    %685 = vector.extract_strided_slice %673 {offsets = [0, 32], sizes = [4, 32], strides = [1, 1]} : vector<4x96xf32> to vector<4x32xf32>
    %686 = vector.extract_strided_slice %676 {offsets = [0, 32], sizes = [4, 32], strides = [1, 1]} : vector<4x96xf32> to vector<4x32xf32>
    %687 = arith.addf %685, %686 : vector<4x32xf32>
    %688 = arith.negf %687 : vector<4x32xf32>
    %689 = math.exp %688 : vector<4x32xf32>
    %cst_130 = arith.constant 1.000000e+00 : f32
    %690 = vector.broadcast %cst_130 : f32 to vector<4x32xf32>
    %691 = arith.addf %690, %689 : vector<4x32xf32>
    %692 = arith.divf %690, %691 : vector<4x32xf32>
    %693 = vector.extract_strided_slice %673 {offsets = [0, 64], sizes = [4, 32], strides = [1, 1]} : vector<4x96xf32> to vector<4x32xf32>
    %694 = vector.extract_strided_slice %676 {offsets = [0, 64], sizes = [4, 32], strides = [1, 1]} : vector<4x96xf32> to vector<4x32xf32>
    %695 = arith.mulf %684, %694 : vector<4x32xf32>
    %696 = arith.addf %693, %695 : vector<4x32xf32>
    %697 = math.tanh %696 : vector<4x32xf32>
    %cst_131 = arith.constant 1.000000e+00 : f32
    %698 = vector.broadcast %cst_131 : f32 to vector<4x32xf32>
    %699 = arith.subf %698, %692 : vector<4x32xf32>
    %700 = arith.mulf %699, %697 : vector<4x32xf32>
    %701 = arith.mulf %692, %671 : vector<4x32xf32>
    %702 = arith.addf %700, %701 : vector<4x32xf32>
    %c20 = arith.constant 20 : index
    %c0_132 = arith.constant 0 : index
    %703 = vector.load %arg22[%c20, %c0_132] : memref<24x32xf32, #tpu.memory_space<vmem>>, vector<4x32xf32>
    tpu.vector_store %arg22[%c20, %c0_132], %702 {strides = array<i32>} : memref<24x32xf32, #tpu.memory_space<vmem>>, vector<4x32xf32>,
    %c0_133 = arith.constant 0 : index
    %c0_134 = arith.constant 0 : index
    %704 = vector.load %arg22[%c0_133, %c0_134] : memref<24x32xf32, #tpu.memory_space<vmem>>, vector<24x32xf32>
    %c0_135 = arith.constant 0 : index
    %c0_136 = arith.constant 0 : index
    %705 = vector.load %arg15[%c0_135, %c0_136] : memref<32x128xf32, #tpu.memory_space<vmem>>, vector<32x128xf32>
    %cst_137 = arith.constant dense<0.000000e+00> : vector<24x128xf32>
    %706 = tpu.matmul %704, %705, %cst_137 {dimension_numbers = #tpu.dot_dimension_numbers<[1], [0], [0], [1], [0, 0, 1, 1], [], []>} : vector<24x32xf32>, vector<32x128xf32>, vector<24x128xf32> -> vector<24x128xf32>
    %c0_138 = arith.constant 0 : index
    %c0_139 = arith.constant 0 : index
    %707 = vector.load %arg16[%c0_138, %c0_139] : memref<1x128xf32, #tpu.memory_space<vmem>>, vector<1x128xf32>
    %708 = vector.broadcast %707 : vector<1x128xf32> to vector<24x128xf32>
    %709 = arith.addf %706, %708 : vector<24x128xf32>
    %cst_140 = arith.constant 0.000000e+00 : f32
    %710 = vector.broadcast %cst_140 : f32 to vector<24x128xf32>
    %711 = arith.maximumf %709, %710 : vector<24x128xf32>
    %c0_141 = arith.constant 0 : index
    %c0_142 = arith.constant 0 : index
    %712 = vector.load %arg17[%c0_141, %c0_142] : memref<128x192xf32, #tpu.memory_space<vmem>>, vector<128x192xf32>
    %cst_143 = arith.constant dense<0.000000e+00> : vector<24x192xf32>
    %713 = tpu.matmul %711, %712, %cst_143 {dimension_numbers = #tpu.dot_dimension_numbers<[1], [0], [0], [1], [0, 0, 1, 1], [], []>} : vector<24x128xf32>, vector<128x192xf32>, vector<24x192xf32> -> vector<24x192xf32>
    %c0_144 = arith.constant 0 : index
    %c0_145 = arith.constant 0 : index
    %714 = vector.load %arg18[%c0_144, %c0_145] : memref<1x192xf32, #tpu.memory_space<vmem>>, vector<1x192xf32>
    %715 = vector.broadcast %714 : vector<1x192xf32> to vector<24x192xf32>
    %716 = arith.addf %713, %715 : vector<24x192xf32>
    %cst_146 = arith.constant 0.000000e+00 : f32
    %717 = vector.broadcast %cst_146 : f32 to vector<24x192xf32>
    %718 = arith.maximumf %716, %717 : vector<24x192xf32>
    %c0_147 = arith.constant 0 : index
    %c0_148 = arith.constant 0 : index
    %719 = vector.load %arg19[%c0_147, %c0_148] : memref<192x16xf32, #tpu.memory_space<vmem>>, vector<192x16xf32>
    %cst_149 = arith.constant dense<0.000000e+00> : vector<24x16xf32>
    %720 = tpu.matmul %718, %719, %cst_149 {dimension_numbers = #tpu.dot_dimension_numbers<[1], [0], [0], [1], [0, 0, 1, 1], [], []>} : vector<24x192xf32>, vector<192x16xf32>, vector<24x16xf32> -> vector<24x16xf32>
    %c0_150 = arith.constant 0 : index
    %c0_151 = arith.constant 0 : index
    %721 = vector.load %arg20[%c0_150, %c0_151] : memref<1x16xf32, #tpu.memory_space<vmem>>, vector<1x16xf32>
    %722 = vector.broadcast %721 : vector<1x16xf32> to vector<24x16xf32>
    %723 = arith.addf %720, %722 : vector<24x16xf32>
    %c0_152 = arith.constant 0 : index
    %c0_153 = arith.constant 0 : index
    %724 = vector.load %arg21[%c0_152, %c0_153] : memref<24x16xf32, #tpu.memory_space<vmem>>, vector<24x16xf32>
    tpu.vector_store %arg21[%c0_152, %c0_153], %723 {strides = array<i32>} : memref<24x16xf32, #tpu.memory_space<vmem>>, vector<24x16xf32>,
    return
  }
  func.func @transform_0(%arg0: i32) -> (i32, i32) {
    %c0_i32 = arith.constant 0 : i32
    %c0_i32_0 = arith.constant 0 : i32
    %c0_i32_1 = arith.constant 0 : i32
    return %c0_i32, %c0_i32_0 : i32, i32
  }
  func.func @transform_1(%arg0: i32) -> (i32, i32) {
    %c0_i32 = arith.constant 0 : i32
    %c0_i32_0 = arith.constant 0 : i32
    %c0_i32_1 = arith.constant 0 : i32
    return %c0_i32, %c0_i32_0 : i32, i32
  }
  func.func @transform_2(%arg0: i32) -> (i32, i32) {
    %c0_i32 = arith.constant 0 : i32
    %c0_i32_0 = arith.constant 0 : i32
    %c0_i32_1 = arith.constant 0 : i32
    return %c0_i32, %c0_i32_0 : i32, i32
  }
  func.func @transform_3(%arg0: i32) -> (i32, i32) {
    %c0_i32 = arith.constant 0 : i32
    %c0_i32_0 = arith.constant 0 : i32
    %c0_i32_1 = arith.constant 0 : i32
    return %c0_i32, %c0_i32_0 : i32, i32
  }
  func.func @transform_4(%arg0: i32) -> (i32, i32) {
    %c0_i32 = arith.constant 0 : i32
    %c0_i32_0 = arith.constant 0 : i32
    %c0_i32_1 = arith.constant 0 : i32
    return %c0_i32, %c0_i32_0 : i32, i32
  }
  func.func @transform_5(%arg0: i32) -> (i32, i32) {
    %c0_i32 = arith.constant 0 : i32
    %c0_i32_0 = arith.constant 0 : i32
    %c0_i32_1 = arith.constant 0 : i32
    return %c0_i32, %c0_i32_0 : i32, i32
  }
  func.func @transform_6(%arg0: i32) -> (i32, i32) {
    %c0_i32 = arith.constant 0 : i32
    %c0_i32_0 = arith.constant 0 : i32
    %c0_i32_1 = arith.constant 0 : i32
    return %c0_i32, %c0_i32_0 : i32, i32
  }
  func.func @transform_7(%arg0: i32) -> (i32, i32) {
    %c0_i32 = arith.constant 0 : i32
    %c0_i32_0 = arith.constant 0 : i32
    %c0_i32_1 = arith.constant 0 : i32
    return %c0_i32, %c0_i32_0 : i32, i32
  }
  func.func @transform_8(%arg0: i32) -> (i32, i32) {
    %c0_i32 = arith.constant 0 : i32
    %c0_i32_0 = arith.constant 0 : i32
    %c0_i32_1 = arith.constant 0 : i32
    return %c0_i32, %c0_i32_0 : i32, i32
  }
  func.func @transform_9(%arg0: i32) -> (i32, i32) {
    %c0_i32 = arith.constant 0 : i32
    %c0_i32_0 = arith.constant 0 : i32
    %c0_i32_1 = arith.constant 0 : i32
    return %c0_i32, %c0_i32_0 : i32, i32
  }
  func.func @transform_10(%arg0: i32) -> (i32, i32) {
    %c0_i32 = arith.constant 0 : i32
    %c0_i32_0 = arith.constant 0 : i32
    %c0_i32_1 = arith.constant 0 : i32
    return %c0_i32, %c0_i32_0 : i32, i32
  }
  func.func @transform_11(%arg0: i32) -> (i32, i32) {
    %c0_i32 = arith.constant 0 : i32
    %c0_i32_0 = arith.constant 0 : i32
    %c0_i32_1 = arith.constant 0 : i32
    return %c0_i32, %c0_i32_0 : i32, i32
  }
  func.func @transform_12(%arg0: i32) -> (i32, i32) {
    %c0_i32 = arith.constant 0 : i32
    %c0_i32_0 = arith.constant 0 : i32
    %c0_i32_1 = arith.constant 0 : i32
    return %c0_i32, %c0_i32_0 : i32, i32
  }
  func.func @transform_13(%arg0: i32) -> (i32, i32) {
    %c0_i32 = arith.constant 0 : i32
    %c0_i32_0 = arith.constant 0 : i32
    %c0_i32_1 = arith.constant 0 : i32
    return %c0_i32, %c0_i32_0 : i32, i32
  }
  func.func @transform_14(%arg0: i32) -> (i32, i32) {
    %c0_i32 = arith.constant 0 : i32
    %c0_i32_0 = arith.constant 0 : i32
    %c0_i32_1 = arith.constant 0 : i32
    return %c0_i32, %c0_i32_0 : i32, i32
  }
  func.func @transform_15(%arg0: i32) -> (i32, i32) {
    %c0_i32 = arith.constant 0 : i32
    %c0_i32_0 = arith.constant 0 : i32
    %c0_i32_1 = arith.constant 0 : i32
    return %c0_i32, %c0_i32_0 : i32, i32
  }
  func.func @transform_16(%arg0: i32) -> (i32, i32) {
    %c0_i32 = arith.constant 0 : i32
    %c0_i32_0 = arith.constant 0 : i32
    %c0_i32_1 = arith.constant 0 : i32
    return %c0_i32, %c0_i32_0 : i32, i32
  }
  func.func @transform_17(%arg0: i32) -> (i32, i32) {
    %c0_i32 = arith.constant 0 : i32
    %c0_i32_0 = arith.constant 0 : i32
    %c0_i32_1 = arith.constant 0 : i32
    return %c0_i32, %c0_i32_0 : i32, i32
  }
  func.func @transform_18(%arg0: i32) -> (i32, i32) {
    %c0_i32 = arith.constant 0 : i32
    %c0_i32_0 = arith.constant 0 : i32
    %c0_i32_1 = arith.constant 0 : i32
    return %c0_i32, %c0_i32_0 : i32, i32
  }
  func.func @transform_19(%arg0: i32) -> (i32, i32) {
    %c0_i32 = arith.constant 0 : i32
    %c0_i32_0 = arith.constant 0 : i32
    %c0_i32_1 = arith.constant 0 : i32
    return %c0_i32, %c0_i32_0 : i32, i32
  }
  func.func @transform_20(%arg0: i32) -> (i32, i32) {
    %c0_i32 = arith.constant 0 : i32
    %c0_i32_0 = arith.constant 0 : i32
    %c0_i32_1 = arith.constant 0 : i32
    return %c0_i32, %c0_i32_0 : i32, i32
  }
}

</mosaic_0001>

<bundles_post_ra>
// kernel: encoder_decoder_forward.1
= control target key start
LH: loop header
LB: loop body
LE: loop exit
PB: predicated region body
PF: predicated region fallthrough
CT: control target
= control target key end

     0   :  { %s5531_s0 = inlined_call_operand.vmem [shape: f32[32,6], index: 0, kind: input, shape index: {}]   ;;  %s5532_s1 = inlined_call_operand.vmem [shape: f32[24,8], index: 1, kind: input, shape index: {}]   ;;  %s5533_s2 = inlined_call_operand.vmem [shape: f32[6,96], index: 2, kind: input, shape index: {}]   ;;  %s5534_s3 = inlined_call_operand.vmem [shape: f32[32,96], index: 3, kind: input, shape index: {}]   ;;  %s5535_s4 = inlined_call_operand.vmem [shape: f32[1,96], index: 4, kind: input, shape index: {}]   ;;  %s5536_s5 = inlined_call_operand.vmem [shape: f32[1,96], index: 5, kind: input, shape index: {}]   ;;  %s5537_s6 = inlined_call_operand.vmem [shape: f32[32,96], index: 6, kind: input, shape index: {}]   ;;  %s5538_s7 = inlined_call_operand.vmem [shape: f32[32,96], index: 7, kind: input, shape index: {}]   ;;  %s5539_s8 = inlined_call_operand.vmem [shape: f32[1,96], index: 8, kind: input, shape index: {}]   ;;  %s5540_s9 = inlined_call_operand.vmem [shape: f32[1,96], index: 9, kind: input, shape index: {}]   ;;  %s5541_s10 = inlined_call_operand.vmem [shape: f32[8,96], index: 10, kind: input, shape index: {}]   ;;  %s5542_s11 = inlined_call_operand.vmem [shape: f32[32,96], index: 11, kind: input, shape index: {}]   ;;  %s5543_s12 = inlined_call_operand.vmem [shape: f32[1,96], index: 12, kind: input, shape index: {}]   ;;  %s5544_s13 = inlined_call_operand.vmem [shape: f32[1,96], index: 13, kind: input, shape index: {}]   ;;  %s5545_s14 = inlined_call_operand.vmem [shape: f32[32,128], index: 14, kind: input, shape index: {}]   ;;  %s5546_s15 = inlined_call_operand.vmem [shape: f32[1,128], index: 15, kind: input, shape index: {}]   ;;  %s5547_s16 = inlined_call_operand.vmem [shape: f32[128,192], index: 16, kind: input, shape index: {}]   ;;  %s5548_s17 = inlined_call_operand.vmem [shape: f32[1,192], index: 17, kind: input, shape index: {}]   ;;  %s5549_s18 = inlined_call_operand.vmem [shape: f32[192,16], index: 18, kind: input, shape index: {}]   ;;  %s5550_s19 = inlined_call_operand.vmem [shape: f32[1,16], index: 19, kind: input, shape index: {}]   ;;  %s5551_s20 = inlined_call_operand.hbm [shape: f32[24,16], index: 20, kind: output, shape index: {}]  }
   0x1   :  { %5555 = sst [smem:[#allocation6_spill]] %s5531_s0 }
   0x2   :  { %5556 = sst [smem:[#allocation7_spill]] %s5532_s1 }
   0x3   :  { %5557 = sst [smem:[#allocation8_spill]] %s5533_s2 }
   0x4   :  { %5558 = sst [smem:[#allocation9_spill]] %s5534_s3 }
   0x5   :  { %5559 = sst [smem:[#allocation10_spill]] %s5535_s4 }
   0x6   :  { %v183_v0 = vld [vmem:[%s5541_s10] sm:$0xff]  ;;  %s5560_s2 = sld [smem:[#allocation7_spill]]  ;;  %vm191_vm0 = vcmask 64512   ;;  %v4572_v2 = vmov 0.0   ;;  %vm4573_vm1 = vmmov 0   ;;  %s5561_s26 = sld [smem:[#allocation9_spill]] }
   0x7   :  { %3792 = vmatprep.subr.mxu1 %v4572_v2  ;;  %3794 = vmatprep.mubr.msk.f32.mxu1 %vm4573_vm1, %v4572_v2  ;;  %vm91_vm2 = vcmask 1045504   ;;  %v4574_v8 = vmov 0.0|0.0   ;;  %s5562_s1 = sld [smem:[#allocation8_spill]]  ;;  %s5563_s24 = sld [smem:[#allocation6_spill]]  ;;  %vm78_vm3 = vcmask 48128  }
   0x8   :  { %3793 = vmatpush3.msra.mxu1 %v183_v0 }
   0x9   :  { %4150 = vmatprep.subr.bf16.mxu1 %v4574_v8 }
   0xc   :  { %v180_v1 = vld [vmem:[%s5560_s2] sm:$0xff]  ;;  %v282_v4 = vld [vmem:[%s5561_s26 + $0x8] sm:$0xff]  ;;  %v283_v6 = vld [vmem:[%s5561_s26 + $0x10] sm:$0xff] }
   0xd   :  { %v281_v3 = vld [vmem:[%s5561_s26] sm:$0xff]  ;;  %v284_v7 = vld [vmem:[%s5561_s26 + $0x18] sm:$0xff]  ;;  %3795 = vmatmul.mubr.msk.f32.vlgmr.msra.gmra.mrb[0].mxu1 %vm191_vm0, %v180_v1  ;;  %v181_v11 = vld [vmem:[%s5560_s2 + $0x8] sm:$0xff] }
   0xe   :  { %v4700_v5 = vpack.c.bf16 %v282_v4, %v281_v3  ;;  %v70_v9 = vld [vmem:[%s5562_s1] sm:$0x3f]  ;;  %3797 = vmatprep.mubr.msk.f32.mxu1 %vm4573_vm1, %v4572_v2  ;;  %v4722_v12 = vpack.c.bf16 %v284_v7, %v283_v6  ;;  %v67_v13 = vld [vmem:[%s5563_s24 + $0x8] sm:$0xff] }
   0xf   :  { %v66_v10 = vld [vmem:[%s5563_s24] sm:$0xff] }
  0x10   :  { %4152 = vmatpush3.bf16.msra.mxu1 %v4700_v5 }
  0x11   :  { %25 = vsyncpa [#allocation4], 0  ;;  %4153 = vmatprep.subr.bf16.mxu1 %v4574_v8  ;;  %3784 = vmatprep.subr.msk.mxu0 %vm91_vm2, %v70_v9  ;;  %v182_v14 = vld [vmem:[%s5560_s2 + $0x10] sm:$0xff]  ;;  %v3552_v17 = vld [vmem:[%s5543_s12] ss:$0 sm:$0xff]  ;;  %s4575_s0 = smov 64  }
  0x12   :  { %3785 = vmatpush3.msk.msra.mxu0 %vm91_vm2, %v70_v9  ;;  %3786 = vmatprep.mubr.msk.f32.mxu0 %vm78_vm3, %v66_v10  ;;  %v4759_v26 = vld [vmem:[%s5536_s5] ss:$0 sm:$0xff]  ;;  %s5564_s22 = sld [smem:[#allocation10_spill]]  ;;  %v292_v42 = vld [vmem:[%s5538_s7 + $0x8] sm:$0xff]  ;;  %v68_v43 = vld [vmem:[%s5563_s24 + $0x10] sm:$0xff]  ;;  %s4576_s27 = smov 96  }
  0x13   :  { %3798 = vmatmul.mubr.msk.f32.gmra.mrb[2].mxu1 %vm191_vm0, %v181_v11  ;;  %3787 = vmatmul.mubr.msk.f32.vlgmr.msra.gmra.mrb[0].mxu0 %vm78_vm3, %v67_v13  ;;  %v291_v41 = vld [vmem:[%s5538_s7] sm:$0xff]  ;;  %v69_v45 = vld [vmem:[%s5563_s24 + $0x18] sm:$0xff]  ;;  %v293_v46 = vld [vmem:[%s5538_s7 + $0x10] sm:$0xff]  ;;  %vm307_vm4 = vcmask 261120   ;;  %vm2628_vm5 = vcmask 257024   ;;  %vm2736_vm6 = vcmask 261124  }
  0x14   :  { %3800 = vmatprep.mubr.msk.f32.mxu1 %vm4573_vm1, %v4572_v2  ;;  %4155 = vmatpush3.bf16.msra.mxu1 %v4722_v12  ;;  %v4783_v44 = vpack.c.bf16 %v292_v42, %v291_v41  ;;  %v294_v47 = vld [vmem:[%s5538_s7 + $0x18] sm:$0xff]  ;;  %v286_v48 = vld [vmem:[%s5537_s6] sm:$0xff]  ;;  %v287_v49 = vld [vmem:[%s5537_s6 + $0x8] sm:$0xff]  ;;  %vm3436_vm7 = vcmask 523264   ;;  %vm3526_vm8 = vcmask 130048  }
  0x15   :  { %4162 = vmatprep.subr.bf16.mxu0 %v4574_v8  ;;  %4156 = vmatprep.subr.bf16.mxu1 %v4574_v8  ;;  %v288_v50 = vld [vmem:[%s5537_s6 + $0x10] sm:$0xff]  ;;  %v4806_v51 = vpack.c.bf16 %v294_v47, %v293_v46  ;;  %v4810_v52 = vpack.c.bf16 %v287_v49, %v286_v48  ;;  %v289_v53 = vld [vmem:[%s5537_s6 + $0x18] sm:$0xff]  ;;  %v4843_v63 = vld [vmem:[%s5540_s9] ss:$0 sm:$0xff] }
  0x16   :  { %3789 = vmatprep.mubr.msk.f32.mxu0 %vm78_vm3, %v68_v43  ;;  %4164 = vmatpush3.bf16.msra.mxu0 %v4783_v44  ;;  %v4817_v54 = vpack.c.bf16 %v289_v53, %v288_v50  ;;  %v4864_v6 = vld [vmem:[%s5539_s8] ss:$0 sm:$0xff] }
  0x17   :  { %3801 = vmatmul.mubr.msk.f32.gmra.mrb[4].mxu1 %vm191_vm0, %v182_v14  ;;  %3790 = vmatmul.mubr.msk.f32.gmra.mrb[2].mxu0 %vm78_vm3, %v69_v45 }
  0x18   :  { %3811 = vmatprep.mubr.msk.f32.mxu1 %vm4573_vm1, %v4572_v2  ;;  %v4766_v30 = vld [vmem:[%s5564_s22] ss:$0 sm:$0xff]  ;;  %3833 = vmatprep.mubr.msk.f32.mxu0 %vm4573_vm1, %v4572_v2 }
  0x19   :  { %4165 = vmatprep.subr.bf16.mxu0 %v4574_v8 }
  0x1a   :  { %4167 = vmatpush3.bf16.msra.mxu0 %v4806_v51 }
  0x1b   :  { %3812 = vmatmul.mubr.f32.vlgmr.msra.gmra.mrb[6].mxu1 %v4572_v2  ;;  %4174 = vmatprep.subr.bf16.mxu0 %v4574_v8 }
  0x1c   :  { %3822 = vmatprep.mubr.msk.f32.mxu1 %vm4573_vm1, %v4572_v2  ;;  %4158 = vmatpush3.bf16.msra.mxu1 %v4810_v52 }
  0x1d   :  { %4159 = vmatprep.subr.bf16.mxu1 %v4574_v8  ;;  %3834 = vmatmul.mubr.f32.vlgmr.msra.gmra.mrb[4].mxu0 %v4572_v2 }
  0x1e   :  { %4176 = vmatpush3.bf16.msra.mxu0 %v4810_v52  ;;  %3855 = vmatprep.mubr.msk.f32.mxu0 %vm4573_vm1, %v4572_v2 }
  0x1f   :  { %4177 = vmatprep.subr.bf16.mxu0 %v4574_v8 }
  0x20   :  { %4161 = vmatpush3.bf16.msra.mxu1 %v4817_v54 }
  0x21   :  { %4168 = vmatprep.subr.bf16.mxu1 %v4574_v8 }
  0x22   :  { %4179 = vmatpush3.bf16.msra.mxu0 %v4817_v54 }
  0x23   :  { %4186 = vmatprep.subr.bf16.mxu0 %v4574_v8 }
  0xe0   :  { %v4745_v15 = vpop.f32.mrb[0].mxu1 }
  0xe1   :  { %v3796_v16 = vpop.f32.mrb[1].mxu1 }
  0xe6   :  { %v272_v18 = vpop.f32.mrb[2].mxu1  ;;  %v4750_v19 = vpop.f32.mrb[0].mxu0 }
  0xe7   :  { %v4752_v20 = vadd.f32 %v3552_v17, %v272_v18  ;;  %v3799_v21 = vpop.f32.mrb[3].mxu1  ;;  %v161_v22 = vpop.f32.mrb[1].mxu0 }
  0xe8   :  { %v4769_v31 = vadd.f32 %v4766_v30, %v161_v22 }
  0xea   :  { %v277_v23 = vpop.f32.mrb[4].mxu1  ;;  %v4836_v61 = vpop.f32.mrb[2].mxu0 }
  0xeb   :  { %v4754_v24 = vadd.f32 %v3552_v17, %v277_v23  ;;  %v3802_v25 = vpop.f32.mrb[5].mxu1  ;;  %v4838_v62 = vpop.f32.mrb[3].mxu0 }
  0xee   :  { %v377_v27 = vpop.f32.mrb[6].mxu1 }
  0xef   :  { %v378_v28 = vadd.f32 %v4759_v26, %v377_v27  ;;  %v3813_v29 = vpop.f32.mrb[7].mxu1 }
  0xf0   :  { %v560_v0 = vpop.f32.mrb[4].mxu0 }
  0xf1   :  { %389 = vrot.lane.b32.xlu0 %v378_v28, %s4575_s0  ;;  %v381_v32 = vadd.f32 %v378_v28, %v4769_v31  ;;  %v561_v1 = vadd.f32 %v4843_v63, %v560_v0  ;;  %v3835_v3 = vpop.f32.mrb[5].mxu0 }
  0xf3   :  { %v3557_v33 = vmul.f32 -1.442695, %v381_v32 }
  0xf5   :  { %4412 = vpow2.f32 %v3557_v33 }
  0xff   :  { %v4413_v34 = vpop.eup %4412 }
 0x100   :  { %v385_v35 = vadd.f32 1.0, %v4413_v34 }
 0x102   :  { %4414 = vrcp.f32 %v385_v35 }
 0x10c   :  { %v4415_v36 = vpop.eup %4414 }
 0x10d   :  { %v399_v56 = vsub.f32 1.0, %v4415_v36  ;;  %v405_v58 = vmul.f32 0.0, %v4415_v36 }
 0x163   :  { %v390_v37 = vpop.permute.xlu0 %389 }
 0x164   :  { %v392_v38 = vmul.f32 %v4415_v36, %v390_v37 }
 0x166   :  { %394 = vrot.lane.b32.xlu0 %v392_v38, %s4575_s0 }
 0x1d8   :  { %v395_v39 = vpop.permute.xlu0 %394 }
 0x1d9   :  { %v397_v40 = vadd.f32 %v395_v39, %v4769_v31 }
 0x1db   :  { %4416 = vtanh.f32 %v397_v40 }
 0x1e5   :  { %v4417_v55 = vpop.eup %4416 }
 0x1e6   :  { %401 = vrot.lane.b32.xlu1 %v4417_v55, %s4576_s27 }
 0x258   :  { %v402_v57 = vpop.permute.xlu1 %401 }
 0x259   :  { %v404_v59 = vmul.f32 %v402_v57, %v399_v56 }
 0x25b   :  { %v4832_v60 = vadd.f32 %v405_v58, %v404_v59 }
 0x25d   :  { %414 = vrot.lane.b32.xlu1 %v4832_v60, %s4576_s27  ;;  %v686_v49 = vrot.slane %v4832_v60, 4 }
 0x261   :  { %572 = vrot.lane.b32.xlu1 %v561_v1, %s4575_s0 }
 0x2cf   :  { %v415_v4 = vpop.permute.xlu1 %414 }
 0x2d0   :  { %3823 = vmatmul.mubr.msk.f32.vlgmr.msra.gmra.mrb[8].mxu1 %vm307_vm4, %v415_v4 }
 0x2d1   :  { %4170 = vmatpush3.bf16.msra.mxu1 %v4700_v5  ;;  %3844 = vmatprep.mubr.msk.f32.mxu1 %vm4573_vm1, %v4572_v2 }
 0x2d2   :  { %4171 = vmatprep.subr.bf16.mxu1 %v4574_v8 }
 0x2d3   :  { %v573_v23 = vpop.permute.xlu1 %572 }
 0x2d5   :  { %4173 = vmatpush3.bf16.msra.mxu1 %v4722_v12 }
 0x2d6   :  { %4180 = vmatprep.subr.bf16.mxu1 %v4574_v8 }
 0x2d8   :  { %3845 = vmatmul.mubr.msk.f32.vlgmr.msra.gmra.mrb[10].mxu1 %vm307_vm4, %v415_v4 }
 0x2d9   :  { %4182 = vmatpush3.bf16.msra.mxu1 %v4783_v44  ;;  %3866 = vmatprep.mubr.msk.f32.mxu1 %vm4573_vm1, %v4572_v2 }
 0x2da   :  { %4183 = vmatprep.subr.bf16.mxu1 %v4574_v8 }
 0x2dd   :  { %4185 = vmatpush3.bf16.msra.mxu1 %v4806_v51 }
 0x2de   :  { %4192 = vmatprep.subr.bf16.mxu1 %v4574_v8 }
 0x3a3   :  { %v484_v7 = vpop.f32.mrb[8].mxu1 }
 0x3a4   :  { %v485_v9 = vadd.f32 %v4864_v6, %v484_v7  ;;  %v3824_v10 = vpop.f32.mrb[9].mxu1 }
 0x3a6   :  { %v564_v11 = vadd.f32 %v561_v1, %v485_v9 }
 0x3a8   :  { %v3561_v13 = vmul.f32 -1.442695, %v564_v11 }
 0x3aa   :  { %4418 = vpow2.f32 %v3561_v13 }
 0x3ab   :  { %v656_v14 = vpop.f32.mrb[10].mxu1 }
 0x3ac   :  { %v657_v16 = vadd.f32 %v4759_v26, %v656_v14  ;;  %v3846_v17 = vpop.f32.mrb[11].mxu1 }
 0x3ae   :  { %v661_v18 = vrot.slane %v657_v16, 4 }
 0x3b0   :  { %670 = vrot.lane.b32.xlu0 %v661_v18, %s4575_s0  ;;  %v663_v28 = vadd.f32 %v661_v18, %v4769_v31 }
 0x3b2   :  { %v3563_v29 = vmul.f32 -1.442695, %v663_v28 }
 0x3b4   :  { %v4419_v21 = vpop.eup %4418 }
 0x3b5   :  { %v568_v22 = vadd.f32 1.0, %v4419_v21 }
 0x3b7   :  { %4420 = vrcp.f32 %v568_v22 }
 0x3b8   :  { %4422 = vpow2.f32 %v3563_v29 }
 0x3c1   :  { %v4421_v25 = vpop.eup %4420 }
 0x3c2   :  { %v575_v27 = vmul.f32 %v4421_v25, %v573_v23  ;;  %v4423_v32 = vpop.eup %4422  ;;  %v582_v43 = vsub.f32 1.0, %v4421_v25  ;;  %v588_v46 = vmul.f32 0.0, %v4421_v25  ;;  %v4915_v23 = vadd.f32 %v4750_v19, %v4766_v30 }
 0x3c3   :  { %v667_v33 = vadd.f32 1.0, %v4423_v32 }
 0x3c4   :  { %577 = vrot.lane.b32.xlu1 %v575_v27, %s4575_s0 }
 0x3c5   :  { %4424 = vrcp.f32 %v667_v33 }
 0x3cf   :  { %v4425_v34 = vpop.eup %4424 }
 0x3d0   :  { %v680_v50 = vsub.f32 1.0, %v4425_v34  ;;  %v688_v56 = vmul.f32 %v4425_v34, %v686_v49 }
 0x422   :  { %v671_v35 = vpop.permute.xlu0 %670 }
 0x423   :  { %v673_v36 = vmul.f32 %v4425_v34, %v671_v35 }
 0x425   :  { %675 = vrot.lane.b32.xlu0 %v673_v36, %s4575_s0 }
 0x436   :  { %v578_v37 = vpop.permute.xlu1 %577 }
 0x437   :  { %v580_v38 = vadd.f32 %v578_v37, %v485_v9 }
 0x439   :  { %4426 = vtanh.f32 %v580_v38 }
 0x443   :  { %v4427_v39 = vpop.eup %4426 }
 0x444   :  { %584 = vrot.lane.b32.xlu1 %v4427_v39, %s4576_s27 }
 0x497   :  { %v676_v40 = vpop.permute.xlu0 %675 }
 0x498   :  { %v678_v41 = vadd.f32 %v676_v40, %v4769_v31 }
 0x49a   :  { %4428 = vtanh.f32 %v678_v41 }
 0x4a4   :  { %v4429_v42 = vpop.eup %4428 }
 0x4a5   :  { %682 = vrot.lane.b32.xlu0 %v4429_v42, %s4576_s27 }
 0x4b6   :  { %v585_v45 = vpop.permute.xlu1 %584 }
 0x4b7   :  { %v587_v47 = vmul.f32 %v585_v45, %v582_v43 }
 0x4b9   :  { %v4875_v48 = vadd.f32 %v588_v46, %v587_v47 }
 0x4bb   :  { %767 = vrot.lane.b32.xlu1 %v4875_v48, %s4576_s27 }
 0x517   :  { %v683_v53 = vpop.permute.xlu0 %682 }
 0x518   :  { %v685_v55 = vmul.f32 %v683_v53, %v680_v50 }
 0x51a   :  { %v4880_v31 = vadd.f32 %v688_v56, %v685_v55 }
 0x51c   :  { %v691_v57 = vrot.slane %v4880_v31, 4 }
 0x51e   :  { %692 = vrot.lane.b32.xlu0 %v691_v57, %s4576_s27 }
 0x52d   :  { %v768_v58 = vpop.permute.xlu1 %767 }
 0x52e   :  { %3867 = vmatmul.mubr.msk.f32.vlgmr.msra.gmra.mrb[12].mxu1 %vm307_vm4, %v768_v58 }
 0x52f   :  { %4194 = vmatpush3.bf16.msra.mxu1 %v4810_v52  ;;  %3888 = vmatprep.mubr.msk.f32.mxu1 %vm4573_vm1, %v4572_v2 }
 0x530   :  { %4195 = vmatprep.subr.bf16.mxu1 %v4574_v8 }
 0x533   :  { %4197 = vmatpush3.bf16.msra.mxu1 %v4817_v54 }
 0x534   :  { %4204 = vmatprep.subr.bf16.mxu1 %v4574_v8 }
 0x590   :  { %v693_v59 = vpop.permute.xlu0 %692 }
 0x591   :  { %3856 = vmatmul.mubr.msk.f32.vlgmr.msra.gmra.mrb[6].mxu0 %vm307_vm4, %v693_v59 }
 0x592   :  { %4188 = vmatpush3.bf16.msra.mxu0 %v4700_v5  ;;  %3877 = vmatprep.mubr.msk.f32.mxu0 %vm4573_vm1, %v4572_v2 }
 0x593   :  { %4189 = vmatprep.subr.bf16.mxu0 %v4574_v8 }
 0x596   :  { %4191 = vmatpush3.bf16.msra.mxu0 %v4722_v12 }
 0x597   :  { %4198 = vmatprep.subr.bf16.mxu0 %v4574_v8 }
 0x599   :  { %3878 = vmatmul.mubr.msk.f32.vlgmr.msra.gmra.mrb[8].mxu0 %vm307_vm4, %v693_v59 }
 0x59a   :  { %4200 = vmatpush3.bf16.msra.mxu0 %v4783_v44  ;;  %3899 = vmatprep.mubr.msk.f32.mxu0 %vm4573_vm1, %v4572_v2 }
 0x59b   :  { %4201 = vmatprep.subr.bf16.mxu0 %v4574_v8 }
 0x59e   :  { %4203 = vmatpush3.bf16.msra.mxu0 %v4806_v51 }
 0x59f   :  { %4210 = vmatprep.subr.bf16.mxu0 %v4574_v8 }
 0x601   :  { %v837_v60 = vpop.f32.mrb[12].mxu1 }
 0x602   :  { %v838_v0 = vadd.f32 %v4843_v63, %v837_v60  ;;  %v3868_v1 = vpop.f32.mrb[13].mxu1 }
 0x604   :  { %849 = vrot.lane.b32.xlu1 %v838_v0, %s4575_s0 }
 0x664   :  { %v762_v3 = vpop.f32.mrb[6].mxu0 }
 0x665   :  { %v763_v4 = vadd.f32 %v4864_v6, %v762_v3  ;;  %v3857_v7 = vpop.f32.mrb[7].mxu0 }
 0x667   :  { %v841_v9 = vadd.f32 %v838_v0, %v763_v4 }
 0x669   :  { %v3566_v10 = vmul.f32 -1.442695, %v841_v9 }
 0x66b   :  { %4430 = vpow2.f32 %v3566_v10 }
 0x66c   :  { %v933_v11 = vpop.f32.mrb[8].mxu0 }
 0x66d   :  { %v934_v13 = vadd.f32 %v4759_v26, %v933_v11  ;;  %v3879_v14 = vpop.f32.mrb[9].mxu0 }
 0x66f   :  { %945 = vrot.lane.b32.xlu0 %v934_v13, %s4575_s0  ;;  %v937_v25 = vadd.f32 %v934_v13, %v4915_v23 }
 0x671   :  { %v3568_v27 = vmul.f32 -1.442695, %v937_v25 }
 0x675   :  { %v4431_v16 = vpop.eup %4430 }
 0x676   :  { %v845_v17 = vadd.f32 1.0, %v4431_v16  ;;  %v850_v21 = vpop.permute.xlu1 %849 }
 0x678   :  { %4432 = vrcp.f32 %v845_v17 }
 0x679   :  { %4434 = vpow2.f32 %v3568_v27 }
 0x682   :  { %v4433_v18 = vpop.eup %4432 }
 0x683   :  { %v852_v22 = vmul.f32 %v4433_v18, %v850_v21  ;;  %v4435_v28 = vpop.eup %4434  ;;  %v859_v40 = vsub.f32 1.0, %v4433_v18  ;;  %v865_v42 = vmul.f32 %v4433_v18, %v4875_v48 }
 0x684   :  { %v941_v29 = vadd.f32 1.0, %v4435_v28 }
 0x685   :  { %854 = vrot.lane.b32.xlu1 %v852_v22, %s4575_s0 }
 0x686   :  { %4436 = vrcp.f32 %v941_v29 }
 0x690   :  { %v4437_v32 = vpop.eup %4436 }
 0x691   :  { %v955_v46 = vsub.f32 1.0, %v4437_v32  ;;  %v962_v49 = vmul.f32 %v4437_v32, %v691_v57 }
 0x6e1   :  { %v946_v33 = vpop.permute.xlu0 %945 }
 0x6e2   :  { %v948_v34 = vmul.f32 %v4437_v32, %v946_v33 }
 0x6e4   :  { %950 = vrot.lane.b32.xlu0 %v948_v34, %s4575_s0 }
 0x6f7   :  { %v855_v35 = vpop.permute.xlu1 %854 }
 0x6f8   :  { %v857_v36 = vadd.f32 %v855_v35, %v763_v4 }
 0x6fa   :  { %4438 = vtanh.f32 %v857_v36 }
 0x704   :  { %v4439_v37 = vpop.eup %4438 }
 0x705   :  { %861 = vrot.lane.b32.xlu1 %v4439_v37, %s4576_s27 }
 0x756   :  { %v951_v19 = vpop.permute.xlu0 %950 }
 0x757   :  { %v953_v38 = vadd.f32 %v951_v19, %v4915_v23 }
 0x759   :  { %4440 = vtanh.f32 %v953_v38 }
 0x763   :  { %v4441_v39 = vpop.eup %4440 }
 0x764   :  { %957 = vrot.lane.b32.xlu0 %v4441_v39, %s4576_s27 }
 0x777   :  { %v862_v41 = vpop.permute.xlu1 %861 }
 0x778   :  { %v864_v43 = vmul.f32 %v862_v41, %v859_v40 }
 0x77a   :  { %v4923_v45 = vadd.f32 %v865_v42, %v864_v43 }
 0x77c   :  { %1040 = vrot.lane.b32.xlu1 %v4923_v45, %s4576_s27 }
 0x7d6   :  { %v958_v47 = vpop.permute.xlu0 %957 }
 0x7d7   :  { %v960_v50 = vmul.f32 %v958_v47, %v955_v46 }
 0x7d9   :  { %v4929_v53 = vadd.f32 %v962_v49, %v960_v50 }
 0x7db   :  { %965 = vrot.lane.b32.xlu0 %v4929_v53, %s4576_s27  ;;  %v1236_v41 = vrot.slane %v4929_v53, 4 }
 0x7ee   :  { %v1041_v55 = vpop.permute.xlu1 %1040 }
 0x7ef   :  { %3900 = vmatmul.mubr.msk.f32.vlgmr.msra.gmra.mrb[10].mxu0 %vm307_vm4, %v1041_v55 }
 0x7f0   :  { %4212 = vmatpush3.bf16.msra.mxu0 %v4810_v52  ;;  %3921 = vmatprep.mubr.msk.f32.mxu0 %vm4573_vm1, %v4572_v2 }
 0x7f1   :  { %4213 = vmatprep.subr.bf16.mxu0 %v4574_v8 }
 0x7f4   :  { %4215 = vmatpush3.bf16.msra.mxu0 %v4817_v54 }
 0x7f5   :  { %4222 = vmatprep.subr.bf16.mxu0 %v4574_v8 }
 0x84d   :  { %v966_v48 = vpop.permute.xlu0 %965 }
 0x84e   :  { %3889 = vmatmul.mubr.msk.f32.vlgmr.msra.gmra.mrb[14].mxu1 %vm307_vm4, %v966_v48 }
 0x84f   :  { %4206 = vmatpush3.bf16.msra.mxu1 %v4700_v5  ;;  %3910 = vmatprep.mubr.msk.f32.mxu1 %vm4573_vm1, %v4572_v2 }
 0x850   :  { %4207 = vmatprep.subr.bf16.mxu1 %v4574_v8 }
 0x853   :  { %4209 = vmatpush3.bf16.msra.mxu1 %v4722_v12 }
 0x854   :  { %4216 = vmatprep.subr.bf16.mxu1 %v4574_v8 }
 0x856   :  { %3911 = vmatmul.mubr.msk.f32.vlgmr.msra.gmra.mrb[16].mxu1 %vm307_vm4, %v966_v48 }
 0x857   :  { %4218 = vmatpush3.bf16.msra.mxu1 %v4783_v44  ;;  %3932 = vmatprep.mubr.msk.f32.mxu1 %vm4573_vm1, %v4572_v2 }
 0x858   :  { %4219 = vmatprep.subr.bf16.mxu1 %v4574_v8 }
 0x85b   :  { %4221 = vmatpush3.bf16.msra.mxu1 %v4806_v51 }
 0x85c   :  { %4228 = vmatprep.subr.bf16.mxu1 %v4574_v8 }
 0x8c2   :  { %v1110_v56 = vpop.f32.mrb[10].mxu0 }
 0x8c3   :  { %v1111_v31 = vadd.f32 %v4843_v63, %v1110_v56  ;;  %v3901_v57 = vpop.f32.mrb[11].mxu0 }
 0x8c5   :  { %1122 = vrot.lane.b32.xlu1 %v1111_v31, %s4575_s0 }
 0x921   :  { %v1035_v58 = vpop.f32.mrb[14].mxu1 }
 0x922   :  { %v1036_v59 = vadd.f32 %v4864_v6, %v1035_v58  ;;  %v3890_v60 = vpop.f32.mrb[15].mxu1 }
 0x924   :  { %v1114_v0 = vadd.f32 %v1111_v31, %v1036_v59 }
 0x926   :  { %v3571_v1 = vmul.f32 -1.442695, %v1114_v0 }
 0x928   :  { %4442 = vpow2.f32 %v3571_v1 }
 0x929   :  { %v1206_v3 = vpop.f32.mrb[16].mxu1 }
 0x92a   :  { %v1207_v4 = vadd.f32 %v4759_v26, %v1206_v3  ;;  %v3912_v7 = vpop.f32.mrb[17].mxu1 }
 0x92c   :  { %v1211_v9 = vrot.slane %v1207_v4, 4 }
 0x92e   :  { %1220 = vrot.lane.b32.xlu0 %v1211_v9, %s4575_s0  ;;  %v1213_v17 = vadd.f32 %v1211_v9, %v4915_v23 }
 0x930   :  { %v3573_v18 = vmul.f32 -1.442695, %v1213_v17 }
 0x932   :  { %v4443_v10 = vpop.eup %4442 }
 0x933   :  { %v1118_v11 = vadd.f32 1.0, %v4443_v10 }
 0x935   :  { %4444 = vrcp.f32 %v1118_v11  ;;  %v5006_v11 = vadd.f32 %v4766_v30, %v4838_v62 }
 0x936   :  { %4446 = vpow2.f32 %v3573_v18 }
 0x937   :  { %v1123_v14 = vpop.permute.xlu1 %1122 }
 0x93f   :  { %v4445_v13 = vpop.eup %4444 }
 0x940   :  { %v1125_v16 = vmul.f32 %v4445_v13, %v1123_v14  ;;  %v4447_v21 = vpop.eup %4446  ;;  %v1132_v37 = vsub.f32 1.0, %v4445_v13  ;;  %v1138_v38 = vmul.f32 %v4445_v13, %v4923_v45 }
 0x941   :  { %v1217_v22 = vadd.f32 1.0, %v4447_v21 }
 0x942   :  { %1127 = vrot.lane.b32.xlu1 %v1125_v16, %s4575_s0 }
 0x943   :  { %4448 = vrcp.f32 %v1217_v22 }
 0x94d   :  { %v4449_v25 = vpop.eup %4448 }
 0x94e   :  { %v1230_v42 = vsub.f32 1.0, %v4449_v25 }
 0x9a0   :  { %v1221_v27 = vpop.permute.xlu0 %1220 }
 0x9a1   :  { %v1223_v28 = vmul.f32 %v4449_v25, %v1221_v27 }
 0x9a3   :  { %1225 = vrot.lane.b32.xlu0 %v1223_v28, %s4575_s0 }
 0x9b4   :  { %v1128_v29 = vpop.permute.xlu1 %1127 }
 0x9b5   :  { %v1130_v32 = vadd.f32 %v1128_v29, %v1036_v59 }
 0x9b7   :  { %4450 = vtanh.f32 %v1130_v32 }
 0x9c1   :  { %v4451_v33 = vpop.eup %4450 }
 0x9c2   :  { %1134 = vrot.lane.b32.xlu1 %v4451_v33, %s4576_s27 }
 0xa15   :  { %v1226_v34 = vpop.permute.xlu0 %1225 }
 0xa16   :  { %v1228_v35 = vadd.f32 %v1226_v34, %v4915_v23  ;;  %v1238_v23 = vmul.f32 %v4449_v25, %v1236_v41 }
 0xa18   :  { %4452 = vtanh.f32 %v1228_v35 }
 0xa22   :  { %v4453_v36 = vpop.eup %4452 }
 0xa23   :  { %1232 = vrot.lane.b32.xlu0 %v4453_v36, %s4576_s27 }
 0xa34   :  { %v1135_v19 = vpop.permute.xlu1 %1134 }
 0xa35   :  { %v1137_v39 = vmul.f32 %v1135_v19, %v1132_v37 }
 0xa37   :  { %v4966_v40 = vadd.f32 %v1138_v38, %v1137_v39 }
 0xa39   :  { %1317 = vrot.lane.b32.xlu1 %v4966_v40, %s4576_s27 }
 0xa95   :  { %v1233_v43 = vpop.permute.xlu0 %1232 }
 0xa96   :  { %v1235_v46 = vmul.f32 %v1233_v43, %v1230_v42 }
 0xa98   :  { %v4971_v47 = vadd.f32 %v1238_v23, %v1235_v46 }
 0xa9a   :  { %v1241_v49 = vrot.slane %v4971_v47, 4 }
 0xa9c   :  { %1242 = vrot.lane.b32.xlu0 %v1241_v49, %s4576_s27 }
 0xaab   :  { %v1318_v45 = vpop.permute.xlu1 %1317 }
 0xaac   :  { %3933 = vmatmul.mubr.msk.f32.vlgmr.msra.gmra.mrb[18].mxu1 %vm307_vm4, %v1318_v45 }
 0xaad   :  { %4230 = vmatpush3.bf16.msra.mxu1 %v4810_v52  ;;  %3954 = vmatprep.mubr.msk.f32.mxu1 %vm4573_vm1, %v4572_v2 }
 0xaae   :  { %4231 = vmatprep.subr.bf16.mxu1 %v4574_v8 }
 0xab1   :  { %4233 = vmatpush3.bf16.msra.mxu1 %v4817_v54 }
 0xab2   :  { %4240 = vmatprep.subr.bf16.mxu1 %v4574_v8 }
 0xb0e   :  { %v1243_v50 = vpop.permute.xlu0 %1242 }
 0xb0f   :  { %3922 = vmatmul.mubr.msk.f32.vlgmr.msra.gmra.mrb[12].mxu0 %vm307_vm4, %v1243_v50 }
 0xb10   :  { %4224 = vmatpush3.bf16.msra.mxu0 %v4700_v5  ;;  %3943 = vmatprep.mubr.msk.f32.mxu0 %vm4573_vm1, %v4572_v2 }
 0xb11   :  { %4225 = vmatprep.subr.bf16.mxu0 %v4574_v8 }
 0xb14   :  { %4227 = vmatpush3.bf16.msra.mxu0 %v4722_v12 }
 0xb15   :  { %4234 = vmatprep.subr.bf16.mxu0 %v4574_v8 }
 0xb17   :  { %3944 = vmatmul.mubr.msk.f32.vlgmr.msra.gmra.mrb[14].mxu0 %vm307_vm4, %v1243_v50 }
 0xb18   :  { %4236 = vmatpush3.bf16.msra.mxu0 %v4783_v44  ;;  %3965 = vmatprep.mubr.msk.f32.mxu0 %vm4573_vm1, %v4572_v2 }
 0xb19   :  { %4237 = vmatprep.subr.bf16.mxu0 %v4574_v8 }
 0xb1c   :  { %4239 = vmatpush3.bf16.msra.mxu0 %v4806_v51 }
 0xb1d   :  { %4246 = vmatprep.subr.bf16.mxu0 %v4574_v8 }
 0xb7f   :  { %v1387_v53 = vpop.f32.mrb[18].mxu1 }
 0xb80   :  { %v1388_v55 = vadd.f32 %v4843_v63, %v1387_v53  ;;  %v3934_v48 = vpop.f32.mrb[19].mxu1 }
 0xb82   :  { %1399 = vrot.lane.b32.xlu0 %v1388_v55, %s4575_s0 }
 0xbe2   :  { %v1312_v56 = vpop.f32.mrb[12].mxu0 }
 0xbe3   :  { %v1313_v31 = vadd.f32 %v4864_v6, %v1312_v56  ;;  %v3923_v57 = vpop.f32.mrb[13].mxu0 }
 0xbe5   :  { %v1391_v58 = vadd.f32 %v1388_v55, %v1313_v31 }
 0xbe7   :  { %v3576_v59 = vmul.f32 -1.442695, %v1391_v58 }
 0xbe9   :  { %4454 = vpow2.f32 %v3576_v59 }
 0xbea   :  { %v1483_v60 = vpop.f32.mrb[14].mxu0 }
 0xbeb   :  { %v1484_v0 = vadd.f32 %v4759_v26, %v1483_v60  ;;  %v3945_v1 = vpop.f32.mrb[15].mxu0 }
 0xbed   :  { %1495 = vrot.lane.b32.xlu1 %v1484_v0, %s4575_s0  ;;  %v1487_v13 = vadd.f32 %v1484_v0, %v5006_v11 }
 0xbef   :  { %v3578_v14 = vmul.f32 -1.442695, %v1487_v13 }
 0xbf3   :  { %v4455_v3 = vpop.eup %4454 }
 0xbf4   :  { %v1395_v4 = vadd.f32 1.0, %v4455_v3  ;;  %v1400_v9 = vpop.permute.xlu0 %1399 }
 0xbf6   :  { %4456 = vrcp.f32 %v1395_v4 }
 0xbf7   :  { %4458 = vpow2.f32 %v3578_v14 }
 0xc00   :  { %v4457_v7 = vpop.eup %4456 }
 0xc01   :  { %v1402_v10 = vmul.f32 %v4457_v7, %v1400_v9  ;;  %v4459_v16 = vpop.eup %4458  ;;  %v1409_v33 = vsub.f32 1.0, %v4457_v7  ;;  %v1415_v35 = vmul.f32 %v4457_v7, %v4966_v40 }
 0xc02   :  { %v1491_v17 = vadd.f32 1.0, %v4459_v16 }
 0xc03   :  { %1404 = vrot.lane.b32.xlu0 %v1402_v10, %s4575_s0 }
 0xc04   :  { %4460 = vrcp.f32 %v1491_v17 }
 0xc0e   :  { %v4461_v18 = vpop.eup %4460 }
 0xc0f   :  { %v1505_v19 = vsub.f32 1.0, %v4461_v18  ;;  %v1512_v39 = vmul.f32 %v4461_v18, %v1241_v49 }
 0xc5f   :  { %v1496_v21 = vpop.permute.xlu1 %1495 }
 0xc60   :  { %v1498_v22 = vmul.f32 %v4461_v18, %v1496_v21 }
 0xc62   :  { %1500 = vrot.lane.b32.xlu1 %v1498_v22, %s4575_s0 }
 0xc75   :  { %v1405_v25 = vpop.permute.xlu0 %1404 }
 0xc76   :  { %v1407_v27 = vadd.f32 %v1405_v25, %v1313_v31 }
 0xc78   :  { %4462 = vtanh.f32 %v1407_v27 }
 0xc82   :  { %v4463_v28 = vpop.eup %4462 }
 0xc83   :  { %1411 = vrot.lane.b32.xlu0 %v4463_v28, %s4576_s27 }
 0xcd4   :  { %v1501_v62 = vpop.permute.xlu1 %1500 }
 0xcd5   :  { %v1503_v29 = vadd.f32 %v1501_v62, %v5006_v11 }
 0xcd7   :  { %4464 = vtanh.f32 %v1503_v29 }
 0xce1   :  { %v4465_v32 = vpop.eup %4464 }
 0xce2   :  { %1507 = vrot.lane.b32.xlu1 %v4465_v32, %s4576_s27 }
 0xcf5   :  { %v1412_v34 = vpop.permute.xlu0 %1411 }
 0xcf6   :  { %v1414_v36 = vmul.f32 %v1412_v34, %v1409_v33 }
 0xcf8   :  { %v5014_v37 = vadd.f32 %v1415_v35, %v1414_v36 }
 0xcfa   :  { %1590 = vrot.lane.b32.xlu0 %v5014_v37, %s4576_s27 }
 0xd54   :  { %v1508_v38 = vpop.permute.xlu1 %1507 }
 0xd55   :  { %v1510_v41 = vmul.f32 %v1508_v38, %v1505_v19 }
 0xd57   :  { %v5020_v42 = vadd.f32 %v1512_v39, %v1510_v41 }
 0xd59   :  { %1515 = vrot.lane.b32.xlu1 %v5020_v42, %s4576_s27  ;;  %v1786_v33 = vrot.slane %v5020_v42, 4 }
 0xd6c   :  { %v1591_v43 = vpop.permute.xlu0 %1590 }
 0xd6d   :  { %3966 = vmatmul.mubr.msk.f32.vlgmr.msra.gmra.mrb[16].mxu0 %vm307_vm4, %v1591_v43 }
 0xd6e   :  { %4248 = vmatpush3.bf16.msra.mxu0 %v4810_v52  ;;  %3987 = vmatprep.mubr.msk.f32.mxu0 %vm4573_vm1, %v4572_v2 }
 0xd6f   :  { %4249 = vmatprep.subr.bf16.mxu0 %v4574_v8 }
 0xd72   :  { %4251 = vmatpush3.bf16.msra.mxu0 %v4817_v54 }
 0xd73   :  { %4258 = vmatprep.subr.bf16.mxu0 %v4574_v8 }
 0xdcb   :  { %v1516_v40 = vpop.permute.xlu1 %1515 }
 0xdcc   :  { %3955 = vmatmul.mubr.msk.f32.vlgmr.msra.gmra.mrb[20].mxu1 %vm307_vm4, %v1516_v40 }
 0xdcd   :  { %4242 = vmatpush3.bf16.msra.mxu1 %v4700_v5  ;;  %3976 = vmatprep.mubr.msk.f32.mxu1 %vm4573_vm1, %v4572_v2 }
 0xdce   :  { %4243 = vmatprep.subr.bf16.mxu1 %v4574_v8 }
 0xdd1   :  { %4245 = vmatpush3.bf16.msra.mxu1 %v4722_v12 }
 0xdd2   :  { %4252 = vmatprep.subr.bf16.mxu1 %v4574_v8 }
 0xdd4   :  { %3977 = vmatmul.mubr.msk.f32.vlgmr.msra.gmra.mrb[22].mxu1 %vm307_vm4, %v1516_v40 }
 0xdd5   :  { %4254 = vmatpush3.bf16.msra.mxu1 %v4783_v44  ;;  %3998 = vmatprep.mubr.msk.f32.mxu1 %vm4573_vm1, %v4572_v2 }
 0xdd6   :  { %4255 = vmatprep.subr.bf16.mxu1 %v4574_v8 }
 0xdd9   :  { %4257 = vmatpush3.bf16.msra.mxu1 %v4806_v51 }
 0xdda   :  { %4264 = vmatprep.subr.bf16.mxu1 %v4574_v8 }
 0xe40   :  { %v1660_v46 = vpop.f32.mrb[16].mxu0 }
 0xe41   :  { %v1661_v23 = vadd.f32 %v4843_v63, %v1660_v46  ;;  %v3967_v47 = vpop.f32.mrb[17].mxu0 }
 0xe43   :  { %1672 = vrot.lane.b32.xlu0 %v1661_v23, %s4575_s0 }
 0xe9f   :  { %v1585_v49 = vpop.f32.mrb[20].mxu1 }
 0xea0   :  { %v1586_v45 = vadd.f32 %v4864_v6, %v1585_v49  ;;  %v3956_v50 = vpop.f32.mrb[21].mxu1 }
 0xea2   :  { %v1664_v53 = vadd.f32 %v1661_v23, %v1586_v45 }
 0xea4   :  { %v3581_v55 = vmul.f32 -1.442695, %v1664_v53 }
 0xea6   :  { %4466 = vpow2.f32 %v3581_v55 }
 0xea7   :  { %v1756_v48 = vpop.f32.mrb[22].mxu1 }
 0xea8   :  { %v1757_v56 = vadd.f32 %v4759_v26, %v1756_v48  ;;  %v3978_v31 = vpop.f32.mrb[23].mxu1 }
 0xeaa   :  { %v1761_v57 = vrot.slane %v1757_v56, 4 }
 0xeac   :  { %1770 = vrot.lane.b32.xlu1 %v1761_v57, %s4575_s0  ;;  %v1763_v3 = vadd.f32 %v1761_v57, %v5006_v11 }
 0xeae   :  { %v3583_v4 = vmul.f32 -1.442695, %v1763_v3 }
 0xeb0   :  { %v4467_v58 = vpop.eup %4466 }
 0xeb1   :  { %v1668_v59 = vadd.f32 1.0, %v4467_v58  ;;  %v5097_v58 = vadd.f32 %v4836_v61, %v4766_v30 }
 0xeb3   :  { %4468 = vrcp.f32 %v1668_v59 }
 0xeb4   :  { %4470 = vpow2.f32 %v3583_v4 }
 0xeb5   :  { %v1673_v0 = vpop.permute.xlu0 %1672 }
 0xebd   :  { %v4469_v60 = vpop.eup %4468 }
 0xebe   :  { %v1675_v1 = vmul.f32 %v4469_v60, %v1673_v0  ;;  %v4471_v7 = vpop.eup %4470  ;;  %v1682_v27 = vsub.f32 1.0, %v4469_v60  ;;  %v1688_v62 = vmul.f32 %v4469_v60, %v5014_v37 }
 0xebf   :  { %v1767_v9 = vadd.f32 1.0, %v4471_v7 }
 0xec0   :  { %1677 = vrot.lane.b32.xlu0 %v1675_v1, %s4575_s0 }
 0xec1   :  { %4472 = vrcp.f32 %v1767_v9 }
 0xecb   :  { %v4473_v10 = vpop.eup %4472 }
 0xecc   :  { %v1780_v34 = vsub.f32 1.0, %v4473_v10 }
 0xf1e   :  { %v1771_v13 = vpop.permute.xlu1 %1770 }
 0xf1f   :  { %v1773_v14 = vmul.f32 %v4473_v10, %v1771_v13 }
 0xf21   :  { %1775 = vrot.lane.b32.xlu1 %v1773_v14, %s4575_s0 }
 0xf32   :  { %v1678_v16 = vpop.permute.xlu0 %1677 }
 0xf33   :  { %v1680_v17 = vadd.f32 %v1678_v16, %v1586_v45 }
 0xf35   :  { %4474 = vtanh.f32 %v1680_v17 }
 0xf3f   :  { %v4475_v18 = vpop.eup %4474 }
 0xf40   :  { %1684 = vrot.lane.b32.xlu0 %v4475_v18, %s4576_s27 }
 0xf93   :  { %v1776_v21 = vpop.permute.xlu1 %1775 }
 0xf94   :  { %v1778_v22 = vadd.f32 %v1776_v21, %v5006_v11  ;;  %v1788_v11 = vmul.f32 %v4473_v10, %v1786_v33 }
 0xf96   :  { %4476 = vtanh.f32 %v1778_v22 }
 0xfa0   :  { %v4477_v25 = vpop.eup %4476 }
 0xfa1   :  { %1782 = vrot.lane.b32.xlu1 %v4477_v25, %s4576_s27 }
 0xfb2   :  { %v1685_v28 = vpop.permute.xlu0 %1684 }
 0xfb3   :  { %v1687_v29 = vmul.f32 %v1685_v28, %v1682_v27 }
 0xfb5   :  { %v5057_v32 = vadd.f32 %v1688_v62, %v1687_v29 }
 0xfb7   :  { %1867 = vrot.lane.b32.xlu0 %v5057_v32, %s4576_s27 }
0x1013   :  { %v1783_v35 = vpop.permute.xlu1 %1782 }
0x1014   :  { %v1785_v36 = vmul.f32 %v1783_v35, %v1780_v34 }
0x1016   :  { %v5062_v19 = vadd.f32 %v1788_v11, %v1785_v36 }
0x1018   :  { %v1791_v38 = vrot.slane %v5062_v19, 4 }
0x101a   :  { %1792 = vrot.lane.b32.xlu1 %v1791_v38, %s4576_s27 }
0x1029   :  { %v1868_v37 = vpop.permute.xlu0 %1867 }
0x102a   :  { %3999 = vmatmul.mubr.msk.f32.vlgmr.msra.gmra.mrb[24].mxu1 %vm307_vm4, %v1868_v37 }
0x102b   :  { %4266 = vmatpush3.bf16.msra.mxu1 %v4810_v52  ;;  %4020 = vmatprep.mubr.msk.f32.mxu1 %vm4573_vm1, %v4572_v2 }
0x102c   :  { %4267 = vmatprep.subr.bf16.mxu1 %v4574_v8 }
0x102f   :  { %4269 = vmatpush3.bf16.msra.mxu1 %v4817_v54 }
0x1030   :  { %4276 = vmatprep.subr.bf16.mxu1 %v4574_v8 }
0x108c   :  { %v1793_v39 = vpop.permute.xlu1 %1792 }
0x108d   :  { %3988 = vmatmul.mubr.msk.f32.vlgmr.msra.gmra.mrb[18].mxu0 %vm307_vm4, %v1793_v39 }
0x108e   :  { %4260 = vmatpush3.bf16.msra.mxu0 %v4700_v5  ;;  %4009 = vmatprep.mubr.msk.f32.mxu0 %vm4573_vm1, %v4572_v2 }
0x108f   :  { %4261 = vmatprep.subr.bf16.mxu0 %v4574_v8 }
0x1092   :  { %4263 = vmatpush3.bf16.msra.mxu0 %v4722_v12 }
0x1093   :  { %4270 = vmatprep.subr.bf16.mxu0 %v4574_v8 }
0x1095   :  { %4010 = vmatmul.mubr.msk.f32.vlgmr.msra.gmra.mrb[20].mxu0 %vm307_vm4, %v1793_v39 }
0x1096   :  { %4272 = vmatpush3.bf16.msra.mxu0 %v4783_v44  ;;  %4031 = vmatprep.mubr.msk.f32.mxu0 %vm4573_vm1, %v4572_v2 }
0x1097   :  { %4273 = vmatprep.subr.bf16.mxu0 %v4574_v8 }
0x109a   :  { %4275 = vmatpush3.bf16.msra.mxu0 %v4806_v51 }
0x109b   :  { %4282 = vmatprep.subr.bf16.mxu0 %v4574_v8 }
0x10fd   :  { %v1937_v41 = vpop.f32.mrb[24].mxu1 }
0x10fe   :  { %v1938_v42 = vadd.f32 %v4843_v63, %v1937_v41  ;;  %v4000_v43 = vpop.f32.mrb[25].mxu1 }
0x1100   :  { %1949 = vrot.lane.b32.xlu0 %v1938_v42, %s4575_s0 }
0x1160   :  { %v1862_v40 = vpop.f32.mrb[18].mxu0 }
0x1161   :  { %v1863_v46 = vadd.f32 %v4864_v6, %v1862_v40  ;;  %v3989_v23 = vpop.f32.mrb[19].mxu0 }
0x1163   :  { %v1941_v47 = vadd.f32 %v1938_v42, %v1863_v46 }
0x1165   :  { %v3586_v49 = vmul.f32 -1.442695, %v1941_v47 }
0x1167   :  { %4478 = vpow2.f32 %v3586_v49 }
0x1168   :  { %v2033_v45 = vpop.f32.mrb[20].mxu0 }
0x1169   :  { %v2034_v50 = vadd.f32 %v4759_v26, %v2033_v45  ;;  %v4011_v53 = vpop.f32.mrb[21].mxu0 }
0x116b   :  { %2045 = vrot.lane.b32.xlu1 %v2034_v50, %s4575_s0  ;;  %v2037_v59 = vadd.f32 %v2034_v50, %v5097_v58 }
0x116d   :  { %v3588_v60 = vmul.f32 -1.442695, %v2037_v59 }
0x1171   :  { %v4479_v55 = vpop.eup %4478 }
0x1172   :  { %v1945_v48 = vadd.f32 1.0, %v4479_v55  ;;  %v1950_v31 = vpop.permute.xlu0 %1949 }
0x1174   :  { %4480 = vrcp.f32 %v1945_v48 }
0x1175   :  { %4482 = vpow2.f32 %v3588_v60 }
0x117e   :  { %v4481_v56 = vpop.eup %4480 }
0x117f   :  { %v1952_v57 = vmul.f32 %v4481_v56, %v1950_v31  ;;  %v4483_v26 = vpop.eup %4482  ;;  %v1959_v14 = vsub.f32 1.0, %v4481_v56  ;;  %v1965_v17 = vmul.f32 %v4481_v56, %v5057_v32 }
0x1180   :  { %v2041_v0 = vadd.f32 1.0, %v4483_v26 }
0x1181   :  { %1954 = vrot.lane.b32.xlu0 %v1952_v57, %s4575_s0 }
0x1182   :  { %4484 = vrcp.f32 %v2041_v0 }
0x118c   :  { %v4485_v1 = vpop.eup %4484 }
0x118d   :  { %v2055_v22 = vsub.f32 1.0, %v4485_v1  ;;  %v2062_v27 = vmul.f32 %v4485_v1, %v1791_v38 }
0x11dd   :  { %v2046_v3 = vpop.permute.xlu1 %2045 }
0x11de   :  { %v2048_v4 = vmul.f32 %v4485_v1, %v2046_v3 }
0x11e0   :  { %2050 = vrot.lane.b32.xlu1 %v2048_v4, %s4575_s0 }
0x11f3   :  { %v1955_v7 = vpop.permute.xlu0 %1954 }
0x11f4   :  { %v1957_v9 = vadd.f32 %v1955_v7, %v1863_v46 }
0x11f6   :  { %4486 = vtanh.f32 %v1957_v9 }
0x1200   :  { %v4487_v10 = vpop.eup %4486 }
0x1201   :  { %1961 = vrot.lane.b32.xlu0 %v4487_v10, %s4576_s27 }
0x1252   :  { %v2051_v30 = vpop.permute.xlu1 %2050 }
0x1253   :  { %v2053_v61 = vadd.f32 %v2051_v30, %v5097_v58 }
0x1255   :  { %4488 = vtanh.f32 %v2053_v61 }
0x125f   :  { %v4489_v13 = vpop.eup %4488 }
0x1260   :  { %2057 = vrot.lane.b32.xlu1 %v4489_v13, %s4576_s27  ;;  %v4545_v13 = vld [vmem:[%s5540_s9] ss:$0 sm:$0xff] }
0x1273   :  { %v1962_v16 = vpop.permute.xlu0 %1961 }
0x1274   :  { %v1964_v18 = vmul.f32 %v1962_v16, %v1959_v14 }
0x1276   :  { %v5105_v21 = vadd.f32 %v1965_v17, %v1964_v18  ;;  %v4546_v18 = vld [vmem:[%s5539_s8] ss:$0 sm:$0xff] }
0x1278   :  { %2140 = vrot.lane.b32.xlu0 %v5105_v21, %s4576_s27 }
0x12d2   :  { %v2058_v25 = vpop.permute.xlu1 %2057 }
0x12d3   :  { %v2060_v28 = vmul.f32 %v2058_v25, %v2055_v22 }
0x12d5   :  { %v5111_v62 = vadd.f32 %v2062_v27, %v2060_v28 }
0x12d7   :  { %2065 = vrot.lane.b32.xlu1 %v5111_v62, %s4576_s27  ;;  %v2336_v0 = vrot.slane %v5111_v62, 4 }
0x12ea   :  { %v2141_v29 = vpop.permute.xlu0 %2140 }
0x12eb   :  { %4032 = vmatmul.mubr.msk.f32.vlgmr.msra.gmra.mrb[22].mxu0 %vm307_vm4, %v2141_v29 }
0x12ec   :  { %4284 = vmatpush3.bf16.msra.mxu0 %v4810_v52  ;;  %4053 = vmatprep.mubr.msk.f32.mxu0 %vm4573_vm1, %v4572_v2 }
0x12ed   :  { %4285 = vmatprep.subr.bf16.mxu0 %v4574_v8 }
0x12f0   :  { %4287 = vmatpush3.bf16.msra.mxu0 %v4817_v54 }
0x12f1   :  { %4294 = vmatprep.subr.bf16.mxu0 %v4574_v8 }
0x1349   :  { %v2066_v32 = vpop.permute.xlu1 %2065 }
0x134a   :  { %4021 = vmatmul.mubr.msk.f32.vlgmr.msra.gmra.mrb[26].mxu1 %vm307_vm4, %v2066_v32 }
0x134b   :  { %4278 = vmatpush3.bf16.msra.mxu1 %v4700_v5  ;;  %4042 = vmatprep.mubr.msk.f32.mxu1 %vm4573_vm1, %v4572_v2 }
0x134c   :  { %4279 = vmatprep.subr.bf16.mxu1 %v4574_v8 }
0x134f   :  { %4281 = vmatpush3.bf16.msra.mxu1 %v4722_v12 }
0x1350   :  { %4288 = vmatprep.subr.bf16.mxu1 %v4574_v8 }
0x1352   :  { %4043 = vmatmul.mubr.msk.f32.vlgmr.msra.gmra.mrb[28].mxu1 %vm307_vm4, %v2066_v32 }
0x1353   :  { %4290 = vmatpush3.bf16.msra.mxu1 %v4783_v44  ;;  %4064 = vmatprep.mubr.msk.f32.mxu1 %vm4573_vm1, %v4572_v2 }
0x1354   :  { %4291 = vmatprep.subr.bf16.mxu1 %v4574_v8 }
0x1357   :  { %4293 = vmatpush3.bf16.msra.mxu1 %v4806_v51  ;;  %v4544_v51 = vld [vmem:[%s5536_s5] ss:$0 sm:$0xff] }
0x1358   :  { %4300 = vmatprep.subr.bf16.mxu1 %v4574_v8 }
0x13be   :  { %v2210_v5 = vpop.f32.mrb[22].mxu0 }
0x13bf   :  { %v2211_v52 = vadd.f32 %v4843_v63, %v2210_v5  ;;  %v4033_v54 = vpop.f32.mrb[23].mxu0 }
0x13c1   :  { %2222 = vrot.lane.b32.xlu0 %v2211_v52, %s4575_s0 }
0x141d   :  { %v2135_v12 = vpop.f32.mrb[26].mxu1 }
0x141e   :  { %v2136_v33 = vadd.f32 %v4864_v6, %v2135_v12  ;;  %v4022_v34 = vpop.f32.mrb[27].mxu1  ;;  %v296_v12 = vld [vmem:[%s5542_s11] sm:$0xff] }
0x141f   :  { %v298_v34 = vld [vmem:[%s5542_s11 + $0x10] sm:$0xff] }
0x1420   :  { %v2214_v44 = vadd.f32 %v2211_v52, %v2136_v33 }
0x1422   :  { %v3591_v35 = vmul.f32 -1.442695, %v2214_v44 }
0x1424   :  { %4490 = vpow2.f32 %v3591_v35  ;;  %v299_v35 = vld [vmem:[%s5542_s11 + $0x18] sm:$0xff] }
0x1425   :  { %v2306_v36 = vpop.f32.mrb[28].mxu1 }
0x1426   :  { %v2307_v11 = vadd.f32 %v4544_v51, %v2306_v36  ;;  %v4044_v19 = vpop.f32.mrb[29].mxu1  ;;  %v5182_v36 = vpack.c.bf16 %v299_v35, %v298_v34 }
0x1428   :  { %v2311_v38 = vrot.slane %v2307_v11, 4 }
0x142a   :  { %2320 = vrot.lane.b32.xlu1 %v2311_v38, %s4575_s0  ;;  %v2313_v42 = vadd.f32 %v2311_v38, %v5097_v58 }
0x142c   :  { %v3593_v43 = vmul.f32 -1.442695, %v2313_v42 }
0x142e   :  { %v4491_v63 = vpop.eup %4490 }
0x142f   :  { %v2218_v37 = vadd.f32 1.0, %v4491_v63 }
0x1431   :  { %4492 = vrcp.f32 %v2218_v37 }
0x1432   :  { %4494 = vpow2.f32 %v3593_v43 }
0x1433   :  { %v2223_v41 = vpop.permute.xlu0 %2222 }
0x143b   :  { %v4493_v39 = vpop.eup %4492 }
0x143c   :  { %v2225_v6 = vmul.f32 %v4493_v39, %v2223_v41  ;;  %v4495_v40 = vpop.eup %4494  ;;  %v2232_v31 = vsub.f32 1.0, %v4493_v39  ;;  %v2238_v59 = vmul.f32 %v4493_v39, %v5105_v21  ;;  %v5203_v41 = vld [vmem:[%s5544_s13] ss:$0 sm:$0xff] }
0x143d   :  { %v2317_v46 = vadd.f32 1.0, %v4495_v40  ;;  %v4547_v40 = vld [vmem:[%s5543_s12] ss:$0 sm:$0xff] }
0x143e   :  { %2227 = vrot.lane.b32.xlu0 %v2225_v6, %s4575_s0 }
0x143f   :  { %4496 = vrcp.f32 %v2317_v46  ;;  %v268_v46 = vadd.f32 %v4547_v40, %v4745_v15 }
0x1449   :  { %v4497_v23 = vpop.eup %4496 }
0x144a   :  { %v2330_v1 = vsub.f32 1.0, %v4497_v23  ;;  %v2338_v7 = vmul.f32 %v4497_v23, %v2336_v0 }
0x149c   :  { %v2321_v47 = vpop.permute.xlu1 %2320 }
0x149d   :  { %v2323_v49 = vmul.f32 %v4497_v23, %v2321_v47 }
0x149f   :  { %2325 = vrot.lane.b32.xlu1 %v2323_v49, %s4575_s0 }
0x14b0   :  { %v2228_v45 = vpop.permute.xlu0 %2227 }
0x14b1   :  { %v2230_v50 = vadd.f32 %v2228_v45, %v2136_v33  ;;  %v297_v33 = vld [vmem:[%s5542_s11 + $0x8] sm:$0xff] }
0x14b2   :  { %v5176_v44 = vpack.c.bf16 %v297_v33, %v296_v12 }
0x14b3   :  { %4498 = vtanh.f32 %v2230_v50 }
0x14bd   :  { %v4499_v53 = vpop.eup %4498 }
0x14be   :  { %2234 = vrot.lane.b32.xlu0 %v4499_v53, %s4576_s27 }
0x1511   :  { %v2326_v55 = vpop.permute.xlu1 %2325 }
0x1512   :  { %v2328_v48 = vadd.f32 %v2326_v55, %v5097_v58 }
0x1514   :  { %4500 = vtanh.f32 %v2328_v48 }
0x151e   :  { %v4501_v56 = vpop.eup %4500 }
0x151f   :  { %2332 = vrot.lane.b32.xlu1 %v4501_v56, %s4576_s27 }
0x1530   :  { %v2235_v57 = vpop.permute.xlu0 %2234 }
0x1531   :  { %v2237_v60 = vmul.f32 %v2235_v57, %v2232_v31 }
0x1533   :  { %v2239_v26 = vadd.f32 %v2238_v59, %v2237_v60 }
0x1535   :  { %2417 = vrot.lane.b32.xlu0 %v2239_v26, %s4576_s27 }
0x1591   :  { %v2333_v3 = vpop.permute.xlu1 %2332 }
0x1592   :  { %v2335_v4 = vmul.f32 %v2333_v3, %v2330_v1 }
0x1594   :  { %v2339_v9 = vadd.f32 %v2338_v7, %v2335_v4 }
0x1596   :  { %v2341_v58 = vrot.slane %v2339_v9, 4 }
0x1598   :  { %2342 = vrot.lane.b32.xlu1 %v2341_v58, %s4576_s27 }
0x15a7   :  { %v2418_v10 = vpop.permute.xlu0 %2417 }
0x15a8   :  { %4065 = vmatmul.mubr.msk.f32.vlgmr.msra.gmra.mrb[30].mxu1 %vm307_vm4, %v2418_v10 }
0x15a9   :  { %4086 = vmatprep.mubr.msk.f32.mxu1 %vm4573_vm1, %v4572_v2  ;;  %4302 = vmatpush3.bf16.msra.mxu1 %v5176_v44 }
0x15aa   :  { %4303 = vmatprep.subr.bf16.mxu1 %v4574_v8 }
0x15ad   :  { %4305 = vmatpush3.bf16.msra.mxu1 %v5182_v36 }
0x15ae   :  { %4312 = vmatprep.subr.bf16.mxu1 %v4574_v8 }
0x160a   :  { %v2343_v30 = vpop.permute.xlu1 %2342 }
0x160b   :  { %4054 = vmatmul.mubr.msk.f32.vlgmr.msra.gmra.mrb[24].mxu0 %vm307_vm4, %v2343_v30 }
0x160c   :  { %4075 = vmatprep.mubr.msk.f32.mxu0 %vm4573_vm1, %v4572_v2  ;;  %4296 = vmatpush3.bf16.msra.mxu0 %v5176_v44 }
0x160d   :  { %4297 = vmatprep.subr.bf16.mxu0 %v4574_v8 }
0x1610   :  { %4299 = vmatpush3.bf16.msra.mxu0 %v5182_v36 }
0x1611   :  { %4306 = vmatprep.subr.bf16.mxu0 %v4574_v8 }
0x167b   :  { %v2487_v61 = vpop.f32.mrb[30].mxu1 }
0x167c   :  { %v2488_v14 = vadd.f32 %v4545_v13, %v2487_v61  ;;  %v4066_v16 = vpop.f32.mrb[31].mxu1 }
0x167e   :  { %2499 = vrot.lane.b32.xlu0 %v2488_v14, %s4575_s0 }
0x16de   :  { %v2412_v17 = vpop.f32.mrb[24].mxu0 }
0x16df   :  { %v2413_v21 = vadd.f32 %v4546_v18, %v2412_v17  ;;  %v4055_v22 = vpop.f32.mrb[25].mxu0 }
0x16e1   :  { %v2491_v25 = vadd.f32 %v2488_v14, %v2413_v21 }
0x16e3   :  { %v3596_v27 = vmul.f32 -1.442695, %v2491_v25 }
0x16e5   :  { %4502 = vpow2.f32 %v3596_v27 }
0x16ef   :  { %v4503_v28 = vpop.eup %4502 }
0x16f0   :  { %v2495_v62 = vadd.f32 1.0, %v4503_v28  ;;  %v2500_v32 = vpop.permute.xlu0 %2499 }
0x16f2   :  { %4504 = vrcp.f32 %v2495_v62 }
0x16fc   :  { %v4505_v29 = vpop.eup %4504 }
0x16fd   :  { %v2502_v5 = vmul.f32 %v4505_v29, %v2500_v32  ;;  %v2509_v11 = vsub.f32 1.0, %v4505_v29  ;;  %v2515_v38 = vmul.f32 %v4505_v29, %v2239_v26 }
0x16ff   :  { %2504 = vrot.lane.b32.xlu1 %v2502_v5, %s4575_s0 }
0x1771   :  { %v2505_v52 = vpop.permute.xlu1 %2504 }
0x1772   :  { %v2507_v54 = vadd.f32 %v2505_v52, %v2413_v21 }
0x1774   :  { %4506 = vtanh.f32 %v2507_v54 }
0x177e   :  { %v4507_v51 = vpop.eup %4506 }
0x177f   :  { %2511 = vrot.lane.b32.xlu0 %v4507_v51, %s4576_s27 }
0x17f1   :  { %v2512_v19 = vpop.permute.xlu0 %2511 }
0x17f2   :  { %v2514_v63 = vmul.f32 %v2512_v19, %v2509_v11 }
0x17f4   :  { %v2516_v37 = vadd.f32 %v2515_v38, %v2514_v63 }
0x17f6   :  { %2524 = vrot.lane.b32.xlu1 %v2516_v37, %s4576_s27 }
0x1868   :  { %v2525_v39 = vpop.permute.xlu1 %2524 }
0x1869   :  { %4076 = vmatmul.mubr.msk.f32.vlgmr.msra.gmra.mrb[26].mxu0 %vm307_vm4, %v2525_v39 }
0x186a   :  { %4308 = vmatpush3.bf16.msra.mxu0 %v5176_v44  ;;  %4097 = vmatprep.mubr.msk.f32.mxu0 %vm4573_vm1, %v4572_v2 }
0x186b   :  { %4309 = vmatprep.subr.bf16.mxu0 %v4574_v8 }
0x186e   :  { %4311 = vmatpush3.bf16.msra.mxu0 %v5182_v36 }
0x186f   :  { %4318 = vmatprep.subr.bf16.mxu0 %v4574_v8 }
0x193c   :  { %v2594_v6 = vpop.f32.mrb[26].mxu0 }
0x193d   :  { %v2595_v42 = vadd.f32 %v5203_v41, %v2594_v6  ;;  %v4077_v43 = vpop.f32.mrb[27].mxu0 }
0x193f   :  { %2606 = vrot.lane.b32.xlu0 %v2595_v42, %s4575_s0  ;;  %v2598_v23 = vadd.f32 %v2595_v42, %v268_v46 }
0x1941   :  { %v3599_v47 = vmul.f32 -1.442695, %v2598_v23 }
0x1943   :  { %4508 = vpow2.f32 %v3599_v47 }
0x194d   :  { %v4509_v49 = vpop.eup %4508 }
0x194e   :  { %v2602_v45 = vadd.f32 1.0, %v4509_v49 }
0x1950   :  { %4510 = vrcp.f32 %v2602_v45 }
0x195a   :  { %v4511_v50 = vpop.eup %4510 }
0x195b   :  { %v2616_v57 = vsub.f32 1.0, %v4511_v50  ;;  %v2622_v15 = vmul.f32 %v4511_v50, %v2516_v37 }
0x19b1   :  { %v2607_v53 = vpop.permute.xlu0 %2606 }
0x19b2   :  { %v2609_v55 = vmul.f32 %v4511_v50, %v2607_v53 }
0x19b4   :  { %2611 = vrot.lane.b32.xlu1 %v2609_v55, %s4575_s0 }
0x1a26   :  { %v2612_v48 = vpop.permute.xlu1 %2611 }
0x1a27   :  { %v2614_v56 = vadd.f32 %v2612_v48, %v268_v46 }
0x1a29   :  { %4512 = vtanh.f32 %v2614_v56 }
0x1a33   :  { %v4513_v31 = vpop.eup %4512 }
0x1a34   :  { %2618 = vrot.lane.b32.xlu0 %v4513_v31, %s4576_s27 }
0x1aa6   :  { %v2619_v59 = vpop.permute.xlu0 %2618 }
0x1aa7   :  { %v2621_v60 = vmul.f32 %v2619_v59, %v2616_v57 }
0x1aa9   :  { %v2623_v26 = vadd.f32 %v2622_v15, %v2621_v60 }
0x1aab   :  { %2625 = vrot.lane.b32.xlu1 %v2623_v26, %s4576_s27  ;;  %v2728_v21 = vrot.slane %v2623_v26, 4 }
0x1b1d   :  { %v2626_v0 = vpop.permute.xlu1 %2625 }
0x1b1e   :  { %2629 = vst.msk [vmem:[#allocation2] sm:$0xf] %vm2628_vm5, %v2626_v0  ;;  %4087 = vmatmul.mubr.msk.f32.vlgmr.msra.gmra.mrb[32].mxu1 %vm307_vm4, %v2626_v0 }
0x1b1f   :  { %4314 = vmatpush3.bf16.msra.mxu1 %v5176_v44  ;;  %4108 = vmatprep.mubr.msk.f32.mxu1 %vm4573_vm1, %v4572_v2 }
0x1b20   :  { %4315 = vmatprep.subr.bf16.mxu1 %v4574_v8 }
0x1b23   :  { %4317 = vmatpush3.bf16.msra.mxu1 %v5182_v36 }
0x1b24   :  { %4324 = vmatprep.subr.bf16.mxu1 %v4574_v8 }
0x1bf1   :  { %v2698_v1 = vpop.f32.mrb[32].mxu1 }
0x1bf2   :  { %v2699_v3 = vadd.f32 %v5203_v41, %v2698_v1  ;;  %v4088_v4 = vpop.f32.mrb[33].mxu1 }
0x1bf4   :  { %v2703_v7 = vrot.slane %v2699_v3, 4 }
0x1bf6   :  { %2712 = vrot.lane.b32.xlu0 %v2703_v7, %s4575_s0  ;;  %v2705_v9 = vadd.f32 %v2703_v7, %v268_v46 }
0x1bf8   :  { %v3601_v58 = vmul.f32 -1.442695, %v2705_v9 }
0x1bfa   :  { %4514 = vpow2.f32 %v3601_v58 }
0x1c04   :  { %v4515_v10 = vpop.eup %4514 }
0x1c05   :  { %v2709_v30 = vadd.f32 1.0, %v4515_v10 }
0x1c07   :  { %4516 = vrcp.f32 %v2709_v30 }
0x1c11   :  { %v4517_v61 = vpop.eup %4516 }
0x1c12   :  { %v2722_v22 = vsub.f32 1.0, %v4517_v61  ;;  %v2730_v28 = vmul.f32 %v4517_v61, %v2728_v21 }
0x1c68   :  { %v2713_v13 = vpop.permute.xlu0 %2712 }
0x1c69   :  { %v2715_v14 = vmul.f32 %v4517_v61, %v2713_v13 }
0x1c6b   :  { %2717 = vrot.lane.b32.xlu1 %v2715_v14, %s4575_s0 }
0x1cdd   :  { %v2718_v16 = vpop.permute.xlu1 %2717 }
0x1cde   :  { %v2720_v17 = vadd.f32 %v2718_v16, %v268_v46 }
0x1ce0   :  { %4518 = vtanh.f32 %v2720_v17 }
0x1cea   :  { %v4519_v18 = vpop.eup %4518 }
0x1ceb   :  { %2724 = vrot.lane.b32.xlu0 %v4519_v18, %s4576_s27 }
0x1d5d   :  { %v2725_v25 = vpop.permute.xlu0 %2724 }
0x1d5e   :  { %v2727_v27 = vmul.f32 %v2725_v25, %v2722_v22 }
0x1d60   :  { %v5226_v62 = vadd.f32 %v2730_v28, %v2727_v27 }
0x1d62   :  { %v2738_v29 = vrot.slane %v5226_v62, 4 }
0x1d64   :  { %2739 = vrot.lane.b32.xlu1 %v2738_v29, %s4576_s27 }
0x1dd6   :  { %v2740_v32 = vpop.permute.xlu1 %2739 }
0x1dd7   :  { %4098 = vmatmul.mubr.msk.f32.vlgmr.msra.gmra.mrb[28].mxu0 %vm307_vm4, %v2740_v32 }
0x1dd8   :  { %4320 = vmatpush3.bf16.msra.mxu0 %v5176_v44  ;;  %4119 = vmatprep.mubr.msk.f32.mxu0 %vm4573_vm1, %v4572_v2 }
0x1dd9   :  { %4321 = vmatprep.subr.bf16.mxu0 %v4574_v8 }
0x1ddc   :  { %4323 = vmatpush3.bf16.msra.mxu0 %v5182_v36 }
0x1ddd   :  { %4330 = vmatprep.subr.bf16.mxu0 %v4574_v8 }
0x1eaa   :  { %v2809_v5 = vpop.f32.mrb[28].mxu0 }
0x1eab   :  { %v2810_v52 = vadd.f32 %v5203_v41, %v2809_v5  ;;  %v4099_v54 = vpop.f32.mrb[29].mxu0 }
0x1ead   :  { %2821 = vrot.lane.b32.xlu0 %v2810_v52, %s4575_s0  ;;  %v2813_v12 = vadd.f32 %v2810_v52, %v4752_v20 }
0x1eaf   :  { %v3603_v33 = vmul.f32 -1.442695, %v2813_v12 }
0x1eb1   :  { %4520 = vpow2.f32 %v3603_v33 }
0x1ebb   :  { %v4521_v34 = vpop.eup %4520 }
0x1ebc   :  { %v2817_v35 = vadd.f32 1.0, %v4521_v34 }
0x1ebe   :  { %4522 = vrcp.f32 %v2817_v35 }
0x1ec8   :  { %v4523_v51 = vpop.eup %4522 }
0x1ec9   :  { %v2831_v39 = vsub.f32 1.0, %v4523_v51  ;;  %v2838_v42 = vmul.f32 %v4523_v51, %v2738_v29 }
0x1f1f   :  { %v2822_v11 = vpop.permute.xlu0 %2821 }
0x1f20   :  { %v2824_v19 = vmul.f32 %v4523_v51, %v2822_v11 }
0x1f22   :  { %2826 = vrot.lane.b32.xlu1 %v2824_v19, %s4575_s0  ;;  %v3169_v19 = vld [vmem:[%s5545_s14] sm:$0xff] }
0x1f94   :  { %v2827_v38 = vpop.permute.xlu1 %2826 }
0x1f95   :  { %v2829_v63 = vadd.f32 %v2827_v38, %v4752_v20  ;;  %v3170_v38 = vld [vmem:[%s5545_s14 + $0x8] sm:$0xff] }
0x1f97   :  { %4524 = vtanh.f32 %v2829_v63  ;;  %v3171_v63 = vld [vmem:[%s5545_s14 + $0x10] sm:$0xff] }
0x1fa1   :  { %v4525_v37 = vpop.eup %4524 }
0x1fa2   :  { %2833 = vrot.lane.b32.xlu0 %v4525_v37, %s4576_s27  ;;  %v3172_v37 = vld [vmem:[%s5545_s14 + $0x18] sm:$0xff] }
0x2014   :  { %v2834_v6 = vpop.permute.xlu0 %2833 }
0x2015   :  { %v2836_v43 = vmul.f32 %v2834_v6, %v2831_v39  ;;  %v4334_v39 = vpack.c.bf16 %v3172_v37, %v3171_v63 }
0x2017   :  { %v2839_v40 = vadd.f32 %v2838_v42, %v2836_v43 }
0x2019   :  { %2841 = vrot.lane.b32.xlu1 %v2839_v40, %s4576_s27  ;;  %v2943_v15 = vrot.slane %v2839_v40, 4 }
0x208b   :  { %v2842_v46 = vpop.permute.xlu1 %2841 }
0x208c   :  { %2844 = vst.msk [vmem:[#allocation2 + $0x8] sm:$0xf] %vm2628_vm5, %v2842_v46  ;;  %4109 = vmatmul.mubr.msk.f32.vlgmr.msra.gmra.mrb[34].mxu1 %vm307_vm4, %v2842_v46 }
0x208d   :  { %4326 = vmatpush3.bf16.msra.mxu1 %v5176_v44  ;;  %4130 = vmatprep.mubr.msk.f32.mxu1 %vm4573_vm1, %v4572_v2 }
0x208e   :  { %4327 = vmatprep.subr.bf16.mxu1 %v4574_v8 }
0x2091   :  { %4329 = vmatpush3.bf16.msra.mxu1 %v5182_v36 }
0x215f   :  { %v2913_v23 = vpop.f32.mrb[34].mxu1 }
0x2160   :  { %v2914_v47 = vadd.f32 %v5203_v41, %v2913_v23  ;;  %v4110_v49 = vpop.f32.mrb[35].mxu1 }
0x2162   :  { %v2918_v45 = vrot.slane %v2914_v47, 4 }
0x2164   :  { %2927 = vrot.lane.b32.xlu0 %v2918_v45, %s4575_s0  ;;  %v2920_v50 = vadd.f32 %v2918_v45, %v4752_v20  ;;  %v3273_v45 = vld [vmem:[%s5547_s16 + $0x8] sm:$0xff] }
0x2166   :  { %v3605_v53 = vmul.f32 -1.442695, %v2920_v50 }
0x2168   :  { %4526 = vpow2.f32 %v3605_v53  ;;  %v3274_v53 = vld [vmem:[%s5547_s16 + $0x10] sm:$0xff] }
0x2172   :  { %v4527_v55 = vpop.eup %4526 }
0x2173   :  { %v2924_v44 = vadd.f32 1.0, %v4527_v55  ;;  %v3277_v55 = vld [vmem:[%s5547_s16 + $0x28] sm:$0xff] }
0x2175   :  { %4528 = vrcp.f32 %v2924_v44  ;;  %v3279_v44 = vld [vmem:[%s5547_s16 + $0x38] sm:$0xff] }
0x217f   :  { %v4529_v48 = vpop.eup %4528 }
0x2180   :  { %v2937_v60 = vsub.f32 1.0, %v4529_v48  ;;  %v2945_v1 = vmul.f32 %v4529_v48, %v2943_v15 }
0x21d6   :  { %v2928_v56 = vpop.permute.xlu0 %2927 }
0x21d7   :  { %v2930_v31 = vmul.f32 %v4529_v48, %v2928_v56  ;;  %v4340_v56 = vpack.c.bf16 %v3279_v44, %v3277_v55  ;;  %v3409_v55 = vld [vmem:[%s5549_s18 + $0x20] sm:$0xff]  ;;  %v3410_v44 = vld [vmem:[%s5549_s18 + $0x28] sm:$0xff] }
0x21d9   :  { %2932 = vrot.lane.b32.xlu1 %v2930_v31, %s4575_s0  ;;  %v3276_v31 = vld [vmem:[%s5547_s16 + $0x20] sm:$0xff] }
0x224b   :  { %v2933_v36 = vpop.permute.xlu1 %2932 }
0x224c   :  { %v2935_v57 = vadd.f32 %v2933_v36, %v4752_v20  ;;  %v3278_v36 = vld [vmem:[%s5547_s16 + $0x30] sm:$0xff] }
0x224d   :  { %v4342_v15 = vpack.c.bf16 %v3278_v36, %v3276_v31  ;;  %v3412_v31 = vld [vmem:[%s5549_s18 + $0x38] sm:$0xff] }
0x224e   :  { %4530 = vtanh.f32 %v2935_v57  ;;  %v3281_v57 = vld [vmem:[%s5547_s16 + $0x48] sm:$0xff] }
0x2258   :  { %v4531_v59 = vpop.eup %4530 }
0x2259   :  { %2939 = vrot.lane.b32.xlu0 %v4531_v59, %s4576_s27  ;;  %v3283_v59 = vld [vmem:[%s5547_s16 + $0x58] sm:$0xff] }
0x22cb   :  { %v2940_v26 = vpop.permute.xlu0 %2939 }
0x22cc   :  { %v2942_v0 = vmul.f32 %v2940_v26, %v2937_v60  ;;  %v4344_v60 = vpack.c.bf16 %v3283_v59, %v3281_v57  ;;  %v3280_v26 = vld [vmem:[%s5547_s16 + $0x40] sm:$0xff]  ;;  %v3414_v59 = vld [vmem:[%s5549_s18 + $0x48] sm:$0xff] }
0x22cd   :  { %v3413_v57 = vld [vmem:[%s5549_s18 + $0x40] sm:$0xff] }
0x22ce   :  { %v5257_v3 = vadd.f32 %v2945_v1, %v2942_v0  ;;  %v3282_v0 = vld [vmem:[%s5547_s16 + $0x50] sm:$0xff]  ;;  %v3285_v1 = vld [vmem:[%s5547_s16 + $0x68] sm:$0xff] }
0x22d0   :  { %v2952_v4 = vrot.slane %v5257_v3, 4 }
0x22d2   :  { %2953 = vrot.lane.b32.xlu1 %v2952_v4, %s4576_s27 }
0x2344   :  { %v2954_v7 = vpop.permute.xlu1 %2953 }
0x2345   :  { %4120 = vmatmul.mubr.msk.f32.vlgmr.msra.gmra.mrb[30].mxu0 %vm307_vm4, %v2954_v7 }
0x2346   :  { %4141 = vmatprep.mubr.msk.f32.mxu0 %vm4573_vm1, %v4572_v2 }
0x2418   :  { %v3023_v20 = vpop.f32.mrb[30].mxu0 }
0x2419   :  { %v3024_v9 = vadd.f32 %v5203_v41, %v3023_v20  ;;  %v4121_v58 = vpop.f32.mrb[31].mxu0  ;;  %v3284_v20 = vld [vmem:[%s5547_s16 + $0x60] sm:$0xff] }
0x241a   :  { %v3289_v58 = vld [vmem:[%s5547_s16 + $0x88] sm:$0xff] }
0x241b   :  { %3035 = vrot.lane.b32.xlu0 %v3024_v9, %s4575_s0  ;;  %v3027_v10 = vadd.f32 %v3024_v9, %v4754_v24  ;;  %v3286_v9 = vld [vmem:[%s5547_s16 + $0x70] sm:$0xff] }
0x241d   :  { %v3607_v30 = vmul.f32 -1.442695, %v3027_v10  ;;  %v3291_v10 = vld [vmem:[%s5547_s16 + $0x98] sm:$0xff] }
0x241f   :  { %4532 = vpow2.f32 %v3607_v30  ;;  %v4350_v30 = vpack.c.bf16 %v3286_v9, %v3284_v20  ;;  %v3419_v20 = vld [vmem:[%s5549_s18 + $0x70] sm:$0xff]  ;;  %v3420_v9 = vld [vmem:[%s5549_s18 + $0x78] sm:$0xff] }
0x2429   :  { %v4533_v61 = vpop.eup %4532 }
0x242a   :  { %v3031_v13 = vadd.f32 1.0, %v4533_v61  ;;  %v4352_v61 = vpack.c.bf16 %v3291_v10, %v3289_v58  ;;  %v4390_v10 = vpack.c.bf16 %v3420_v9, %v3419_v20 }
0x242c   :  { %4534 = vrcp.f32 %v3031_v13  ;;  %v3288_v13 = vld [vmem:[%s5547_s16 + $0x80] sm:$0xff] }
0x2436   :  { %v4535_v14 = vpop.eup %4534 }
0x2437   :  { %v3045_v25 = vsub.f32 1.0, %v4535_v14  ;;  %v3052_v28 = vmul.f32 %v4535_v14, %v2952_v4  ;;  %v3287_v4 = vld [vmem:[%s5547_s16 + $0x78] sm:$0xff] }
0x2438   :  { %v4348_v7 = vpack.c.bf16 %v3287_v4, %v3285_v1  ;;  %v3417_v4 = vld [vmem:[%s5549_s18 + $0x60] sm:$0xff] }
0x248d   :  { %v3036_v16 = vpop.permute.xlu0 %3035 }
0x248e   :  { %v3038_v17 = vmul.f32 %v4535_v14, %v3036_v16  ;;  %v3290_v14 = vld [vmem:[%s5547_s16 + $0x90] sm:$0xff]  ;;  %v3293_v16 = vld [vmem:[%s5547_s16 + $0xa8] sm:$0xff] }
0x2490   :  { %3040 = vrot.lane.b32.xlu1 %v3038_v17, %s4575_s0  ;;  %v3295_v17 = vld [vmem:[%s5547_s16 + $0xb8] sm:$0xff] }
0x2502   :  { %v3041_v18 = vpop.permute.xlu1 %3040 }
0x2503   :  { %v3043_v21 = vadd.f32 %v3041_v18, %v4754_v24  ;;  %v4354_v18 = vpack.c.bf16 %v3290_v14, %v3288_v13  ;;  %v3423_v14 = vld [vmem:[%s5549_s18 + $0x90] sm:$0xff] }
0x2505   :  { %4536 = vtanh.f32 %v3043_v21  ;;  %v4356_v21 = vpack.c.bf16 %v3295_v17, %v3293_v16  ;;  %v3424_v16 = vld [vmem:[%s5549_s18 + $0x98] sm:$0xff] }
0x2506   :  { %v4396_v17 = vpack.c.bf16 %v3424_v16, %v3423_v14 }
0x250f   :  { %v4537_v22 = vpop.eup %4536 }
0x2510   :  { %3047 = vrot.lane.b32.xlu0 %v4537_v22, %s4576_s27  ;;  %v3292_v22 = vld [vmem:[%s5547_s16 + $0xa0] sm:$0xff] }
0x2582   :  { %v3048_v27 = vpop.permute.xlu0 %3047 }
0x2583   :  { %v3050_v29 = vmul.f32 %v3048_v27, %v3045_v25  ;;  %v3294_v25 = vld [vmem:[%s5547_s16 + $0xb0] sm:$0xff]  ;;  %v3297_v27 = vld [vmem:[%s5547_s16 + $0xc8] sm:$0xff] }
0x2585   :  { %v5270_v32 = vadd.f32 %v3052_v28, %v3050_v29  ;;  %v3299_v28 = vld [vmem:[%s5547_s16 + $0xd8] sm:$0xff]  ;;  %v4358_v29 = vpack.c.bf16 %v3294_v25, %v3292_v22  ;;  %v3427_v25 = vld [vmem:[%s5549_s18 + $0xb0] sm:$0xff] }
0x2587   :  { %3055 = vrot.lane.b32.xlu1 %v5270_v32, %s4576_s27 }
0x25f9   :  { %v3056_v5 = vpop.permute.xlu1 %3055 }
0x25fa   :  { %3058 = vst.msk [vmem:[#allocation2 + $0x10] sm:$0xf] %vm2628_vm5, %v3056_v5  ;;  %4131 = vmatmul.mubr.msk.f32.vlgmr.msra.gmra.mrb[36].mxu1 %vm307_vm4, %v3056_v5  ;;  %v4360_v5 = vpack.c.bf16 %v3299_v28, %v3297_v27  ;;  %v3428_v27 = vld [vmem:[%s5549_s18 + $0xb8] sm:$0xff] }
0x25fb   :  { %3380 = vmatprep.mubr.f32.mxu1 %v4572_v2  ;;  %v4402_v28 = vpack.c.bf16 %v3428_v27, %v3427_v25 }
0x26cd   :  { %v3127_v52 = vpop.f32.mrb[36].mxu1 }
0x26ce   :  { %v3128_v54 = vadd.f32 %v5203_v41, %v3127_v52  ;;  %v4132_v12 = vpop.f32.mrb[37].mxu1  ;;  %v4331_v41 = vpack.c.bf16 %v3170_v38, %v3169_v19  ;;  %v3296_v52 = vld [vmem:[%s5547_s16 + $0xc0] sm:$0xff]  ;;  %v3157_v38 = vrot.slane %v5270_v32, 4 }
0x26cf   :  { %v5415_v32 = vld [vmem:[%s5546_s15] ss:$0 sm:$0xff] }
0x26d0   :  { %v3132_v33 = vrot.slane %v3128_v54, 4  ;;  %4332 = vmatpush3.bf16.msra.mxu0 %v4331_v41  ;;  %v3298_v54 = vld [vmem:[%s5547_s16 + $0xd0] sm:$0xff] }
0x26d1   :  { %4333 = vmatprep.subr.bf16.mxu0 %v4574_v8  ;;  %v4362_v12 = vpack.c.bf16 %v3298_v54, %v3296_v52 }
0x26d2   :  { %3141 = vrot.lane.b32.xlu0 %v3132_v33, %s4575_s0  ;;  %v3134_v34 = vadd.f32 %v3132_v33, %v4754_v24  ;;  %v3301_v33 = vld [vmem:[%s5547_s16 + $0xe8] sm:$0xff] }
0x26d4   :  { %v3609_v35 = vmul.f32 -1.442695, %v3134_v34  ;;  %4335 = vmatpush3.bf16.msra.mxu0 %v4334_v39  ;;  %v3303_v34 = vld [vmem:[%s5547_s16 + $0xf8] sm:$0xff] }
0x26d5   :  { %4368 = vmatprep.subr.bf16.mxu0 %v4574_v8 }
0x26d6   :  { %4538 = vpow2.f32 %v3609_v35  ;;  %v4364_v35 = vpack.c.bf16 %v3303_v34, %v3301_v33  ;;  %v3304_v34 = vld [vmem:[%s5548_s17] sm:$0x3] }
0x26e0   :  { %v4539_v51 = vpop.eup %4538 }
0x26e1   :  { %v3138_v11 = vadd.f32 1.0, %v4539_v51  ;;  %v3300_v51 = vld [vmem:[%s5547_s16 + $0xe0] sm:$0xff] }
0x26e3   :  { %4540 = vrcp.f32 %v3138_v11  ;;  %v3302_v11 = vld [vmem:[%s5547_s16 + $0xf0] sm:$0xff] }
0x26e4   :  { %v4366_v19 = vpack.c.bf16 %v3302_v11, %v3300_v51 }
0x26ed   :  { %v5293_v6 = vpop.eup %4540 }
0x26ee   :  { %v3151_v41 = vsub.f32 1.0, %v5293_v6  ;;  %v3159_v39 = vmul.f32 %v5293_v6, %v3157_v38 }
0x2744   :  { %v3142_v42 = vpop.permute.xlu0 %3141 }
0x2745   :  { %v3144_v43 = vmul.f32 %v5293_v6, %v3142_v42 }
0x2747   :  { %3146 = vrot.lane.b32.xlu1 %v3144_v43, %s4575_s0 }
0x274b   :  { %2733 = vrot.lane.b32.xlu1 %v5226_v62, %s4576_s27  ;;  %v3275_v62 = vld [vmem:[%s5547_s16 + $0x18] sm:$0xff] }
0x274c   :  { %v4336_v50 = vpack.c.bf16 %v3275_v62, %v3273_v45  ;;  %v3406_v45 = vld [vmem:[%s5549_s18 + $0x8] sm:$0xff]  ;;  %v3407_v62 = vld [vmem:[%s5549_s18 + $0x10] sm:$0xff] }
0x274e   :  { %4337 = vmatprep.subr.bf16.mxu1 %v4336_v50  ;;  %v3408_v50 = vld [vmem:[%s5549_s18 + $0x18] sm:$0xff] }
0x27b9   :  { %v3147_v40 = vpop.permute.xlu1 %3146 }
0x27ba   :  { %v3149_v46 = vadd.f32 %v3147_v40, %v4754_v24  ;;  %v3272_v24 = vld [vmem:[%s5547_s16] sm:$0xff] }
0x27bb   :  { %v4338_v48 = vpack.c.bf16 %v3274_v53, %v3272_v24  ;;  %v4372_v53 = vpack.c.bf16 %v3408_v50, %v3407_v62  ;;  %v3614_v62 = vld [vmem:[%s5550_s19] ss:$0 sm:$0xff]  ;;  %s4577_s19 = smov [#allocation3]  }
0x27bc   :  { %4542 = vtanh.f32 %v3149_v46  ;;  %s3535_s6 = sshll.u32 %s4577_s19, 4  ;;  %s3536_s6 = int_to_ptr.vmem [resolvable:$true] %s3535_s6 }
0x27bd   :  { %v2734_v23 = vpop.permute.xlu1 %2733  ;;  %4339 = vmatpush1.bf16.msra.mxu1 %v4338_v48  ;;  %v4375_v48 = vpack.c.bf16 %v3410_v44, %v3409_v55  ;;  %s4548_s28 = scalar_lea.vmem %s3536_s6, 384  ;;  %p4553_p1 = scmp.lt.s32.totalorder %s3536_s6, %s3536_s6 }
0x27be   :  { %2737 = vst.msk [vmem:[#allocation2] sm:$0xf0] %vm2736_vm6, %v2734_v23  ;;  %4341 = vmatprep.subr.bf16.mxu1 %v4340_v56  ;;  %v3411_v56 = vld [vmem:[%s5549_s18 + $0x30] sm:$0xff]  ;;  %p4549_p0 = scmp.ne.s32.totalorder %s3536_s6, %s4548_s28  ;;  %p4554_p2 = scmp.lt.s32.totalorder %s4548_s28, %s4548_s28 }
0x27bf   :  { %v4378_v36 = vpack.c.bf16 %v3412_v31, %v3411_v56 }
0x27c0   :  { %p4555_p3 = por %p4554_p2, %p4553_p1 }
0x27c1   :  { %4343 = vmatpush1.bf16.msra.mxu1 %v4342_v15  ;;  %v4381_v15 = vpack.c.bf16 %v3414_v59, %v3413_v57 }
0x27c2   :  { %4345 = vmatprep.subr.bf16.mxu1 %v4344_v60  ;;  %v3415_v60 = vld [vmem:[%s5549_s18 + $0x50] sm:$0xff]  ;;  %p4556_p4 = pnand %p4555_p3, %p4549_p0 }
0x27c5   :  { %v3166_v47 = vld [vmem:[#allocation2] sm:$0xff] }
0x27c6   :  { %v4543_v49 = vpop.eup %4542  ;;  %4142 = vmatmul.mubr.msk.f32.vlgmr.msra.gmra.mrb[32].mxu0 %vm307_vm4, %v3166_v47 }
0x27c7   :  { %3153 = vrot.lane.b32.xlu0 %v4543_v49, %s4576_s27  ;;  %4144 = vmatprep.mubr.msk.f32.mxu0 %vm4573_vm1, %v4572_v2  ;;  %v3405_v49 = vld [vmem:[%s5549_s18] sm:$0xff] }
0x27c8   :  { %v4369_v24 = vpack.c.bf16 %v3406_v45, %v3405_v49 }
0x27ca   :  { %4370 = vmatpush1.bf16.msra.mxu0 %v4369_v24 }
0x27cb   :  { %2948 = vrot.lane.b32.xlu0 %v5257_v3, %s4576_s27  ;;  %v4346_v3 = vpack.c.bf16 %v3282_v0, %v3280_v26  ;;  %4371 = vmatprep.subr.bf16.mxu0 %v4574_v8  ;;  %v3416_v26 = vld [vmem:[%s5549_s18 + $0x58] sm:$0xff] }
0x27cc   :  { %v4384_v1 = vpack.c.bf16 %v3416_v26, %v3415_v60 }
0x27cd   :  { %4347 = vmatpush1.bf16.msra.mxu1 %v4346_v3  ;;  %v3418_v3 = vld [vmem:[%s5549_s18 + $0x68] sm:$0xff] }
0x27ce   :  { %4349 = vmatprep.subr.bf16.mxu1 %v4348_v7  ;;  %4373 = vmatpush1.bf16.msra.mxu0 %v4372_v53  ;;  %v4387_v7 = vpack.c.bf16 %v3418_v3, %v3417_v4 }
0x27cf   :  { %4374 = vmatprep.subr.bf16.mxu0 %v4574_v8 }
0x27d1   :  { %4351 = vmatpush1.bf16.msra.mxu1 %v4350_v30  ;;  %v3421_v30 = vld [vmem:[%s5549_s18 + $0x80] sm:$0xff] }
0x27d2   :  { %4353 = vmatprep.subr.bf16.mxu1 %v4352_v61  ;;  %4376 = vmatpush1.bf16.msra.mxu0 %v4375_v48  ;;  %v3422_v61 = vld [vmem:[%s5549_s18 + $0x88] sm:$0xff] }
0x27d3   :  { %4377 = vmatprep.subr.bf16.mxu0 %v4574_v8  ;;  %v4393_v13 = vpack.c.bf16 %v3422_v61, %v3421_v30 }
0x27d5   :  { %4355 = vmatpush1.bf16.msra.mxu1 %v4354_v18  ;;  %v3425_v18 = vld [vmem:[%s5549_s18 + $0xa0] sm:$0xff] }
0x27d6   :  { %4357 = vmatprep.subr.bf16.mxu1 %v4356_v21  ;;  %4379 = vmatpush1.bf16.msra.mxu0 %v4378_v36  ;;  %v3426_v21 = vld [vmem:[%s5549_s18 + $0xa8] sm:$0xff] }
0x27d7   :  { %4380 = vmatprep.subr.bf16.mxu0 %v4574_v8  ;;  %v4399_v22 = vpack.c.bf16 %v3426_v21, %v3425_v18 }
0x27d9   :  { %4359 = vmatpush1.bf16.msra.mxu1 %v4358_v29 }
0x27da   :  { %4361 = vmatprep.subr.bf16.mxu1 %v4360_v5  ;;  %4382 = vmatpush1.bf16.msra.mxu0 %v4381_v15 }
0x27db   :  { %4383 = vmatprep.subr.bf16.mxu0 %v4574_v8 }
0x27dd   :  { %4363 = vmatpush1.bf16.msra.mxu1 %v4362_v12  ;;  %v3306_v12 = vlaneseq }
0x27de   :  { %4365 = vmatprep.subr.bf16.mxu1 %v4364_v35  ;;  %4385 = vmatpush1.bf16.msra.mxu0 %v4384_v1 }
0x27df   :  { %4386 = vmatprep.subr.bf16.mxu0 %v4574_v8 }
0x27e1   :  { %4367 = vmatpush1.bf16.msra.mxu1 %v4366_v19 }
0x27e2   :  { %4388 = vmatpush1.bf16.msra.mxu0 %v4387_v7 }
0x27e3   :  { %4389 = vmatprep.subr.bf16.mxu0 %v4574_v8 }
0x27e6   :  { %4391 = vmatpush1.bf16.msra.mxu0 %v4390_v10 }
0x27e7   :  { %4392 = vmatprep.subr.bf16.mxu0 %v4574_v8 }
0x27ea   :  { %4394 = vmatpush1.bf16.msra.mxu0 %v4393_v13 }
0x27eb   :  { %4395 = vmatprep.subr.bf16.mxu0 %v4574_v8 }
0x27ee   :  { %4397 = vmatpush1.bf16.msra.mxu0 %v4396_v17 }
0x27ef   :  { %4398 = vmatprep.subr.bf16.mxu0 %v4574_v8 }
0x27f2   :  { %4400 = vmatpush1.bf16.msra.mxu0 %v4399_v22 }
0x27f3   :  { %4401 = vmatprep.subr.bf16.mxu0 %v4574_v8  ;;  %v3307_v8 = vshrl.u32 %v3306_v12, 7 }
0x27f5   :  { %v3308_v33 = vsub.s32 0, %v3307_v8  ;;  %v3312_v35 = vsub.s32 1, %v3307_v8 }
0x27f6   :  { %4403 = vmatpush1.bf16.msra.mxu0 %v4402_v28 }
0x27f7   :  { %v3309_v51 = vrot.slane %v3304_v34, %v3308_v33  ;;  %v3313_v11 = vrot.slane %v3304_v34, %v3312_v35 }
0x2839   :  { %v3154_v63 = vpop.permute.xlu0 %3153 }
0x283a   :  { %v3156_v37 = vmul.f32 %v3154_v63, %v3151_v41 }
0x283c   :  { %v3160_v42 = vadd.f32 %v3159_v39, %v3156_v37 }
0x283d   :  { %v2949_v43 = vpop.permute.xlu0 %2948 }
0x283e   :  { %2951 = vst.msk [vmem:[#allocation2 + $0x8] sm:$0xf0] %vm2736_vm6, %v2949_v43  ;;  %3162 = vrot.lane.b32.xlu1 %v3160_v42, %s4576_s27 }
0x2845   :  { %v3167_v40 = vld [vmem:[#allocation2 + $0x8] sm:$0xff] }
0x2846   :  { %4145 = vmatmul.mubr.msk.f32.gmra.mrb[34].mxu0 %vm307_vm4, %v3167_v40 }
0x2847   :  { %4147 = vmatprep.mubr.msk.f32.mxu0 %vm4573_vm1, %v4572_v2 }
0x2899   :  { %v3255_v46 = vpop.f32.mrb[32].mxu0 }
0x289a   :  { %v3256_v6 = vadd.f32 %v5415_v32, %v3255_v46  ;;  %v4143_v23 = vpop.f32.mrb[33].mxu0 }
0x289c   :  { %v3269_v47 = vmax.f32 %v3256_v6, 0.0 }
0x289e   :  { %3381 = vmatmul.mubr.f32.vlgmr.msra.gmra.mrb[38].mxu1 %v3269_v47 }
0x289f   :  { %3386 = vmatprep.mubr.f32.mxu1 %v4572_v2 }
0x28b0   :  { %v3163_v0 = vpop.permute.xlu1 %3162 }
0x28b1   :  { %3165 = vst.msk [vmem:[#allocation2 + $0x10] sm:$0xf0] %vm2736_vm6, %v3163_v0 }
0x28b8   :  { %v3168_v58 = vld [vmem:[#allocation2 + $0x10] sm:$0xff] }
0x28b9   :  { %4148 = vmatmul.mubr.msk.f32.gmra.mrb[36].mxu0 %vm307_vm4, %v3168_v58 }
0x2919   :  { %v3260_v29 = vpop.f32.mrb[34].mxu0 }
0x291a   :  { %v3261_v5 = vadd.f32 %v5415_v32, %v3260_v29  ;;  %v4146_v52 = vpop.f32.mrb[35].mxu0 }
0x291c   :  { %v3270_v54 = vmax.f32 %v3261_v5, 0.0 }
0x291e   :  { %3387 = vmatmul.mubr.f32.gmra.mrb[40].mxu1 %v3270_v54 }
0x291f   :  { %3392 = vmatprep.mubr.f32.mxu1 %v4572_v2 }
0x2971   :  { %v3382_v19 = vpop.f32.mrb[38].mxu1 }
0x2972   :  { %v3383_v38 = vadd.f32 %v3382_v19, %v3309_v51  ;;  %v3384_v41 = vpop.f32.mrb[39].mxu1 }
0x2973   :  { %v3385_v63 = vadd.f32 %v3384_v41, %v3313_v11 }
0x2974   :  { %v3399_v39 = vmax.f32 %v3383_v38, 0.0 }
0x2975   :  { %v3400_v37 = vmax.f32 %v3385_v63, 0.0 }
0x2977   :  { %3615 = vmatprep.mubr.msk.f32.mxu0 %vm3436_vm7, %v3400_v37 }
0x2978   :  { %3511 = vmatmul.mubr.f32.vlgmr.msra.gmra.mrb[38].mxu0 %v3399_v39 }
0x298c   :  { %v3265_v2 = vpop.f32.mrb[36].mxu0 }
0x298d   :  { %v3266_v42 = vadd.f32 %v5415_v32, %v3265_v2  ;;  %v4149_v43 = vpop.f32.mrb[37].mxu0 }
0x298f   :  { %v3271_v40 = vmax.f32 %v3266_v42, 0.0 }
0x2991   :  { %3393 = vmatmul.mubr.f32.gmra.mrb[42].mxu1 %v3271_v40 }
0x29f1   :  { %v3388_v46 = vpop.f32.mrb[40].mxu1 }
0x29f2   :  { %v3389_v6 = vadd.f32 %v3388_v46, %v3309_v51  ;;  %v3390_v23 = vpop.f32.mrb[41].mxu1 }
0x29f3   :  { %v3391_v47 = vadd.f32 %v3390_v23, %v3313_v11 }
0x29f4   :  { %v3401_v45 = vmax.f32 %v3389_v6, 0.0 }
0x29f5   :  { %v3402_v49 = vmax.f32 %v3391_v47, 0.0 }
0x29f7   :  { %3616 = vmatprep.mubr.msk.f32.mxu0 %vm3436_vm7, %v3402_v49 }
0x29f8   :  { %3516 = vmatmul.mubr.f32.gmra.mrb[40].mxu0 %v3401_v45 }
0x2a4b   :  { %v3512_v24 = vpop.f32.mrb[38].mxu0 }
0x2a4c   :  { %v3513_v50 = vadd.f32 %v3614_v62, %v3512_v24  ;;  %v3514_v32 = vpop.f32.mrb[39].mxu0 }
0x2a4e   :  { %3527 = vst.msk [vmem:[#allocation3] sm:$0xff] %vm3526_vm8, %v3513_v50 }
0x2a64   :  { %v3394_v53 = vpop.f32.mrb[42].mxu1 }
0x2a65   :  { %v3395_v55 = vadd.f32 %v3394_v53, %v3309_v51  ;;  %v3396_v44 = vpop.f32.mrb[43].mxu1 }
0x2a66   :  { %v3397_v48 = vadd.f32 %v3396_v44, %v3313_v11 }
0x2a67   :  { %v3403_v31 = vmax.f32 %v3395_v55, 0.0 }
0x2a68   :  { %v3404_v56 = vmax.f32 %v3397_v48, 0.0 }
0x2a6a   :  { %3617 = vmatprep.mubr.msk.f32.mxu0 %vm3436_vm7, %v3404_v56 }
0x2a6b   :  { %3521 = vmatmul.mubr.f32.gmra.mrb[42].mxu0 %v3403_v31 }
0x2acb   :  { %v3517_v36 = vpop.f32.mrb[40].mxu0 }
0x2acc   :  { %v3518_v57 = vadd.f32 %v3614_v62, %v3517_v36  ;;  %v3519_v59 = vpop.f32.mrb[41].mxu0 }
0x2ace   :  { %3528 = vst.msk [vmem:[#allocation3 + $0x8] sm:$0xff] %vm3526_vm8, %v3518_v57 }
0x2b3e   :  { %v3522_v15 = vpop.f32.mrb[42].mxu0 }
0x2b3f   :  { %v3523_v60 = vadd.f32 %v3614_v62, %v3522_v15  ;;  %v3524_v26 = vpop.f32.mrb[43].mxu0 }
0x2b41   :  { %3529 = vst.msk [vmem:[#allocation3 + $0x10] sm:$0xff] %vm3526_vm8, %v3523_v60 }
0x2b42   :  { %4559 = shalt.err (!%p4556_p4)
}
0x2b43   :  { %s4560_s13 = scalar_lea.hbm %s5551_s20, 384 }
0x2b44   :  { %p4561_p5 = scmp.ne.s32.totalorder %s5551_s20, %s4560_s13  ;;  %p4564_p6 = scmp.lt.u32.totalorder %s4560_s13, %s5551_s20 }
0x2b46   :  { %p4566_p7 = pnand %p4564_p6, %p4561_p5 }
0x2b48   :  { %4569 = shalt.err (!%p4566_p7)
}
0x2b49   :  { %s4578_s2 = smov 128   ;;  %s4579_s15 = smov 8  }
0x2b4a   :  { %3541 = dma.vmem_to_hbm [thread:$0]  %s3536_s6, 384, %s5551_s20, [#allocation4], %s4578_s2, %s4578_s2, %s4579_s15  }
0x2b4b   :  { %4570 = dma.done.wait [#allocation4], 384  }
0x2b4c   :  { %4571 = vsyncadd [#allocation4], 4294966912 }
0x2b4d   :  { %3545 = vsyncpa [#allocation4], 1 }

</bundles_post_ra>
